<compile_context>
chip_gen: v7x
topology: tpu7x:2x2x1
jax: 0.10.0
libtpu: 0.0.40
codegen_flags: <defaults>
</compile_context>

<pallas_src>
import functools

import jax
import jax.numpy as jnp
from jax.experimental import pallas as pl
from jax.experimental.pallas import tpu as pltpu

EPS = 1e-5                     # nn.BatchNorm2d default eps
LANE = 128                     # lane width / MXU-friendly channel padding
VMEM_LIMIT = 32 * 1024 * 1024  # v7x-safe (64 MiB physical), ample everywhere


def _round_up(x, m):
    return (x + m - 1) // m * m


def _cparams():
    return pltpu.CompilerParams(dimension_semantics=("parallel",),
                                vmem_limit_bytes=VMEM_LIMIT)


# ---------------------------------------------------------------------------
# Kernels
# ---------------------------------------------------------------------------
def _conv3x3_stats_kernel(xp_ref, w_ref, mask_ref, z_ref, sum_ref, ssq_ref,
                          *, stride, ho, wph):
    """3x3 conv (stride 1 or 2 via phase planes) on one image + BN partials.

    xp_ref  : (1, s*s, Lph, Cin_p) bf16 phase-decomposed padded image, each
              plane flattened row-major (+ a few trailing zero rows so every
              tap window stays in bounds).
    w_ref   : (9, Cin_p, Cout_p) bf16, tap-major (kh*3 + kw).
    mask_ref: (ho*wph, 1) f32, 1.0 on valid output columns (< Wo) else 0.0.
    z_ref   : (1, ho*wph, Cout_p) bf16 conv output (garbage columns kept, they
              are masked out of the stats and sliced off in the wrapper).
    sum_ref / ssq_ref : (1, 1, Cout_p) f32 per-grid-step partial sums.
    """
    s = stride
    how = ho * wph
    cout = w_ref.shape[-1]
    acc = jnp.zeros((how, cout), jnp.float32)
    for kh in range(3):
        for kw in range(3):
            ph = (kh % s) * s + (kw % s)
            off = (kh // s) * wph + (kw // s)
            lhs = xp_ref[0, ph, off:off + how, :]
            acc += jnp.dot(lhs, w_ref[kh * 3 + kw],
                           preferred_element_type=jnp.float32)
    z_ref[0] = acc.astype(z_ref.dtype)
    zm = acc * mask_ref[...]                      # zero the garbage columns
    sum_ref[0] = jnp.sum(zm, axis=0, keepdims=True)
    ssq_ref[0] = jnp.sum(zm * acc, axis=0, keepdims=True)


def _conv3x3_sc_stats_kernel(xp_ref, w_ref, xs_ref, wsc_ref, mask_ref,
                             z_ref, y_ref, sum_z, ssq_z, sum_y, ssq_y,
                             *, ho, wph):
    """Fused conv2 (3x3, stride 1) + 1x1 projection shortcut + both stat sets."""
    how = ho * wph
    cout = w_ref.shape[-1]
    acc = jnp.zeros((how, cout), jnp.float32)
    for kh in range(3):
        for kw in range(3):
            off = kh * wph + kw
            acc += jnp.dot(xp_ref[0, 0, off:off + how, :], w_ref[kh * 3 + kw],
                           preferred_element_type=jnp.float32)
    ysc = jnp.dot(xs_ref[0], wsc_ref[...], preferred_element_type=jnp.float32)

    z_ref[0] = acc.astype(z_ref.dtype)
    y_ref[0] = ysc.astype(y_ref.dtype)

    zm = acc * mask_ref[...]
    sum_z[0] = jnp.sum(zm, axis=0, keepdims=True)
    ssq_z[0] = jnp.sum(zm * acc, axis=0, keepdims=True)
    # Shortcut garbage columns are exact zeros (zero-padded input) -> no mask.
    sum_y[0] = jnp.sum(ysc, axis=0, keepdims=True)
    ssq_y[0] = jnp.sum(ysc * ysc, axis=0, keepdims=True)


def _affine_kernel(z_ref, a_ref, c_ref, o_ref, *, relu):
    """y = z*a + c (+ ReLU) with precomputed global BN coefficients."""
    y = z_ref[0].astype(jnp.float32) * a_ref[...] + c_ref[...]
    if relu:
        y = jnp.maximum(y, 0.0)
    o_ref[0] = y.astype(o_ref.dtype)


def _affine_res_kernel(z_ref, a_ref, c_ref, r_ref, o_ref):
    """y = relu(z*a + c + r) -- BN2 + identity shortcut + ReLU."""
    y = (z_ref[0].astype(jnp.float32) * a_ref[...] + c_ref[...]
         + r_ref[0].astype(jnp.float32))
    o_ref[0] = jnp.maximum(y, 0.0).astype(o_ref.dtype)


def _affine_res_affine_kernel(z_ref, a_ref, c_ref, zr_ref, ar_ref, cr_ref, o_ref):
    """y = relu(bn2(z) + bn_sc(z_sc)) -- BN2 + projection-shortcut BN + ReLU."""
    y = (z_ref[0].astype(jnp.float32) * a_ref[...] + c_ref[...]
         + zr_ref[0].astype(jnp.float32) * ar_ref[...] + cr_ref[...])
    o_ref[0] = jnp.maximum(y, 0.0).astype(o_ref.dtype)


# ---------------------------------------------------------------------------
# pallas_call wrappers (grid over batch images, "parallel" for megacore)
# ---------------------------------------------------------------------------
def _by_img3(i):
    return (i, 0, 0)


def _by_img4(i):
    return (i, 0, 0, 0)


def _fixed2(i):
    return (0, 0)


def _fixed3(i):
    return (0, 0, 0)


def conv3x3_stats(xp, w9, mask, *, stride, ho, wph):
    n, s2, lph, cin = xp.shape
    cout = w9.shape[-1]
    how = ho * wph
    stats = jax.ShapeDtypeStruct((n, 1, cout), jnp.float32)
    return pl.pallas_call(
        functools.partial(_conv3x3_stats_kernel, stride=stride, ho=ho, wph=wph),
        grid=(n,),
        in_specs=[pl.BlockSpec((1, s2, lph, cin), _by_img4),
                  pl.BlockSpec((9, cin, cout), _fixed3),
                  pl.BlockSpec((how, 1), _fixed2)],
        out_specs=[pl.BlockSpec((1, how, cout), _by_img3),
                   pl.BlockSpec((1, 1, cout), _by_img3),
                   pl.BlockSpec((1, 1, cout), _by_img3)],
        out_shape=[jax.ShapeDtypeStruct((n, how, cout), jnp.bfloat16),
                   stats, stats],
        compiler_params=_cparams(),
    )(xp, w9, mask)


def conv3x3_sc_stats(xp, w9, xs, wsc, mask, *, ho, wph):
    n, s2, lph, cin = xp.shape
    cinx = xs.shape[-1]
    cout = w9.shape[-1]
    how = ho * wph
    stats = jax.ShapeDtypeStruct((n, 1, cout), jnp.float32)
    return pl.pallas_call(
        functools.partial(_conv3x3_sc_stats_kernel, ho=ho, wph=wph),
        grid=(n,),
        in_specs=[pl.BlockSpec((1, s2, lph, cin), _by_img4),
                  pl.BlockSpec((9, cin, cout), _fixed3),
                  pl.BlockSpec((1, how, cinx), _by_img3),
                  pl.BlockSpec((cinx, cout), _fixed2),
                  pl.BlockSpec((how, 1), _fixed2)],
        out_specs=[pl.BlockSpec((1, how, cout), _by_img3),
                   pl.BlockSpec((1, how, cout), _by_img3),
                   pl.BlockSpec((1, 1, cout), _by_img3),
                   pl.BlockSpec((1, 1, cout), _by_img3),
                   pl.BlockSpec((1, 1, cout), _by_img3),
                   pl.BlockSpec((1, 1, cout), _by_img3)],
        out_shape=[jax.ShapeDtypeStruct((n, how, cout), jnp.bfloat16),
                   jax.ShapeDtypeStruct((n, how, cout), jnp.bfloat16),
                   stats, stats, stats, stats],
        compiler_params=_cparams(),
    )(xp, w9, xs, wsc, mask)


def affine_act(z, a, c, *, relu, out_dtype):
    n, how, cp = z.shape
    return pl.pallas_call(
        functools.partial(_affine_kernel, relu=relu),
        grid=(n,),
        in_specs=[pl.BlockSpec((1, how, cp), _by_img3),
                  pl.BlockSpec((1, cp), _fixed2),
                  pl.BlockSpec((1, cp), _fixed2)],
        out_specs=pl.BlockSpec((1, how, cp), _by_img3),
        out_shape=jax.ShapeDtypeStruct((n, how, cp), out_dtype),
        compiler_params=_cparams(),
    )(z, a, c)


def affine_res_act(z, a, c, r):
    n, how, cp = z.shape
    return pl.pallas_call(
        _affine_res_kernel,
        grid=(n,),
        in_specs=[pl.BlockSpec((1, how, cp), _by_img3),
                  pl.BlockSpec((1, cp), _fixed2),
                  pl.BlockSpec((1, cp), _fixed2),
                  pl.BlockSpec((1, how, cp), _by_img3)],
        out_specs=pl.BlockSpec((1, how, cp), _by_img3),
        out_shape=jax.ShapeDtypeStruct((n, how, cp), jnp.float32),
        compiler_params=_cparams(),
    )(z, a, c, r)


def affine_res_affine_act(z, a, c, zr, ar, cr):
    n, how, cp = z.shape
    return pl.pallas_call(
        _affine_res_affine_kernel,
        grid=(n,),
        in_specs=[pl.BlockSpec((1, how, cp), _by_img3),
                  pl.BlockSpec((1, cp), _fixed2),
                  pl.BlockSpec((1, cp), _fixed2),
                  pl.BlockSpec((1, how, cp), _by_img3),
                  pl.BlockSpec((1, cp), _fixed2),
                  pl.BlockSpec((1, cp), _fixed2)],
        out_specs=pl.BlockSpec((1, how, cp), _by_img3),
        out_shape=jax.ShapeDtypeStruct((n, how, cp), jnp.float32),
        compiler_params=_cparams(),
    )(z, a, c, zr, ar, cr)


# ---------------------------------------------------------------------------
# Plain-JAX glue: padding / phase planes / weight reshaping / BN coefficients
# ---------------------------------------------------------------------------
def _conv_geometry(h, w, stride):
    ho = (h + 2 - 3) // stride + 1
    wo = (w + 2 - 3) // stride + 1
    return ho, wo


def _phase_planes(x_nhwc, stride):
    """Spatial zero-pad by 1, split into stride^2 phase planes, flatten each
    plane row-major and append zero rows so every 3x3 tap window is in bounds.
    Returns (planes (N, s*s, Lph, C), ho, wo, wph)."""
    n, h, w, c = x_nhwc.shape
    s = stride
    ho, wo = _conv_geometry(h, w, s)
    xp = jnp.pad(x_nhwc, ((0, 0), (1, 1), (1, 1), (0, 0)))
    hp, wp = h + 2, w + 2
    hp2, wp2 = _round_up(hp, s), _round_up(wp, s)
    xp = jnp.pad(xp, ((0, 0), (0, hp2 - hp), (0, wp2 - wp), (0, 0)))
    hph, wph = hp2 // s, wp2 // s
    if s == 1:
        xp = xp.reshape(n, 1, hph * wph, c)
    else:
        xp = xp.reshape(n, hph, s, wph, s, c)
        xp = jnp.transpose(xp, (0, 2, 4, 1, 3, 5))   # (n, p, q, hph, wph, c)
        xp = xp.reshape(n, s * s, hph * wph, c)
    extra = _round_up(2 * wph + 2 + 8, 8)            # cover worst-case tap end
    xp = jnp.pad(xp, ((0, 0), (0, 0), (0, extra), (0, 0)))
    return xp, ho, wo, wph


def _valid_mask(ho, wo, wph):
    col = jnp.arange(wph) < wo
    return jnp.broadcast_to(col, (ho, wph)).reshape(ho * wph, 1).astype(jnp.float32)


def _pad_ch(x_nhwc, c_p, dtype=jnp.bfloat16):
    c = x_nhwc.shape[-1]
    return jnp.pad(x_nhwc, ((0, 0), (0, 0), (0, 0), (0, c_p - c))).astype(dtype)


def _w3x3_taps(w_oihw, cin_p, cout_p):
    cout, cin, kh, kw = w_oihw.shape
    w = jnp.transpose(w_oihw, (2, 3, 1, 0)).reshape(kh * kw, cin, cout)
    w = jnp.pad(w, ((0, 0), (0, cin_p - cin), (0, cout_p - cout)))
    return w.astype(jnp.bfloat16)


def _w1x1(w_oihw, cin_p, cout_p):
    cout, cin, _, _ = w_oihw.shape
    w = jnp.transpose(w_oihw, (2, 3, 1, 0)).reshape(cin, cout)
    w = jnp.pad(w, ((0, cin_p - cin), (0, cout_p - cout)))
    return w.astype(jnp.bfloat16)


def _pad_vec(v, cp):
    return jnp.pad(v.reshape(1, -1), ((0, 0), (0, cp - v.shape[0])))


def _bn_coeffs(sum_steps, ssq_steps, count, gamma_p, beta_p):
    # Global batch stats (biased var, E[z^2]-mean^2) -> affine coefficients.
    s = jnp.sum(sum_steps, axis=0)       # (1, Cp)
    q = jnp.sum(ssq_steps, axis=0)
    mean = s / count
    var = jnp.maximum(q / count - mean * mean, 0.0)
    a = gamma_p * jax.lax.rsqrt(var + EPS)
    c = beta_p - mean * a
    return a, c


# ---------------------------------------------------------------------------
# BasicBlock parameters + forward
# ---------------------------------------------------------------------------
def init_basic_block(key, in_planes, planes, stride):
    ks = jax.random.split(key, 8)
    p = {
        "conv1_w": 0.1 * jax.random.normal(ks[0], (planes, in_planes, 3, 3), jnp.float32),
        "bn1_g": 1.0 + 0.1 * jax.random.normal(ks[1], (planes,), jnp.float32),
        "bn1_b": 0.1 * jax.random.normal(ks[2], (planes,), jnp.float32),
        "conv2_w": 0.1 * jax.random.normal(ks[3], (planes, planes, 3, 3), jnp.float32),
        "bn2_g": 1.0 + 0.1 * jax.random.normal(ks[4], (planes,), jnp.float32),
        "bn2_b": 0.1 * jax.random.normal(ks[5], (planes,), jnp.float32),
    }
    if stride != 1 or in_planes != planes:
        p["sc_w"] = 0.1 * jax.random.normal(ks[6], (planes, in_planes, 1, 1), jnp.float32)
        p["sc_g"] = 1.0 + 0.1 * jax.random.normal(ks[7], (planes,), jnp.float32)
        p["sc_b"] = jnp.zeros((planes,), jnp.float32)
    return p


def basic_block_forward(x_nchw, params, stride):
    n, in_planes, h, w = x_nchw.shape
    planes = params["conv1_w"].shape[0]
    cxp = _round_up(in_planes, LANE)
    cp = _round_up(planes, LANE)

    x = jnp.transpose(x_nchw, (0, 2, 3, 1))                    # NHWC f32
    xb = _pad_ch(x, cxp)                                       # bf16, ch-padded

    # ---------------- stage 1: conv1 (3x3, stride) + bn1 + relu -------------
    xp1, ho, wo, wph1 = _phase_planes(xb, stride)
    w1 = _w3x3_taps(params["conv1_w"], cxp, cp)
    m1 = _valid_mask(ho, wo, wph1)
    z1, s1, q1 = conv3x3_stats(xp1, w1, m1, stride=stride, ho=ho, wph=wph1)
    a1, c1 = _bn_coeffs(s1, q1, n * ho * wo,
                        _pad_vec(params["bn1_g"], cp),
                        _pad_vec(params["bn1_b"], cp))
    out1 = affine_act(z1, a1, c1, relu=True, out_dtype=jnp.bfloat16)
    out1 = out1.reshape(n, ho, wph1, cp)[:, :, :wo, :]         # drop wrap cols

    # -------- stage 2: conv2 (3x3, s=1) + bn2 [+ shortcut] + relu -----------
    xp2, ho2, wo2, wph2 = _phase_planes(out1, 1)
    assert (ho2, wo2) == (ho, wo)
    how2 = ho * wph2
    w2 = _w3x3_taps(params["conv2_w"], cp, cp)
    m2 = _valid_mask(ho, wo, wph2)
    g2 = _pad_vec(params["bn2_g"], cp)
    b2 = _pad_vec(params["bn2_b"], cp)

    if stride != 1 or in_planes != planes:
        # Projection shortcut: 1x1/stride conv == strided spatial subsample
        # (valid only because conv1 is k=3 / p=1 -> assert the grid matches).
        xs = xb[:, ::stride, ::stride, :]
        assert xs.shape[1] == ho and xs.shape[2] == wo
        xs = jnp.pad(xs, ((0, 0), (0, 0), (0, wph2 - wo), (0, 0)))
        xs = xs.reshape(n, how2, cxp)
        wsc = _w1x1(params["sc_w"], cxp, cp)
        z2, zsc, s2, q2, ssc, qsc = conv3x3_sc_stats(
            xp2, w2, xs, wsc, m2, ho=ho, wph=wph2)
        a2, c2 = _bn_coeffs(s2, q2, n * ho * wo, g2, b2)
        asc, csc = _bn_coeffs(ssc, qsc, n * ho * wo,
                              _pad_vec(params["sc_g"], cp),
                              _pad_vec(params["sc_b"], cp))
        out = affine_res_affine_act(z2, a2, c2, zsc, asc, csc)
    else:
        z2, s2, q2 = conv3x3_stats(xp2, w2, m2, stride=1, ho=ho, wph=wph2)
        a2, c2 = _bn_coeffs(s2, q2, n * ho * wo, g2, b2)
        # Identity residual: bf16, channel-padded, width padded to wph2.
        r = jnp.pad(_pad_ch(x, cp), ((0, 0), (0, 0), (0, wph2 - w), (0, 0)))
        r = r.reshape(n, how2, cp)
        out = affine_res_act(z2, a2, c2, r)

    out = out.reshape(n, ho, wph2, cp)[:, :, :wo, :planes]
    return jnp.transpose(out, (0, 3, 1, 2))                    # NCHW


# ---------------------------------------------------------------------------
# Pure-JAX reference for verification
# ---------------------------------------------------------------------------
def _ref_conv(x_nhwc, w_oihw, stride, padding):
    w_hwio = jnp.transpose(w_oihw, (2, 3, 1, 0))
    return jax.lax.conv_general_dilated(
        x_nhwc, w_hwio, window_strides=(stride, stride),
        padding=[(padding, padding), (padding, padding)],
        dimension_numbers=("NHWC", "HWIO", "NHWC"))


def _ref_bn(z, g, b):
    mean = jnp.mean(z, axis=(0, 1, 2), keepdims=True)
    var = jnp.mean(jnp.square(z - mean), axis=(0, 1, 2), keepdims=True)
    return (z - mean) * jax.lax.rsqrt(var + EPS) * g + b


def basic_block_reference(x_nchw, params, stride):
    in_planes = x_nchw.shape[1]
    planes = params["conv1_w"].shape[0]
    x = jnp.transpose(x_nchw, (0, 2, 3, 1)).astype(jnp.float32)
    out = jnp.maximum(_ref_bn(_ref_conv(x, params["conv1_w"], stride, 1),
                              params["bn1_g"], params["bn1_b"]), 0.0)
    out = _ref_bn(_ref_conv(out, params["conv2_w"], 1, 1),
                  params["bn2_g"], params["bn2_b"])
    if stride != 1 or in_planes != planes:
        sc = _ref_bn(_ref_conv(x, params["sc_w"], stride, 0),
                     params["sc_g"], params["sc_b"])
    else:
        sc = x
    out = jnp.maximum(out + sc, 0.0)
    return jnp.transpose(out, (0, 3, 1, 2))


if __name__ == "__main__":
    key = jax.random.PRNGKey(0)
    kx, kp1, kp2 = jax.random.split(key, 3)

    fwd = jax.jit(basic_block_forward, static_argnums=(2,))

    # bf16 MXU inputs + bf16 conv-output storage vs f32 reference.
    ATOL = RTOL = 4e-2

    # Case 1: downsampling block (stride=2, channel change -> projection shortcut)
    x1 = jax.random.normal(kx, (2, 4, 16, 16), jnp.float32)    # NCHW
    params1 = init_basic_block(kp1, in_planes=4, planes=8, stride=2)
    out1 = jax.block_until_ready(fwd(x1, params1, 2))
    ref1 = basic_block_reference(x1, params1, 2)
    assert out1.shape == (2, 8, 8, 8), out1.shape
    err1 = float(jnp.max(jnp.abs(out1 - ref1)))
    assert jnp.allclose(out1, ref1, atol=ATOL, rtol=RTOL), err1

    # Case 2: identity-shortcut block (stride=1, same channels)
    x2 = jax.random.normal(kx, (2, 8, 16, 16), jnp.float32)
    params2 = init_basic_block(kp2, in_planes=8, planes=8, stride=1)
    out2 = jax.block_until_ready(fwd(x2, params2, 1))
    ref2 = basic_block_reference(x2, params2, 1)
    assert out2.shape == (2, 8, 16, 16), out2.shape
    err2 = float(jnp.max(jnp.abs(out2 - ref2)))
    assert jnp.allclose(out2, ref2, atol=ATOL, rtol=RTOL), err2

    print("KERNEL_OK")
</pallas_src>

<mosaic_0001>
module attributes {stable_mosaic.version = 11 : i64} {
  func.func @_affine_kernel(%arg0: i32, %arg1: memref<1x72x128xbf16, #tpu.memory_space<vmem>>, %arg2: memref<1x128xf32, #tpu.memory_space<vmem>>, %arg3: memref<1x128xf32, #tpu.memory_space<vmem>>, %arg4: memref<1x72x128xbf16, #tpu.memory_space<vmem>>) attributes {dimension_semantics = [#tpu.dimension_semantics<parallel>], iteration_bounds = array<i64: 2>, scalar_prefetch = 0 : i64, scratch_operands = 0 : i64, tpu.core_type = #tpu.core_type<tc>, window_params = [{transform_indices = @transform_0, window_bounds = array<i64: 1, 72, 128>}, {pipeline_mode = #tpu.pipeline_mode<synchronous>, transform_indices = @transform_1, window_bounds = array<i64: 1, 128>}, {pipeline_mode = #tpu.pipeline_mode<synchronous>, transform_indices = @transform_2, window_bounds = array<i64: 1, 128>}, {transform_indices = @transform_3, window_bounds = array<i64: 1, 72, 128>}]} {
    %c0 = arith.constant 0 : index
    %c0_0 = arith.constant 0 : index
    %c0_1 = arith.constant 0 : index
    %0 = vector.load %arg1[%c0, %c0_0, %c0_1] : memref<1x72x128xbf16, #tpu.memory_space<vmem>>, vector<1x72x128xbf16>
    %1 = vector.shape_cast %0 : vector<1x72x128xbf16> to vector<72x128xbf16>
    %2 = arith.extf %1 : vector<72x128xbf16> to vector<72x128xf32>
    %c0_2 = arith.constant 0 : index
    %c0_3 = arith.constant 0 : index
    %3 = vector.load %arg2[%c0_2, %c0_3] : memref<1x128xf32, #tpu.memory_space<vmem>>, vector<1x128xf32>
    %4 = vector.broadcast %3 : vector<1x128xf32> to vector<72x128xf32>
    %5 = arith.mulf %2, %4 : vector<72x128xf32>
    %c0_4 = arith.constant 0 : index
    %c0_5 = arith.constant 0 : index
    %6 = vector.load %arg3[%c0_4, %c0_5] : memref<1x128xf32, #tpu.memory_space<vmem>>, vector<1x128xf32>
    %7 = vector.broadcast %6 : vector<1x128xf32> to vector<72x128xf32>
    %8 = arith.addf %5, %7 : vector<72x128xf32>
    %cst = arith.constant 0.000000e+00 : f32
    %9 = vector.broadcast %cst : f32 to vector<72x128xf32>
    %10 = arith.maximumf %8, %9 : vector<72x128xf32>
    %11 = arith.truncf %10 : vector<72x128xf32> to vector<72x128xbf16>
    %c0_6 = arith.constant 0 : index
    %c0_7 = arith.constant 0 : index
    %c0_8 = arith.constant 0 : index
    %12 = vector.load %arg4[%c0_6, %c0_7, %c0_8] : memref<1x72x128xbf16, #tpu.memory_space<vmem>>, vector<1x72x128xbf16>
    %13 = vector.shape_cast %12 : vector<1x72x128xbf16> to vector<72x128xbf16>
    %14 = vector.shape_cast %11 : vector<72x128xbf16> to vector<1x72x128xbf16>
    tpu.vector_store %arg4[%c0_6, %c0_7, %c0_8], %14 {strides = array<i32>} : memref<1x72x128xbf16, #tpu.memory_space<vmem>>, vector<1x72x128xbf16>,
    return
  }
  func.func @transform_0(%arg0: i32) -> (i32, i32, i32) {
    %c0_i32 = arith.constant 0 : i32
    %c0_i32_0 = arith.constant 0 : i32
    %c0_i32_1 = arith.constant 0 : i32
    return %arg0, %c0_i32, %c0_i32_0 : i32, i32, i32
  }
  func.func @transform_1(%arg0: i32) -> (i32, i32) {
    %c0_i32 = arith.constant 0 : i32
    %c0_i32_0 = arith.constant 0 : i32
    %c0_i32_1 = arith.constant 0 : i32
    return %c0_i32, %c0_i32_0 : i32, i32
  }
  func.func @transform_2(%arg0: i32) -> (i32, i32) {
    %c0_i32 = arith.constant 0 : i32
    %c0_i32_0 = arith.constant 0 : i32
    %c0_i32_1 = arith.constant 0 : i32
    return %c0_i32, %c0_i32_0 : i32, i32
  }
  func.func @transform_3(%arg0: i32) -> (i32, i32, i32) {
    %c0_i32 = arith.constant 0 : i32
    %c0_i32_0 = arith.constant 0 : i32
    %c0_i32_1 = arith.constant 0 : i32
    return %arg0, %c0_i32, %c0_i32_0 : i32, i32, i32
  }
}

module attributes {stable_mosaic.version = 11 : i64} {
  func.func @_conv3x3_stats_kernel(%arg0: i32, %arg1: memref<1x4x113x128xbf16, #tpu.memory_space<vmem>>, %arg2: memref<9x128x128xbf16, #tpu.memory_space<vmem>>, %arg3: memref<72x1xf32, #tpu.memory_space<vmem>>, %arg4: memref<1x72x128xbf16, #tpu.memory_space<vmem>>, %arg5: memref<1x1x128xf32, #tpu.memory_space<vmem>>, %arg6: memref<1x1x128xf32, #tpu.memory_space<vmem>>) attributes {dimension_semantics = [#tpu.dimension_semantics<parallel>], iteration_bounds = array<i64: 2>, scalar_prefetch = 0 : i64, scratch_operands = 0 : i64, tpu.core_type = #tpu.core_type<tc>, window_params = [{transform_indices = @transform_0, window_bounds = array<i64: 1, 4, 113, 128>}, {pipeline_mode = #tpu.pipeline_mode<synchronous>, transform_indices = @transform_1, window_bounds = array<i64: 9, 128, 128>}, {pipeline_mode = #tpu.pipeline_mode<synchronous>, transform_indices = @transform_2, window_bounds = array<i64: 72, 1>}, {transform_indices = @transform_3, window_bounds = array<i64: 1, 72, 128>}, {transform_indices = @transform_4, window_bounds = array<i64: 1, 1, 128>}, {transform_indices = @transform_5, window_bounds = array<i64: 1, 1, 128>}]} {
    %cst = arith.constant 0.000000e+00 : f32
    %0 = vector.broadcast %cst : f32 to vector<72x128xf32>
    %c0 = arith.constant 0 : index
    %c0_0 = arith.constant 0 : index
    %c0_1 = arith.constant 0 : index
    %c0_2 = arith.constant 0 : index
    %1 = vector.load %arg1[%c0, %c0_0, %c0_1, %c0_2] : memref<1x4x113x128xbf16, #tpu.memory_space<vmem>>, vector<1x1x72x128xbf16>
    %2 = vector.shape_cast %1 : vector<1x1x72x128xbf16> to vector<72x128xbf16>
    %c0_3 = arith.constant 0 : index
    %c0_4 = arith.constant 0 : index
    %c0_5 = arith.constant 0 : index
    %3 = vector.load %arg2[%c0_3, %c0_4, %c0_5] : memref<9x128x128xbf16, #tpu.memory_space<vmem>>, vector<1x128x128xbf16>
    %4 = vector.shape_cast %3 : vector<1x128x128xbf16> to vector<128x128xbf16>
    %cst_6 = arith.constant dense<0.000000e+00> : vector<72x128xf32>
    %5 = tpu.matmul %2, %4, %cst_6 {dimension_numbers = #tpu.dot_dimension_numbers<[1], [0], [0], [1], [0, 0, 1, 1], [], []>} : vector<72x128xbf16>, vector<128x128xbf16>, vector<72x128xf32> -> vector<72x128xf32>
    %6 = arith.addf %0, %5 : vector<72x128xf32>
    %c0_7 = arith.constant 0 : index
    %c1 = arith.constant 1 : index
    %c0_8 = arith.constant 0 : index
    %c0_9 = arith.constant 0 : index
    %7 = vector.load %arg1[%c0_7, %c1, %c0_8, %c0_9] : memref<1x4x113x128xbf16, #tpu.memory_space<vmem>>, vector<1x1x72x128xbf16>
    %8 = vector.shape_cast %7 : vector<1x1x72x128xbf16> to vector<72x128xbf16>
    %c1_10 = arith.constant 1 : index
    %c0_11 = arith.constant 0 : index
    %c0_12 = arith.constant 0 : index
    %9 = vector.load %arg2[%c1_10, %c0_11, %c0_12] : memref<9x128x128xbf16, #tpu.memory_space<vmem>>, vector<1x128x128xbf16>
    %10 = vector.shape_cast %9 : vector<1x128x128xbf16> to vector<128x128xbf16>
    %cst_13 = arith.constant dense<0.000000e+00> : vector<72x128xf32>
    %11 = tpu.matmul %8, %10, %cst_13 {dimension_numbers = #tpu.dot_dimension_numbers<[1], [0], [0], [1], [0, 0, 1, 1], [], []>} : vector<72x128xbf16>, vector<128x128xbf16>, vector<72x128xf32> -> vector<72x128xf32>
    %12 = arith.addf %6, %11 : vector<72x128xf32>
    %c0_14 = arith.constant 0 : index
    %c0_15 = arith.constant 0 : index
    %c1_16 = arith.constant 1 : index
    %c0_17 = arith.constant 0 : index
    %13 = vector.load %arg1[%c0_14, %c0_15, %c1_16, %c0_17] : memref<1x4x113x128xbf16, #tpu.memory_space<vmem>>, vector<1x1x72x128xbf16>
    %14 = vector.shape_cast %13 : vector<1x1x72x128xbf16> to vector<72x128xbf16>
    %c2 = arith.constant 2 : index
    %c0_18 = arith.constant 0 : index
    %c0_19 = arith.constant 0 : index
    %15 = vector.load %arg2[%c2, %c0_18, %c0_19] : memref<9x128x128xbf16, #tpu.memory_space<vmem>>, vector<1x128x128xbf16>
    %16 = vector.shape_cast %15 : vector<1x128x128xbf16> to vector<128x128xbf16>
    %cst_20 = arith.constant dense<0.000000e+00> : vector<72x128xf32>
    %17 = tpu.matmul %14, %16, %cst_20 {dimension_numbers = #tpu.dot_dimension_numbers<[1], [0], [0], [1], [0, 0, 1, 1], [], []>} : vector<72x128xbf16>, vector<128x128xbf16>, vector<72x128xf32> -> vector<72x128xf32>
    %18 = arith.addf %12, %17 : vector<72x128xf32>
    %c0_21 = arith.constant 0 : index
    %c2_22 = arith.constant 2 : index
    %c0_23 = arith.constant 0 : index
    %c0_24 = arith.constant 0 : index
    %19 = vector.load %arg1[%c0_21, %c2_22, %c0_23, %c0_24] : memref<1x4x113x128xbf16, #tpu.memory_space<vmem>>, vector<1x1x72x128xbf16>
    %20 = vector.shape_cast %19 : vector<1x1x72x128xbf16> to vector<72x128xbf16>
    %c3 = arith.constant 3 : index
    %c0_25 = arith.constant 0 : index
    %c0_26 = arith.constant 0 : index
    %21 = vector.load %arg2[%c3, %c0_25, %c0_26] : memref<9x128x128xbf16, #tpu.memory_space<vmem>>, vector<1x128x128xbf16>
    %22 = vector.shape_cast %21 : vector<1x128x128xbf16> to vector<128x128xbf16>
    %cst_27 = arith.constant dense<0.000000e+00> : vector<72x128xf32>
    %23 = tpu.matmul %20, %22, %cst_27 {dimension_numbers = #tpu.dot_dimension_numbers<[1], [0], [0], [1], [0, 0, 1, 1], [], []>} : vector<72x128xbf16>, vector<128x128xbf16>, vector<72x128xf32> -> vector<72x128xf32>
    %24 = arith.addf %18, %23 : vector<72x128xf32>
    %c0_28 = arith.constant 0 : index
    %c3_29 = arith.constant 3 : index
    %c0_30 = arith.constant 0 : index
    %c0_31 = arith.constant 0 : index
    %25 = vector.load %arg1[%c0_28, %c3_29, %c0_30, %c0_31] : memref<1x4x113x128xbf16, #tpu.memory_space<vmem>>, vector<1x1x72x128xbf16>
    %26 = vector.shape_cast %25 : vector<1x1x72x128xbf16> to vector<72x128xbf16>
    %c4 = arith.constant 4 : index
    %c0_32 = arith.constant 0 : index
    %c0_33 = arith.constant 0 : index
    %27 = vector.load %arg2[%c4, %c0_32, %c0_33] : memref<9x128x128xbf16, #tpu.memory_space<vmem>>, vector<1x128x128xbf16>
    %28 = vector.shape_cast %27 : vector<1x128x128xbf16> to vector<128x128xbf16>
    %cst_34 = arith.constant dense<0.000000e+00> : vector<72x128xf32>
    %29 = tpu.matmul %26, %28, %cst_34 {dimension_numbers = #tpu.dot_dimension_numbers<[1], [0], [0], [1], [0, 0, 1, 1], [], []>} : vector<72x128xbf16>, vector<128x128xbf16>, vector<72x128xf32> -> vector<72x128xf32>
    %30 = arith.addf %24, %29 : vector<72x128xf32>
    %c0_35 = arith.constant 0 : index
    %c2_36 = arith.constant 2 : index
    %c1_37 = arith.constant 1 : index
    %c0_38 = arith.constant 0 : index
    %31 = vector.load %arg1[%c0_35, %c2_36, %c1_37, %c0_38] : memref<1x4x113x128xbf16, #tpu.memory_space<vmem>>, vector<1x1x72x128xbf16>
    %32 = vector.shape_cast %31 : vector<1x1x72x128xbf16> to vector<72x128xbf16>
    %c5 = arith.constant 5 : index
    %c0_39 = arith.constant 0 : index
    %c0_40 = arith.constant 0 : index
    %33 = vector.load %arg2[%c5, %c0_39, %c0_40] : memref<9x128x128xbf16, #tpu.memory_space<vmem>>, vector<1x128x128xbf16>
    %34 = vector.shape_cast %33 : vector<1x128x128xbf16> to vector<128x128xbf16>
    %cst_41 = arith.constant dense<0.000000e+00> : vector<72x128xf32>
    %35 = tpu.matmul %32, %34, %cst_41 {dimension_numbers = #tpu.dot_dimension_numbers<[1], [0], [0], [1], [0, 0, 1, 1], [], []>} : vector<72x128xbf16>, vector<128x128xbf16>, vector<72x128xf32> -> vector<72x128xf32>
    %36 = arith.addf %30, %35 : vector<72x128xf32>
    %c0_42 = arith.constant 0 : index
    %c0_43 = arith.constant 0 : index
    %c9 = arith.constant 9 : index
    %c0_44 = arith.constant 0 : index
    %37 = vector.load %arg1[%c0_42, %c0_43, %c9, %c0_44] : memref<1x4x113x128xbf16, #tpu.memory_space<vmem>>, vector<1x1x72x128xbf16>
    %38 = vector.shape_cast %37 : vector<1x1x72x128xbf16> to vector<72x128xbf16>
    %c6 = arith.constant 6 : index
    %c0_45 = arith.constant 0 : index
    %c0_46 = arith.constant 0 : index
    %39 = vector.load %arg2[%c6, %c0_45, %c0_46] : memref<9x128x128xbf16, #tpu.memory_space<vmem>>, vector<1x128x128xbf16>
    %40 = vector.shape_cast %39 : vector<1x128x128xbf16> to vector<128x128xbf16>
    %cst_47 = arith.constant dense<0.000000e+00> : vector<72x128xf32>
    %41 = tpu.matmul %38, %40, %cst_47 {dimension_numbers = #tpu.dot_dimension_numbers<[1], [0], [0], [1], [0, 0, 1, 1], [], []>} : vector<72x128xbf16>, vector<128x128xbf16>, vector<72x128xf32> -> vector<72x128xf32>
    %42 = arith.addf %36, %41 : vector<72x128xf32>
    %c0_48 = arith.constant 0 : index
    %c1_49 = arith.constant 1 : index
    %c9_50 = arith.constant 9 : index
    %c0_51 = arith.constant 0 : index
    %43 = vector.load %arg1[%c0_48, %c1_49, %c9_50, %c0_51] : memref<1x4x113x128xbf16, #tpu.memory_space<vmem>>, vector<1x1x72x128xbf16>
    %44 = vector.shape_cast %43 : vector<1x1x72x128xbf16> to vector<72x128xbf16>
    %c7 = arith.constant 7 : index
    %c0_52 = arith.constant 0 : index
    %c0_53 = arith.constant 0 : index
    %45 = vector.load %arg2[%c7, %c0_52, %c0_53] : memref<9x128x128xbf16, #tpu.memory_space<vmem>>, vector<1x128x128xbf16>
    %46 = vector.shape_cast %45 : vector<1x128x128xbf16> to vector<128x128xbf16>
    %cst_54 = arith.constant dense<0.000000e+00> : vector<72x128xf32>
    %47 = tpu.matmul %44, %46, %cst_54 {dimension_numbers = #tpu.dot_dimension_numbers<[1], [0], [0], [1], [0, 0, 1, 1], [], []>} : vector<72x128xbf16>, vector<128x128xbf16>, vector<72x128xf32> -> vector<72x128xf32>
    %48 = arith.addf %42, %47 : vector<72x128xf32>
    %c0_55 = arith.constant 0 : index
    %c0_56 = arith.constant 0 : index
    %c10 = arith.constant 10 : index
    %c0_57 = arith.constant 0 : index
    %49 = vector.load %arg1[%c0_55, %c0_56, %c10, %c0_57] : memref<1x4x113x128xbf16, #tpu.memory_space<vmem>>, vector<1x1x72x128xbf16>
    %50 = vector.shape_cast %49 : vector<1x1x72x128xbf16> to vector<72x128xbf16>
    %c8 = arith.constant 8 : index
    %c0_58 = arith.constant 0 : index
    %c0_59 = arith.constant 0 : index
    %51 = vector.load %arg2[%c8, %c0_58, %c0_59] : memref<9x128x128xbf16, #tpu.memory_space<vmem>>, vector<1x128x128xbf16>
    %52 = vector.shape_cast %51 : vector<1x128x128xbf16> to vector<128x128xbf16>
    %cst_60 = arith.constant dense<0.000000e+00> : vector<72x128xf32>
    %53 = tpu.matmul %50, %52, %cst_60 {dimension_numbers = #tpu.dot_dimension_numbers<[1], [0], [0], [1], [0, 0, 1, 1], [], []>} : vector<72x128xbf16>, vector<128x128xbf16>, vector<72x128xf32> -> vector<72x128xf32>
    %54 = arith.addf %48, %53 : vector<72x128xf32>
    %55 = arith.truncf %54 : vector<72x128xf32> to vector<72x128xbf16>
    %c0_61 = arith.constant 0 : index
    %c0_62 = arith.constant 0 : index
    %c0_63 = arith.constant 0 : index
    %56 = vector.load %arg4[%c0_61, %c0_62, %c0_63] : memref<1x72x128xbf16, #tpu.memory_space<vmem>>, vector<1x72x128xbf16>
    %57 = vector.shape_cast %56 : vector<1x72x128xbf16> to vector<72x128xbf16>
    %58 = vector.shape_cast %55 : vector<72x128xbf16> to vector<1x72x128xbf16>
    tpu.vector_store %arg4[%c0_61, %c0_62, %c0_63], %58 {strides = array<i32>} : memref<1x72x128xbf16, #tpu.memory_space<vmem>>, vector<1x72x128xbf16>,
    %c0_64 = arith.constant 0 : index
    %c0_65 = arith.constant 0 : index
    %59 = vector.load %arg3[%c0_64, %c0_65] : memref<72x1xf32, #tpu.memory_space<vmem>>, vector<72x1xf32>
    %60 = vector.broadcast %59 : vector<72x1xf32> to vector<72x128xf32>
    %61 = arith.mulf %54, %60 : vector<72x128xf32>
    %cst_66 = arith.constant dense<0.000000e+00> : vector<128xf32>
    %62 = vector.multi_reduction <add>, %61, %cst_66 [0] : vector<72x128xf32> to vector<128xf32>
    %63 = vector.shape_cast %62 : vector<128xf32> to vector<1x128xf32>
    %c0_67 = arith.constant 0 : index
    %c0_68 = arith.constant 0 : index
    %c0_69 = arith.constant 0 : index
    %64 = vector.load %arg5[%c0_67, %c0_68, %c0_69] : memref<1x1x128xf32, #tpu.memory_space<vmem>>, vector<1x1x128xf32>
    %65 = vector.shape_cast %64 : vector<1x1x128xf32> to vector<1x128xf32>
    %66 = vector.shape_cast %63 : vector<1x128xf32> to vector<1x1x128xf32>
    tpu.vector_store %arg5[%c0_67, %c0_68, %c0_69], %66 {strides = array<i32>} : memref<1x1x128xf32, #tpu.memory_space<vmem>>, vector<1x1x128xf32>,
    %67 = arith.mulf %61, %54 : vector<72x128xf32>
    %cst_70 = arith.constant dense<0.000000e+00> : vector<128xf32>
    %68 = vector.multi_reduction <add>, %67, %cst_70 [0] : vector<72x128xf32> to vector<128xf32>
    %69 = vector.shape_cast %68 : vector<128xf32> to vector<1x128xf32>
    %c0_71 = arith.constant 0 : index
    %c0_72 = arith.constant 0 : index
    %c0_73 = arith.constant 0 : index
    %70 = vector.load %arg6[%c0_71, %c0_72, %c0_73] : memref<1x1x128xf32, #tpu.memory_space<vmem>>, vector<1x1x128xf32>
    %71 = vector.shape_cast %70 : vector<1x1x128xf32> to vector<1x128xf32>
    %72 = vector.shape_cast %69 : vector<1x128xf32> to vector<1x1x128xf32>
    tpu.vector_store %arg6[%c0_71, %c0_72, %c0_73], %72 {strides = array<i32>} : memref<1x1x128xf32, #tpu.memory_space<vmem>>, vector<1x1x128xf32>,
    return
  }
  func.func @transform_0(%arg0: i32) -> (i32, i32, i32, i32) {
    %c0_i32 = arith.constant 0 : i32
    %c0_i32_0 = arith.constant 0 : i32
    %c0_i32_1 = arith.constant 0 : i32
    %c0_i32_2 = arith.constant 0 : i32
    return %arg0, %c0_i32, %c0_i32_0, %c0_i32_1 : i32, i32, i32, i32
  }
  func.func @transform_1(%arg0: i32) -> (i32, i32, i32) {
    %c0_i32 = arith.constant 0 : i32
    %c0_i32_0 = arith.constant 0 : i32
    %c0_i32_1 = arith.constant 0 : i32
    %c0_i32_2 = arith.constant 0 : i32
    return %c0_i32, %c0_i32_0, %c0_i32_1 : i32, i32, i32
  }
  func.func @transform_2(%arg0: i32) -> (i32, i32) {
    %c0_i32 = arith.constant 0 : i32
    %c0_i32_0 = arith.constant 0 : i32
    %c0_i32_1 = arith.constant 0 : i32
    return %c0_i32, %c0_i32_0 : i32, i32
  }
  func.func @transform_3(%arg0: i32) -> (i32, i32, i32) {
    %c0_i32 = arith.constant 0 : i32
    %c0_i32_0 = arith.constant 0 : i32
    %c0_i32_1 = arith.constant 0 : i32
    return %arg0, %c0_i32, %c0_i32_0 : i32, i32, i32
  }
  func.func @transform_4(%arg0: i32) -> (i32, i32, i32) {
    %c0_i32 = arith.constant 0 : i32
    %c0_i32_0 = arith.constant 0 : i32
    %c0_i32_1 = arith.constant 0 : i32
    return %arg0, %c0_i32, %c0_i32_0 : i32, i32, i32
  }
  func.func @transform_5(%arg0: i32) -> (i32, i32, i32) {
    %c0_i32 = arith.constant 0 : i32
    %c0_i32_0 = arith.constant 0 : i32
    %c0_i32_1 = arith.constant 0 : i32
    return %arg0, %c0_i32, %c0_i32_0 : i32, i32, i32
  }
}

module attributes {stable_mosaic.version = 11 : i64} {
  func.func @_conv3x3_sc_stats_kernel(%arg0: i32, %arg1: memref<1x1x132x128xbf16, #tpu.memory_space<vmem>>, %arg2: memref<9x128x128xbf16, #tpu.memory_space<vmem>>, %arg3: memref<1x80x128xbf16, #tpu.memory_space<vmem>>, %arg4: memref<128x128xbf16, #tpu.memory_space<vmem>>, %arg5: memref<80x1xf32, #tpu.memory_space<vmem>>, %arg6: memref<1x80x128xbf16, #tpu.memory_space<vmem>>, %arg7: memref<1x80x128xbf16, #tpu.memory_space<vmem>>, %arg8: memref<1x1x128xf32, #tpu.memory_space<vmem>>, %arg9: memref<1x1x128xf32, #tpu.memory_space<vmem>>, %arg10: memref<1x1x128xf32, #tpu.memory_space<vmem>>, %arg11: memref<1x1x128xf32, #tpu.memory_space<vmem>>) attributes {dimension_semantics = [#tpu.dimension_semantics<parallel>], iteration_bounds = array<i64: 2>, scalar_prefetch = 0 : i64, scratch_operands = 0 : i64, tpu.core_type = #tpu.core_type<tc>, window_params = [{transform_indices = @transform_0, window_bounds = array<i64: 1, 1, 132, 128>}, {pipeline_mode = #tpu.pipeline_mode<synchronous>, transform_indices = @transform_1, window_bounds = array<i64: 9, 128, 128>}, {transform_indices = @transform_2, window_bounds = array<i64: 1, 80, 128>}, {pipeline_mode = #tpu.pipeline_mode<synchronous>, transform_indices = @transform_3, window_bounds = array<i64: 128, 128>}, {pipeline_mode = #tpu.pipeline_mode<synchronous>, transform_indices = @transform_4, window_bounds = array<i64: 80, 1>}, {transform_indices = @transform_5, window_bounds = array<i64: 1, 80, 128>}, {transform_indices = @transform_6, window_bounds = array<i64: 1, 80, 128>}, {transform_indices = @transform_7, window_bounds = array<i64: 1, 1, 128>}, {transform_indices = @transform_8, window_bounds = array<i64: 1, 1, 128>}, {transform_indices = @transform_9, window_bounds = array<i64: 1, 1, 128>}, {transform_indices = @transform_10, window_bounds = array<i64: 1, 1, 128>}]} {
    %cst = arith.constant 0.000000e+00 : f32
    %0 = vector.broadcast %cst : f32 to vector<80x128xf32>
    %c0 = arith.constant 0 : index
    %c0_0 = arith.constant 0 : index
    %c0_1 = arith.constant 0 : index
    %c0_2 = arith.constant 0 : index
    %1 = vector.load %arg1[%c0, %c0_0, %c0_1, %c0_2] : memref<1x1x132x128xbf16, #tpu.memory_space<vmem>>, vector<1x1x80x128xbf16>
    %2 = vector.shape_cast %1 : vector<1x1x80x128xbf16> to vector<80x128xbf16>
    %c0_3 = arith.constant 0 : index
    %c0_4 = arith.constant 0 : index
    %c0_5 = arith.constant 0 : index
    %3 = vector.load %arg2[%c0_3, %c0_4, %c0_5] : memref<9x128x128xbf16, #tpu.memory_space<vmem>>, vector<1x128x128xbf16>
    %4 = vector.shape_cast %3 : vector<1x128x128xbf16> to vector<128x128xbf16>
    %cst_6 = arith.constant dense<0.000000e+00> : vector<80x128xf32>
    %5 = tpu.matmul %2, %4, %cst_6 {dimension_numbers = #tpu.dot_dimension_numbers<[1], [0], [0], [1], [0, 0, 1, 1], [], []>} : vector<80x128xbf16>, vector<128x128xbf16>, vector<80x128xf32> -> vector<80x128xf32>
    %6 = arith.addf %0, %5 : vector<80x128xf32>
    %c0_7 = arith.constant 0 : index
    %c0_8 = arith.constant 0 : index
    %c1 = arith.constant 1 : index
    %c0_9 = arith.constant 0 : index
    %7 = vector.load %arg1[%c0_7, %c0_8, %c1, %c0_9] : memref<1x1x132x128xbf16, #tpu.memory_space<vmem>>, vector<1x1x80x128xbf16>
    %8 = vector.shape_cast %7 : vector<1x1x80x128xbf16> to vector<80x128xbf16>
    %c1_10 = arith.constant 1 : index
    %c0_11 = arith.constant 0 : index
    %c0_12 = arith.constant 0 : index
    %9 = vector.load %arg2[%c1_10, %c0_11, %c0_12] : memref<9x128x128xbf16, #tpu.memory_space<vmem>>, vector<1x128x128xbf16>
    %10 = vector.shape_cast %9 : vector<1x128x128xbf16> to vector<128x128xbf16>
    %cst_13 = arith.constant dense<0.000000e+00> : vector<80x128xf32>
    %11 = tpu.matmul %8, %10, %cst_13 {dimension_numbers = #tpu.dot_dimension_numbers<[1], [0], [0], [1], [0, 0, 1, 1], [], []>} : vector<80x128xbf16>, vector<128x128xbf16>, vector<80x128xf32> -> vector<80x128xf32>
    %12 = arith.addf %6, %11 : vector<80x128xf32>
    %c0_14 = arith.constant 0 : index
    %c0_15 = arith.constant 0 : index
    %c2 = arith.constant 2 : index
    %c0_16 = arith.constant 0 : index
    %13 = vector.load %arg1[%c0_14, %c0_15, %c2, %c0_16] : memref<1x1x132x128xbf16, #tpu.memory_space<vmem>>, vector<1x1x80x128xbf16>
    %14 = vector.shape_cast %13 : vector<1x1x80x128xbf16> to vector<80x128xbf16>
    %c2_17 = arith.constant 2 : index
    %c0_18 = arith.constant 0 : index
    %c0_19 = arith.constant 0 : index
    %15 = vector.load %arg2[%c2_17, %c0_18, %c0_19] : memref<9x128x128xbf16, #tpu.memory_space<vmem>>, vector<1x128x128xbf16>
    %16 = vector.shape_cast %15 : vector<1x128x128xbf16> to vector<128x128xbf16>
    %cst_20 = arith.constant dense<0.000000e+00> : vector<80x128xf32>
    %17 = tpu.matmul %14, %16, %cst_20 {dimension_numbers = #tpu.dot_dimension_numbers<[1], [0], [0], [1], [0, 0, 1, 1], [], []>} : vector<80x128xbf16>, vector<128x128xbf16>, vector<80x128xf32> -> vector<80x128xf32>
    %18 = arith.addf %12, %17 : vector<80x128xf32>
    %c0_21 = arith.constant 0 : index
    %c0_22 = arith.constant 0 : index
    %c10 = arith.constant 10 : index
    %c0_23 = arith.constant 0 : index
    %19 = vector.load %arg1[%c0_21, %c0_22, %c10, %c0_23] : memref<1x1x132x128xbf16, #tpu.memory_space<vmem>>, vector<1x1x80x128xbf16>
    %20 = vector.shape_cast %19 : vector<1x1x80x128xbf16> to vector<80x128xbf16>
    %c3 = arith.constant 3 : index
    %c0_24 = arith.constant 0 : index
    %c0_25 = arith.constant 0 : index
    %21 = vector.load %arg2[%c3, %c0_24, %c0_25] : memref<9x128x128xbf16, #tpu.memory_space<vmem>>, vector<1x128x128xbf16>
    %22 = vector.shape_cast %21 : vector<1x128x128xbf16> to vector<128x128xbf16>
    %cst_26 = arith.constant dense<0.000000e+00> : vector<80x128xf32>
    %23 = tpu.matmul %20, %22, %cst_26 {dimension_numbers = #tpu.dot_dimension_numbers<[1], [0], [0], [1], [0, 0, 1, 1], [], []>} : vector<80x128xbf16>, vector<128x128xbf16>, vector<80x128xf32> -> vector<80x128xf32>
    %24 = arith.addf %18, %23 : vector<80x128xf32>
    %c0_27 = arith.constant 0 : index
    %c0_28 = arith.constant 0 : index
    %c11 = arith.constant 11 : index
    %c0_29 = arith.constant 0 : index
    %25 = vector.load %arg1[%c0_27, %c0_28, %c11, %c0_29] : memref<1x1x132x128xbf16, #tpu.memory_space<vmem>>, vector<1x1x80x128xbf16>
    %26 = vector.shape_cast %25 : vector<1x1x80x128xbf16> to vector<80x128xbf16>
    %c4 = arith.constant 4 : index
    %c0_30 = arith.constant 0 : index
    %c0_31 = arith.constant 0 : index
    %27 = vector.load %arg2[%c4, %c0_30, %c0_31] : memref<9x128x128xbf16, #tpu.memory_space<vmem>>, vector<1x128x128xbf16>
    %28 = vector.shape_cast %27 : vector<1x128x128xbf16> to vector<128x128xbf16>
    %cst_32 = arith.constant dense<0.000000e+00> : vector<80x128xf32>
    %29 = tpu.matmul %26, %28, %cst_32 {dimension_numbers = #tpu.dot_dimension_numbers<[1], [0], [0], [1], [0, 0, 1, 1], [], []>} : vector<80x128xbf16>, vector<128x128xbf16>, vector<80x128xf32> -> vector<80x128xf32>
    %30 = arith.addf %24, %29 : vector<80x128xf32>
    %c0_33 = arith.constant 0 : index
    %c0_34 = arith.constant 0 : index
    %c12 = arith.constant 12 : index
    %c0_35 = arith.constant 0 : index
    %31 = vector.load %arg1[%c0_33, %c0_34, %c12, %c0_35] : memref<1x1x132x128xbf16, #tpu.memory_space<vmem>>, vector<1x1x80x128xbf16>
    %32 = vector.shape_cast %31 : vector<1x1x80x128xbf16> to vector<80x128xbf16>
    %c5 = arith.constant 5 : index
    %c0_36 = arith.constant 0 : index
    %c0_37 = arith.constant 0 : index
    %33 = vector.load %arg2[%c5, %c0_36, %c0_37] : memref<9x128x128xbf16, #tpu.memory_space<vmem>>, vector<1x128x128xbf16>
    %34 = vector.shape_cast %33 : vector<1x128x128xbf16> to vector<128x128xbf16>
    %cst_38 = arith.constant dense<0.000000e+00> : vector<80x128xf32>
    %35 = tpu.matmul %32, %34, %cst_38 {dimension_numbers = #tpu.dot_dimension_numbers<[1], [0], [0], [1], [0, 0, 1, 1], [], []>} : vector<80x128xbf16>, vector<128x128xbf16>, vector<80x128xf32> -> vector<80x128xf32>
    %36 = arith.addf %30, %35 : vector<80x128xf32>
    %c0_39 = arith.constant 0 : index
    %c0_40 = arith.constant 0 : index
    %c20 = arith.constant 20 : index
    %c0_41 = arith.constant 0 : index
    %37 = vector.load %arg1[%c0_39, %c0_40, %c20, %c0_41] : memref<1x1x132x128xbf16, #tpu.memory_space<vmem>>, vector<1x1x80x128xbf16>
    %38 = vector.shape_cast %37 : vector<1x1x80x128xbf16> to vector<80x128xbf16>
    %c6 = arith.constant 6 : index
    %c0_42 = arith.constant 0 : index
    %c0_43 = arith.constant 0 : index
    %39 = vector.load %arg2[%c6, %c0_42, %c0_43] : memref<9x128x128xbf16, #tpu.memory_space<vmem>>, vector<1x128x128xbf16>
    %40 = vector.shape_cast %39 : vector<1x128x128xbf16> to vector<128x128xbf16>
    %cst_44 = arith.constant dense<0.000000e+00> : vector<80x128xf32>
    %41 = tpu.matmul %38, %40, %cst_44 {dimension_numbers = #tpu.dot_dimension_numbers<[1], [0], [0], [1], [0, 0, 1, 1], [], []>} : vector<80x128xbf16>, vector<128x128xbf16>, vector<80x128xf32> -> vector<80x128xf32>
    %42 = arith.addf %36, %41 : vector<80x128xf32>
    %c0_45 = arith.constant 0 : index
    %c0_46 = arith.constant 0 : index
    %c21 = arith.constant 21 : index
    %c0_47 = arith.constant 0 : index
    %43 = vector.load %arg1[%c0_45, %c0_46, %c21, %c0_47] : memref<1x1x132x128xbf16, #tpu.memory_space<vmem>>, vector<1x1x80x128xbf16>
    %44 = vector.shape_cast %43 : vector<1x1x80x128xbf16> to vector<80x128xbf16>
    %c7 = arith.constant 7 : index
    %c0_48 = arith.constant 0 : index
    %c0_49 = arith.constant 0 : index
    %45 = vector.load %arg2[%c7, %c0_48, %c0_49] : memref<9x128x128xbf16, #tpu.memory_space<vmem>>, vector<1x128x128xbf16>
    %46 = vector.shape_cast %45 : vector<1x128x128xbf16> to vector<128x128xbf16>
    %cst_50 = arith.constant dense<0.000000e+00> : vector<80x128xf32>
    %47 = tpu.matmul %44, %46, %cst_50 {dimension_numbers = #tpu.dot_dimension_numbers<[1], [0], [0], [1], [0, 0, 1, 1], [], []>} : vector<80x128xbf16>, vector<128x128xbf16>, vector<80x128xf32> -> vector<80x128xf32>
    %48 = arith.addf %42, %47 : vector<80x128xf32>
    %c0_51 = arith.constant 0 : index
    %c0_52 = arith.constant 0 : index
    %c22 = arith.constant 22 : index
    %c0_53 = arith.constant 0 : index
    %49 = vector.load %arg1[%c0_51, %c0_52, %c22, %c0_53] : memref<1x1x132x128xbf16, #tpu.memory_space<vmem>>, vector<1x1x80x128xbf16>
    %50 = vector.shape_cast %49 : vector<1x1x80x128xbf16> to vector<80x128xbf16>
    %c8 = arith.constant 8 : index
    %c0_54 = arith.constant 0 : index
    %c0_55 = arith.constant 0 : index
    %51 = vector.load %arg2[%c8, %c0_54, %c0_55] : memref<9x128x128xbf16, #tpu.memory_space<vmem>>, vector<1x128x128xbf16>
    %52 = vector.shape_cast %51 : vector<1x128x128xbf16> to vector<128x128xbf16>
    %cst_56 = arith.constant dense<0.000000e+00> : vector<80x128xf32>
    %53 = tpu.matmul %50, %52, %cst_56 {dimension_numbers = #tpu.dot_dimension_numbers<[1], [0], [0], [1], [0, 0, 1, 1], [], []>} : vector<80x128xbf16>, vector<128x128xbf16>, vector<80x128xf32> -> vector<80x128xf32>
    %54 = arith.addf %48, %53 : vector<80x128xf32>
    %c0_57 = arith.constant 0 : index
    %c0_58 = arith.constant 0 : index
    %c0_59 = arith.constant 0 : index
    %55 = vector.load %arg3[%c0_57, %c0_58, %c0_59] : memref<1x80x128xbf16, #tpu.memory_space<vmem>>, vector<1x80x128xbf16>
    %56 = vector.shape_cast %55 : vector<1x80x128xbf16> to vector<80x128xbf16>
    %c0_60 = arith.constant 0 : index
    %c0_61 = arith.constant 0 : index
    %57 = vector.load %arg4[%c0_60, %c0_61] : memref<128x128xbf16, #tpu.memory_space<vmem>>, vector<128x128xbf16>
    %cst_62 = arith.constant dense<0.000000e+00> : vector<80x128xf32>
    %58 = tpu.matmul %56, %57, %cst_62 {dimension_numbers = #tpu.dot_dimension_numbers<[1], [0], [0], [1], [0, 0, 1, 1], [], []>} : vector<80x128xbf16>, vector<128x128xbf16>, vector<80x128xf32> -> vector<80x128xf32>
    %59 = arith.truncf %54 : vector<80x128xf32> to vector<80x128xbf16>
    %c0_63 = arith.constant 0 : index
    %c0_64 = arith.constant 0 : index
    %c0_65 = arith.constant 0 : index
    %60 = vector.load %arg6[%c0_63, %c0_64, %c0_65] : memref<1x80x128xbf16, #tpu.memory_space<vmem>>, vector<1x80x128xbf16>
    %61 = vector.shape_cast %60 : vector<1x80x128xbf16> to vector<80x128xbf16>
    %62 = vector.shape_cast %59 : vector<80x128xbf16> to vector<1x80x128xbf16>
    tpu.vector_store %arg6[%c0_63, %c0_64, %c0_65], %62 {strides = array<i32>} : memref<1x80x128xbf16, #tpu.memory_space<vmem>>, vector<1x80x128xbf16>,
    %63 = arith.truncf %58 : vector<80x128xf32> to vector<80x128xbf16>
    %c0_66 = arith.constant 0 : index
    %c0_67 = arith.constant 0 : index
    %c0_68 = arith.constant 0 : index
    %64 = vector.load %arg7[%c0_66, %c0_67, %c0_68] : memref<1x80x128xbf16, #tpu.memory_space<vmem>>, vector<1x80x128xbf16>
    %65 = vector.shape_cast %64 : vector<1x80x128xbf16> to vector<80x128xbf16>
    %66 = vector.shape_cast %63 : vector<80x128xbf16> to vector<1x80x128xbf16>
    tpu.vector_store %arg7[%c0_66, %c0_67, %c0_68], %66 {strides = array<i32>} : memref<1x80x128xbf16, #tpu.memory_space<vmem>>, vector<1x80x128xbf16>,
    %c0_69 = arith.constant 0 : index
    %c0_70 = arith.constant 0 : index
    %67 = vector.load %arg5[%c0_69, %c0_70] : memref<80x1xf32, #tpu.memory_space<vmem>>, vector<80x1xf32>
    %68 = vector.broadcast %67 : vector<80x1xf32> to vector<80x128xf32>
    %69 = arith.mulf %54, %68 : vector<80x128xf32>
    %cst_71 = arith.constant dense<0.000000e+00> : vector<128xf32>
    %70 = vector.multi_reduction <add>, %69, %cst_71 [0] : vector<80x128xf32> to vector<128xf32>
    %71 = vector.shape_cast %70 : vector<128xf32> to vector<1x128xf32>
    %c0_72 = arith.constant 0 : index
    %c0_73 = arith.constant 0 : index
    %c0_74 = arith.constant 0 : index
    %72 = vector.load %arg8[%c0_72, %c0_73, %c0_74] : memref<1x1x128xf32, #tpu.memory_space<vmem>>, vector<1x1x128xf32>
    %73 = vector.shape_cast %72 : vector<1x1x128xf32> to vector<1x128xf32>
    %74 = vector.shape_cast %71 : vector<1x128xf32> to vector<1x1x128xf32>
    tpu.vector_store %arg8[%c0_72, %c0_73, %c0_74], %74 {strides = array<i32>} : memref<1x1x128xf32, #tpu.memory_space<vmem>>, vector<1x1x128xf32>,
    %75 = arith.mulf %69, %54 : vector<80x128xf32>
    %cst_75 = arith.constant dense<0.000000e+00> : vector<128xf32>
    %76 = vector.multi_reduction <add>, %75, %cst_75 [0] : vector<80x128xf32> to vector<128xf32>
    %77 = vector.shape_cast %76 : vector<128xf32> to vector<1x128xf32>
    %c0_76 = arith.constant 0 : index
    %c0_77 = arith.constant 0 : index
    %c0_78 = arith.constant 0 : index
    %78 = vector.load %arg9[%c0_76, %c0_77, %c0_78] : memref<1x1x128xf32, #tpu.memory_space<vmem>>, vector<1x1x128xf32>
    %79 = vector.shape_cast %78 : vector<1x1x128xf32> to vector<1x128xf32>
    %80 = vector.shape_cast %77 : vector<1x128xf32> to vector<1x1x128xf32>
    tpu.vector_store %arg9[%c0_76, %c0_77, %c0_78], %80 {strides = array<i32>} : memref<1x1x128xf32, #tpu.memory_space<vmem>>, vector<1x1x128xf32>,
    %cst_79 = arith.constant dense<0.000000e+00> : vector<128xf32>
    %81 = vector.multi_reduction <add>, %58, %cst_79 [0] : vector<80x128xf32> to vector<128xf32>
    %82 = vector.shape_cast %81 : vector<128xf32> to vector<1x128xf32>
    %c0_80 = arith.constant 0 : index
    %c0_81 = arith.constant 0 : index
    %c0_82 = arith.constant 0 : index
    %83 = vector.load %arg10[%c0_80, %c0_81, %c0_82] : memref<1x1x128xf32, #tpu.memory_space<vmem>>, vector<1x1x128xf32>
    %84 = vector.shape_cast %83 : vector<1x1x128xf32> to vector<1x128xf32>
    %85 = vector.shape_cast %82 : vector<1x128xf32> to vector<1x1x128xf32>
    tpu.vector_store %arg10[%c0_80, %c0_81, %c0_82], %85 {strides = array<i32>} : memref<1x1x128xf32, #tpu.memory_space<vmem>>, vector<1x1x128xf32>,
    %86 = arith.mulf %58, %58 : vector<80x128xf32>
    %cst_83 = arith.constant dense<0.000000e+00> : vector<128xf32>
    %87 = vector.multi_reduction <add>, %86, %cst_83 [0] : vector<80x128xf32> to vector<128xf32>
    %88 = vector.shape_cast %87 : vector<128xf32> to vector<1x128xf32>
    %c0_84 = arith.constant 0 : index
    %c0_85 = arith.constant 0 : index
    %c0_86 = arith.constant 0 : index
    %89 = vector.load %arg11[%c0_84, %c0_85, %c0_86] : memref<1x1x128xf32, #tpu.memory_space<vmem>>, vector<1x1x128xf32>
    %90 = vector.shape_cast %89 : vector<1x1x128xf32> to vector<1x128xf32>
    %91 = vector.shape_cast %88 : vector<1x128xf32> to vector<1x1x128xf32>
    tpu.vector_store %arg11[%c0_84, %c0_85, %c0_86], %91 {strides = array<i32>} : memref<1x1x128xf32, #tpu.memory_space<vmem>>, vector<1x1x128xf32>,
    return
  }
  func.func @transform_0(%arg0: i32) -> (i32, i32, i32, i32) {
    %c0_i32 = arith.constant 0 : i32
    %c0_i32_0 = arith.constant 0 : i32
    %c0_i32_1 = arith.constant 0 : i32
    %c0_i32_2 = arith.constant 0 : i32
    return %arg0, %c0_i32, %c0_i32_0, %c0_i32_1 : i32, i32, i32, i32
  }
  func.func @transform_1(%arg0: i32) -> (i32, i32, i32) {
    %c0_i32 = arith.constant 0 : i32
    %c0_i32_0 = arith.constant 0 : i32
    %c0_i32_1 = arith.constant 0 : i32
    %c0_i32_2 = arith.constant 0 : i32
    return %c0_i32, %c0_i32_0, %c0_i32_1 : i32, i32, i32
  }
  func.func @transform_2(%arg0: i32) -> (i32, i32, i32) {
    %c0_i32 = arith.constant 0 : i32
    %c0_i32_0 = arith.constant 0 : i32
    %c0_i32_1 = arith.constant 0 : i32
    return %arg0, %c0_i32, %c0_i32_0 : i32, i32, i32
  }
  func.func @transform_3(%arg0: i32) -> (i32, i32) {
    %c0_i32 = arith.constant 0 : i32
    %c0_i32_0 = arith.constant 0 : i32
    %c0_i32_1 = arith.constant 0 : i32
    return %c0_i32, %c0_i32_0 : i32, i32
  }
  func.func @transform_4(%arg0: i32) -> (i32, i32) {
    %c0_i32 = arith.constant 0 : i32
    %c0_i32_0 = arith.constant 0 : i32
    %c0_i32_1 = arith.constant 0 : i32
    return %c0_i32, %c0_i32_0 : i32, i32
  }
  func.func @transform_5(%arg0: i32) -> (i32, i32, i32) {
    %c0_i32 = arith.constant 0 : i32
    %c0_i32_0 = arith.constant 0 : i32
    %c0_i32_1 = arith.constant 0 : i32
    return %arg0, %c0_i32, %c0_i32_0 : i32, i32, i32
  }
  func.func @transform_6(%arg0: i32) -> (i32, i32, i32) {
    %c0_i32 = arith.constant 0 : i32
    %c0_i32_0 = arith.constant 0 : i32
    %c0_i32_1 = arith.constant 0 : i32
    return %arg0, %c0_i32, %c0_i32_0 : i32, i32, i32
  }
  func.func @transform_7(%arg0: i32) -> (i32, i32, i32) {
    %c0_i32 = arith.constant 0 : i32
    %c0_i32_0 = arith.constant 0 : i32
    %c0_i32_1 = arith.constant 0 : i32
    return %arg0, %c0_i32, %c0_i32_0 : i32, i32, i32
  }
  func.func @transform_8(%arg0: i32) -> (i32, i32, i32) {
    %c0_i32 = arith.constant 0 : i32
    %c0_i32_0 = arith.constant 0 : i32
    %c0_i32_1 = arith.constant 0 : i32
    return %arg0, %c0_i32, %c0_i32_0 : i32, i32, i32
  }
  func.func @transform_9(%arg0: i32) -> (i32, i32, i32) {
    %c0_i32 = arith.constant 0 : i32
    %c0_i32_0 = arith.constant 0 : i32
    %c0_i32_1 = arith.constant 0 : i32
    return %arg0, %c0_i32, %c0_i32_0 : i32, i32, i32
  }
  func.func @transform_10(%arg0: i32) -> (i32, i32, i32) {
    %c0_i32 = arith.constant 0 : i32
    %c0_i32_0 = arith.constant 0 : i32
    %c0_i32_1 = arith.constant 0 : i32
    return %arg0, %c0_i32, %c0_i32_0 : i32, i32, i32
  }
}

module attributes {stable_mosaic.version = 11 : i64} {
  func.func @_affine_res_affine_kernel(%arg0: i32, %arg1: memref<1x80x128xbf16, #tpu.memory_space<vmem>>, %arg2: memref<1x128xf32, #tpu.memory_space<vmem>>, %arg3: memref<1x128xf32, #tpu.memory_space<vmem>>, %arg4: memref<1x80x128xbf16, #tpu.memory_space<vmem>>, %arg5: memref<1x128xf32, #tpu.memory_space<vmem>>, %arg6: memref<1x128xf32, #tpu.memory_space<vmem>>, %arg7: memref<1x80x128xf32, #tpu.memory_space<vmem>>) attributes {dimension_semantics = [#tpu.dimension_semantics<parallel>], iteration_bounds = array<i64: 2>, scalar_prefetch = 0 : i64, scratch_operands = 0 : i64, tpu.core_type = #tpu.core_type<tc>, window_params = [{transform_indices = @transform_0, window_bounds = array<i64: 1, 80, 128>}, {pipeline_mode = #tpu.pipeline_mode<synchronous>, transform_indices = @transform_1, window_bounds = array<i64: 1, 128>}, {pipeline_mode = #tpu.pipeline_mode<synchronous>, transform_indices = @transform_2, window_bounds = array<i64: 1, 128>}, {transform_indices = @transform_3, window_bounds = array<i64: 1, 80, 128>}, {pipeline_mode = #tpu.pipeline_mode<synchronous>, transform_indices = @transform_4, window_bounds = array<i64: 1, 128>}, {pipeline_mode = #tpu.pipeline_mode<synchronous>, transform_indices = @transform_5, window_bounds = array<i64: 1, 128>}, {transform_indices = @transform_6, window_bounds = array<i64: 1, 80, 128>}]} {
    %c0 = arith.constant 0 : index
    %c0_0 = arith.constant 0 : index
    %c0_1 = arith.constant 0 : index
    %0 = vector.load %arg1[%c0, %c0_0, %c0_1] : memref<1x80x128xbf16, #tpu.memory_space<vmem>>, vector<1x80x128xbf16>
    %1 = vector.shape_cast %0 : vector<1x80x128xbf16> to vector<80x128xbf16>
    %2 = arith.extf %1 : vector<80x128xbf16> to vector<80x128xf32>
    %c0_2 = arith.constant 0 : index
    %c0_3 = arith.constant 0 : index
    %3 = vector.load %arg2[%c0_2, %c0_3] : memref<1x128xf32, #tpu.memory_space<vmem>>, vector<1x128xf32>
    %4 = vector.broadcast %3 : vector<1x128xf32> to vector<80x128xf32>
    %5 = arith.mulf %2, %4 : vector<80x128xf32>
    %c0_4 = arith.constant 0 : index
    %c0_5 = arith.constant 0 : index
    %6 = vector.load %arg3[%c0_4, %c0_5] : memref<1x128xf32, #tpu.memory_space<vmem>>, vector<1x128xf32>
    %7 = vector.broadcast %6 : vector<1x128xf32> to vector<80x128xf32>
    %8 = arith.addf %5, %7 : vector<80x128xf32>
    %c0_6 = arith.constant 0 : index
    %c0_7 = arith.constant 0 : index
    %c0_8 = arith.constant 0 : index
    %9 = vector.load %arg4[%c0_6, %c0_7, %c0_8] : memref<1x80x128xbf16, #tpu.memory_space<vmem>>, vector<1x80x128xbf16>
    %10 = vector.shape_cast %9 : vector<1x80x128xbf16> to vector<80x128xbf16>
    %11 = arith.extf %10 : vector<80x128xbf16> to vector<80x128xf32>
    %c0_9 = arith.constant 0 : index
    %c0_10 = arith.constant 0 : index
    %12 = vector.load %arg5[%c0_9, %c0_10] : memref<1x128xf32, #tpu.memory_space<vmem>>, vector<1x128xf32>
    %13 = vector.broadcast %12 : vector<1x128xf32> to vector<80x128xf32>
    %14 = arith.mulf %11, %13 : vector<80x128xf32>
    %15 = arith.addf %8, %14 : vector<80x128xf32>
    %c0_11 = arith.constant 0 : index
    %c0_12 = arith.constant 0 : index
    %16 = vector.load %arg6[%c0_11, %c0_12] : memref<1x128xf32, #tpu.memory_space<vmem>>, vector<1x128xf32>
    %17 = vector.broadcast %16 : vector<1x128xf32> to vector<80x128xf32>
    %18 = arith.addf %15, %17 : vector<80x128xf32>
    %cst = arith.constant 0.000000e+00 : f32
    %19 = vector.broadcast %cst : f32 to vector<80x128xf32>
    %20 = arith.maximumf %18, %19 : vector<80x128xf32>
    %c0_13 = arith.constant 0 : index
    %c0_14 = arith.constant 0 : index
    %c0_15 = arith.constant 0 : index
    %21 = vector.load %arg7[%c0_13, %c0_14, %c0_15] : memref<1x80x128xf32, #tpu.memory_space<vmem>>, vector<1x80x128xf32>
    %22 = vector.shape_cast %21 : vector<1x80x128xf32> to vector<80x128xf32>
    %23 = vector.shape_cast %20 : vector<80x128xf32> to vector<1x80x128xf32>
    tpu.vector_store %arg7[%c0_13, %c0_14, %c0_15], %23 {strides = array<i32>} : memref<1x80x128xf32, #tpu.memory_space<vmem>>, vector<1x80x128xf32>,
    return
  }
  func.func @transform_0(%arg0: i32) -> (i32, i32, i32) {
    %c0_i32 = arith.constant 0 : i32
    %c0_i32_0 = arith.constant 0 : i32
    %c0_i32_1 = arith.constant 0 : i32
    return %arg0, %c0_i32, %c0_i32_0 : i32, i32, i32
  }
  func.func @transform_1(%arg0: i32) -> (i32, i32) {
    %c0_i32 = arith.constant 0 : i32
    %c0_i32_0 = arith.constant 0 : i32
    %c0_i32_1 = arith.constant 0 : i32
    return %c0_i32, %c0_i32_0 : i32, i32
  }
  func.func @transform_2(%arg0: i32) -> (i32, i32) {
    %c0_i32 = arith.constant 0 : i32
    %c0_i32_0 = arith.constant 0 : i32
    %c0_i32_1 = arith.constant 0 : i32
    return %c0_i32, %c0_i32_0 : i32, i32
  }
  func.func @transform_3(%arg0: i32) -> (i32, i32, i32) {
    %c0_i32 = arith.constant 0 : i32
    %c0_i32_0 = arith.constant 0 : i32
    %c0_i32_1 = arith.constant 0 : i32
    return %arg0, %c0_i32, %c0_i32_0 : i32, i32, i32
  }
  func.func @transform_4(%arg0: i32) -> (i32, i32) {
    %c0_i32 = arith.constant 0 : i32
    %c0_i32_0 = arith.constant 0 : i32
    %c0_i32_1 = arith.constant 0 : i32
    return %c0_i32, %c0_i32_0 : i32, i32
  }
  func.func @transform_5(%arg0: i32) -> (i32, i32) {
    %c0_i32 = arith.constant 0 : i32
    %c0_i32_0 = arith.constant 0 : i32
    %c0_i32_1 = arith.constant 0 : i32
    return %c0_i32, %c0_i32_0 : i32, i32
  }
  func.func @transform_6(%arg0: i32) -> (i32, i32, i32) {
    %c0_i32 = arith.constant 0 : i32
    %c0_i32_0 = arith.constant 0 : i32
    %c0_i32_1 = arith.constant 0 : i32
    return %arg0, %c0_i32, %c0_i32_0 : i32, i32, i32
  }
}

</mosaic_0001>

<bundles_post_ra>
// kernel: basic_block_forward.5
= control target key start
LH: loop header
LB: loop body
LE: loop exit
PB: predicated region body
PF: predicated region fallthrough
CT: control target
= control target key end

     0   :  { %s439_s12 = smov 0   ;;  %s476_s0 = inlined_call_operand.vmem [shape: bf16[2,72,128], index: 0, kind: input, shape index: {}]   ;;  %s477_s1 = inlined_call_operand.vmem [shape: f32[1,128], index: 1, kind: input, shape index: {}]   ;;  %s478_s2 = inlined_call_operand.vmem [shape: f32[1,128], index: 2, kind: input, shape index: {}]   ;;  %s479_s3 = inlined_call_operand.vmem [shape: bf16[2,72,128], index: 3, kind: output, shape index: {}]  }
   0x1 LB: > { %s331_s13 = sadd.s32 4294967295, %s417_s12   ;;  %p335_p0 = scmp.ge.s32.totalorder %s417_s12, 1  ;;  %s417_s12 = sphi %s439_s12, %s13_s12  }
   0x2   : > { %p137_p1 = scmp.lt.s32.totalorder %s417_s12, 3 }
   0x4   : > { %p138_p2 = pnand %p335_p0, %p137_p1 }
   0x5   : > { %p161_p3 = scmp.lt.s32.totalorder (!%p138_p2), %s331_s13, 1  ;;  %v338_v0 = vld [vmem:[%s477_s1] ss:$0 sm:$0xff] (!%p138_p2) }
   0x6   : > { %141 = sbr.rel (%p138_p2) target bundleno = 37 (0x25), region = 32  ;;  %v339_v9 = vld [vmem:[%s478_s2] ss:$0 sm:$0xff] (!%p138_p2) }
   0xd   : > { %s481_s13 = smov (!%p161_p3, %s331_s13), 1 }
   0xe   : > { %s402_s14 = smul.u32 36, %s481_s13 }
  0x10   : > { %s455_s17 = scalar_lea.vmem %s476_s0, %s402_s14  ;;  %s170_s24 = scalar_lea.vmem %s479_s3, %s402_s14 }
  0x11   : > { %v361_v1 = vld [vmem:[%s455_s17] sm:$0xff]   ;;  %v396_v2 = vld [vmem:[%s455_s17 + $0x8] sm:$0xff]   ;;  %v397_v3 = vld [vmem:[%s455_s17 + $0x10] sm:$0xff]  }
  0x12   : > { %v362_v4 = vunpack.c.l.bf16 %v361_v1  ;;  %v363_v5 = vunpack.c.h.bf16 %v361_v1  ;;  %v366_v6 = vunpack.c.l.bf16 %v396_v2  ;;  %v367_v7 = vunpack.c.h.bf16 %v396_v2  ;;  %v398_v8 = vld [vmem:[%s455_s17 + $0x18] sm:$0xff]   ;;  %v179_v30 = vld [vmem:[%s455_s17 + $0x20] sm:$0xf] }
  0x13   : > { %v370_v10 = vunpack.c.l.bf16 %v397_v3  ;;  %v371_v11 = vunpack.c.h.bf16 %v397_v3  ;;  %v374_v12 = vunpack.c.l.bf16 %v398_v8  ;;  %v375_v13 = vunpack.c.h.bf16 %v398_v8 }
  0x14   : > { %v196_v14 = vmul.f32 %v362_v4, %v338_v0  ;;  %v197_v15 = vmul.f32 %v363_v5, %v338_v0  ;;  %v198_v16 = vmul.f32 %v366_v6, %v338_v0  ;;  %v199_v17 = vmul.f32 %v367_v7, %v338_v0 }
  0x15   : > { %v200_v18 = vmul.f32 %v370_v10, %v338_v0  ;;  %v201_v19 = vmul.f32 %v371_v11, %v338_v0  ;;  %v202_v20 = vmul.f32 %v374_v12, %v338_v0  ;;  %v203_v21 = vmul.f32 %v375_v13, %v338_v0 }
  0x16   : > { %v212_v22 = vadd.f32 %v339_v9, %v196_v14  ;;  %v213_v23 = vadd.f32 %v339_v9, %v197_v15  ;;  %v214_v24 = vadd.f32 %v339_v9, %v198_v16  ;;  %v215_v25 = vadd.f32 %v339_v9, %v199_v17 }
  0x17   : > { %v216_v26 = vadd.f32 %v339_v9, %v200_v18  ;;  %v217_v27 = vadd.f32 %v339_v9, %v201_v19  ;;  %v218_v28 = vadd.f32 %v339_v9, %v202_v20  ;;  %v219_v29 = vadd.f32 %v339_v9, %v203_v21 }
  0x18   : > { %v221_v31 = vmax.f32 %v212_v22, 0.0  ;;  %v222_v32 = vmax.f32 %v213_v23, 0.0  ;;  %v223_v33 = vmax.f32 %v214_v24, 0.0  ;;  %v224_v34 = vmax.f32 %v215_v25, 0.0 }
  0x19   : > { %v225_v35 = vmax.f32 %v216_v26, 0.0  ;;  %v226_v36 = vmax.f32 %v217_v27, 0.0  ;;  %v227_v37 = vmax.f32 %v218_v28, 0.0  ;;  %v228_v38 = vmax.f32 %v219_v29, 0.0 }
  0x1a   : > { %v379_v39 = vpack.c.bf16 %v222_v32, %v221_v31  ;;  %v384_v40 = vpack.c.bf16 %v224_v34, %v223_v33  ;;  %v188_v41 = vunpack.c.l.bf16 %v179_v30 }
  0x1b   : > { %v389_v42 = vpack.c.bf16 %v226_v36, %v225_v35  ;;  %v394_v43 = vpack.c.bf16 %v228_v38, %v227_v37 }
  0x1c   : > { %380 = vst [vmem:[%s170_s24] sm:$0xff] %v379_v39   ;;  %399 = vst [vmem:[%s170_s24 + $0x8] sm:$0xff] %v384_v40   ;;  %v204_v44 = vmul.f32 %v338_v0, %v188_v41 }
  0x1d   : > { %400 = vst [vmem:[%s170_s24 + $0x10] sm:$0xff] %v389_v42   ;;  %401 = vst [vmem:[%s170_s24 + $0x18] sm:$0xff] %v394_v43  }
  0x1e   : > { %v220_v45 = vadd.f32 %v339_v9, %v204_v44 }
  0x20   : > { %v229_v46 = vmax.f32 %v220_v45, 0.0 }
  0x22   : > { %v359_v47 = vpack.c.bf16 %v229_v46, %v229_v46 }
  0x24   : > { %275 = vst [vmem:[%s170_s24 + $0x20] sm:$0xf] %v359_v47 }
  0x25 PF: > { %s13_s12 = sadd.s32 1, %s417_s12  }
  0x26   : > { %p10_p4 = scmp.ge.s32.totalorder %s13_s12, 4  }
  0x28   :  { %12 = sbr.rel (!%p10_p4) target bundleno = 1 (0x1), region = 62 }

// kernel: basic_block_forward.4
= control target key start
LH: loop header
LB: loop body
LE: loop exit
PB: predicated region body
PF: predicated region fallthrough
CT: control target
= control target key end

     0   :  { %s3386_s18 = smov 0   ;;  %s3971_s0 = inlined_call_operand.vmem [shape: bf16[2,4,113,128], index: 0, kind: input, shape index: {}]   ;;  %s3972_s1 = inlined_call_operand.vmem [shape: bf16[9,128,128], index: 1, kind: input, shape index: {}]   ;;  %s3973_s2 = inlined_call_operand.vmem [shape: f32[72,1], index: 2, kind: input, shape index: {}]   ;;  %s3974_s3 = inlined_call_operand.vmem [shape: bf16[2,72,128], index: 3, kind: output, shape index: {0}]   ;;  %s3975_s4 = inlined_call_operand.vmem [shape: f32[2,1,128], index: 4, kind: output, shape index: {1}]   ;;  %s3976_s5 = inlined_call_operand.vmem [shape: f32[2,1,128], index: 5, kind: output, shape index: {2}]  }
   0x1 LB: > { %s2278_s19 = sadd.s32 4294967295, %s3351_s18   ;;  %p2282_p0 = scmp.ge.s32.totalorder %s3351_s18, 1  ;;  %s3351_s18 = sphi %s3386_s18, %s16_s18  }
   0x2   : > { %p192_p1 = scmp.lt.s32.totalorder %s3351_s18, 3 }
   0x4   : > { %p193_p2 = pnand %p2282_p0, %p192_p1 }
   0x5   : > { %v3232_v0 = vld [vmem:[%s3972_s1 + $0x40] sm:$0xff] (!%p193_p2)   ;;  %v3353_v1 = vmov (!%p193_p2), 0.0   ;;  %v3234_v3 = vld [vmem:[%s3972_s1 + $0x48] sm:$0xff] (!%p193_p2)   ;;  %vm3354_vm0 = vmmov (!%p193_p2), 0   ;;  %p226_p3 = scmp.lt.s32.totalorder (!%p193_p2), %s2278_s19, 1  ;;  %v3236_v5 = vld [vmem:[%s3972_s1 + $0x50] sm:$0xff] (!%p193_p2)  }
   0x6   : > { %196 = sbr.rel (%p193_p2) target bundleno = 456 (0x1c8), region = 32  ;;  %2733 = vmatprep.subr.bf16.mxu1 (!%p193_p2), %v3353_v1  ;;  %2877 = vmatprep.subr.bf16.mxu0 (!%p193_p2), %v3353_v1  ;;  %v3233_v2 = vld [vmem:[%s3972_s1 + $0x100] sm:$0xff] (!%p193_p2)   ;;  %v3235_v4 = vld [vmem:[%s3972_s1 + $0x108] sm:$0xff] (!%p193_p2)   ;;  %v3237_v6 = vld [vmem:[%s3972_s1 + $0x110] sm:$0xff] (!%p193_p2)   ;;  %vm643_vm1 = vsmask.f32 (!%p193_p2), 7424 }
   0x7   : > { %2734 = vmatpush3.bf16.msra.mxu1 (!%p193_p2), %v3232_v0  ;;  %2749 = vmatprep.mubr.msk.bf16.mxu1 (!%p193_p2), %vm3354_vm0, %v3353_v1  ;;  %v3238_v7 = vld [vmem:[%s3972_s1 + $0x58] sm:$0xff] (!%p193_p2)   ;;  %v3240_v9 = vld [vmem:[%s3972_s1 + $0x60] sm:$0xff] (!%p193_p2)   ;;  %v3242_v11 = vld [vmem:[%s3972_s1 + $0x68] sm:$0xff] (!%p193_p2)   ;;  %vm1881_vm2 = vcmask (!%p193_p2), 1046528  }
   0x8   : > { %2878 = vmatpush3.bf16.msra.mxu0 (!%p193_p2), %v3233_v2  ;;  %2735 = vmatprep.subr.bf16.mxu1 (!%p193_p2), %v3353_v1  ;;  %v3239_v8 = vld [vmem:[%s3972_s1 + $0x118] sm:$0xff] (!%p193_p2)   ;;  %v3241_v10 = vld [vmem:[%s3972_s1 + $0x120] sm:$0xff] (!%p193_p2)   ;;  %v3243_v12 = vld [vmem:[%s3972_s1 + $0x128] sm:$0xff] (!%p193_p2)  }
   0x9   : > { %2879 = vmatprep.subr.bf16.mxu0 (!%p193_p2), %v3353_v1  ;;  %2893 = vmatprep.mubr.msk.bf16.mxu0 (!%p193_p2), %vm3354_vm0, %v3353_v1  ;;  %v3244_v13 = vld [vmem:[%s3972_s1 + $0x70] sm:$0xff] (!%p193_p2)   ;;  %v3246_v15 = vld [vmem:[%s3972_s1 + $0x78] sm:$0xff] (!%p193_p2)   ;;  %v3250_v19 = vld [vmem:[%s3972_s1 + $0x140] sm:$0xff] (!%p193_p2)  }
   0xa   : > { %v3245_v14 = vld [vmem:[%s3972_s1 + $0x130] sm:$0xff] (!%p193_p2)   ;;  %v3247_v16 = vld [vmem:[%s3972_s1 + $0x138] sm:$0xff] (!%p193_p2)   ;;  %v3254_v20 = vld [vmem:[%s3972_s1] sm:$0xff] (!%p193_p2)  }
   0xb   : > { %2736 = vmatpush3.bf16.msra.mxu1 (!%p193_p2), %v3234_v3  ;;  %v3251_v21 = vld [vmem:[%s3972_s1 + $0x148] sm:$0xff] (!%p193_p2)   ;;  %v3255_v25 = vld [vmem:[%s3972_s1 + $0x150] sm:$0xff] (!%p193_p2)   ;;  %v3259_v27 = vld [vmem:[%s3972_s1 + $0x158] sm:$0xff] (!%p193_p2)  }
   0xc   : > { %2880 = vmatpush3.bf16.msra.mxu0 (!%p193_p2), %v3235_v4  ;;  %2737 = vmatprep.subr.bf16.mxu1 (!%p193_p2), %v3353_v1  ;;  %v3256_v22 = vld [vmem:[%s3972_s1 + $0x8] sm:$0xff] (!%p193_p2)   ;;  %v3260_v26 = vld [vmem:[%s3972_s1 + $0x10] sm:$0xff] (!%p193_p2)   ;;  %v3261_v29 = vld [vmem:[%s3972_s1 + $0x18] sm:$0xff] (!%p193_p2)  }
   0xd   : > { %s3978_s19 = smov (!%p226_p3, %s2278_s19), 1  ;;  %2881 = vmatprep.subr.bf16.mxu0 %v3353_v1  ;;  %v3262_v31 = vld [vmem:[%s3972_s1 + $0x160] sm:$0xff]   ;;  %v3266_v34 = vld [vmem:[%s3972_s1 + $0x168] sm:$0xff]   ;;  %v3268_v37 = vld [vmem:[%s3972_s1 + $0x170] sm:$0xff]  }
   0xe   : > { %s3217_s11 = smul.u32 240, %s3978_s19  ;;  %v3265_v32 = vld [vmem:[%s3972_s1 + $0x20] sm:$0xff]   ;;  %v3267_v35 = vld [vmem:[%s3972_s1 + $0x28] sm:$0xff]   ;;  %v3271_v39 = vld [vmem:[%s3972_s1 + $0x30] sm:$0xff]   ;;  %s241_s14 = scalar_lea.vmem %s3976_s5, %s3978_s19 }
   0xf   : > { %2738 = vmatpush3.bf16.msra.mxu1 %v3236_v5  ;;  %v3272_v42 = vld [vmem:[%s3972_s1 + $0x178] sm:$0xff]   ;;  %v3277_v53 = vld [vmem:[%s3972_s1 + $0x180] sm:$0xff]   ;;  %v3278_v59 = vld [vmem:[%s3972_s1 + $0x188] sm:$0xff]  }
  0x10   : > { %2882 = vmatpush3.bf16.msra.mxu0 %v3237_v6  ;;  %2739 = vmatprep.subr.bf16.mxu1 %v3353_v1  ;;  %s3443_s20 = scalar_lea.vmem %s3971_s0, %s3217_s11  ;;  %v3273_v44 = vld [vmem:[%s3972_s1 + $0x38] sm:$0xff]   ;;  %v3281_v57 = vld [vmem:[%s3972_s1 + $0x80] sm:$0xff]   ;;  %v3283_v62 = vld [vmem:[%s3972_s1 + $0x88] sm:$0xff]   ;;  %s238_s11 = scalar_lea.vmem %s3975_s4, %s3978_s19 }
  0x11   : > { %2883 = vmatprep.subr.bf16.mxu0 %v3353_v1  ;;  %v3248_v17 = vld [vmem:[%s3443_s20 + $0x3c] sm:$0xff]   ;;  %v3249_v18 = vld [vmem:[%s3443_s20 + $0xb4] sm:$0xff]   ;;  %v3252_v23 = vld [vmem:[%s3443_s20 + $0x44] sm:$0xff]  }
  0x12   : > { %v3253_v24 = vld [vmem:[%s3443_s20 + $0xbc] sm:$0xff]   ;;  %v3257_v28 = vld [vmem:[%s3443_s20 + $0x4c] sm:$0xff]   ;;  %v3258_v30 = vld [vmem:[%s3443_s20 + $0xc4] sm:$0xff]  }
  0x13   : > { %2740 = vmatpush3.bf16.msra.mxu1 %v3238_v7  ;;  %v3263_v33 = vld [vmem:[%s3443_s20 + $0x54] sm:$0xff]   ;;  %v3264_v36 = vld [vmem:[%s3443_s20 + $0xcc] sm:$0xff]   ;;  %v3276_v40 = vld [vmem:[%s3443_s20 + $0x80] sm:$0xff]  }
  0x14   : > { %2884 = vmatpush3.bf16.msra.mxu0 %v3239_v8  ;;  %2741 = vmatprep.subr.bf16.mxu1 %v3353_v1  ;;  %v3275_v38 = vld [vmem:[%s3443_s20 + $0x78] sm:$0xff]   ;;  %v3270_v45 = vld [vmem:[%s3443_s20 + $0xd4] ss:$0 sps:$4 sm:$0xff]   ;;  %v1245_v46 = vshll.u32 %v3276_v40, 16  ;;  %v3280_v50 = vld [vmem:[%s3443_s20 + $0x88] sm:$0xff]   ;;  %v1249_v55 = vshrl.u32 %v3276_v40, 16 }
  0x15   : > { %2885 = vmatprep.subr.bf16.mxu0 %v3353_v1  ;;  %v3269_v41 = vld [vmem:[%s3443_s20 + $0x5c] ss:$0 sps:$4 sm:$0xff]   ;;  %v1240_v43 = vshll.u32 %v3275_v38, 16  ;;  %v1238_v47 = vshrl.u32 %v3275_v38, 16  ;;  %v3274_v52 = vld [vmem:[%s3443_s20] sm:$0xff]   ;;  %v1253_v56 = vshll.u32 %v3280_v50, 16 }
  0x16   : > { %v1247_v49 = vrot.slane %v1245_v46, 1  ;;  %v3285_v58 = vld [vmem:[%s3443_s20 + $0x90] sm:$0xff]   ;;  %v3279_v63 = vld [vmem:[%s3443_s20 + $0x8] sm:$0xff]   ;;  %v1257_v4 = vshrl.u32 %v3280_v50, 16  ;;  %v3286_v7 = vld [vmem:[%s3972_s1 + $0x198] sm:$0xff]   ;;  %v3355_v46 = vmov 0  }
  0x17   : > { %2742 = vmatpush3.bf16.msra.mxu1 %v3240_v9  ;;  %v1242_v48 = vrot.slane %v1240_v43, 1  ;;  %v1255_v61 = vrot.slane %v1253_v56, 1  ;;  %v1261_v0 = vshll.u32 %v3285_v58, 16  ;;  %v3282_v3 = vld [vmem:[%s3972_s1 + $0x190] sm:$0xff]   ;;  %v3608_v9 = vld [vmem:[%s3443_s20 + $0x98] sm:$0x1f]   ;;  %3230 = vset.pattern.permute.xlu0 %v3355_v46 }
  0x18   : > { %2886 = vmatpush3.bf16.msra.mxu0 %v3241_v10  ;;  %2743 = vmatprep.subr.bf16.mxu1 %v3353_v1  ;;  %v1251_v60 = vor.u32 %v1249_v55, %v1247_v49  ;;  %v3287_v5 = vld [vmem:[%s3972_s1 + $0x90] sm:$0xff]   ;;  %v3288_v10 = vld [vmem:[%s3972_s1 + $0x98] sm:$0xff]   ;;  %v3296_v40 = vld [vmem:[%s3443_s20 + $0x20] ss:$0 sps:$4 sm:$0xff]  }
  0x19   : > { %2887 = vmatprep.subr.bf16.mxu0 %v3353_v1  ;;  %v1243_v51 = vor.u32 %v1242_v48, %v1238_v47  ;;  %v1263_v6 = vrot.slane %v1261_v0, 1  ;;  %v1259_v8 = vor.u32 %v1257_v4, %v1255_v61  ;;  %v3299_v43 = vld [vmem:[%s3972_s1 + $0xb8] sm:$0xff]   ;;  %3231 = vset.pattern.permute.xlu1 %v3355_v46  ;;  %v3308_v0 = vld [vmem:[%s3972_s1 + $0xc0] sm:$0xff]  }
  0x1a   : > { %v1256_v2 = vsel %vm643_vm1, %v1251_v60, %v1255_v61  ;;  %v3304_v61 = vld [vmem:[%s3972_s1 + $0x1c0] sm:$0xff]  }
  0x1b   : > { %2744 = vmatpush3.bf16.msra.mxu1 %v3242_v11  ;;  %v1248_v54 = vsel %vm643_vm1, %v1243_v51, %v1247_v49  ;;  %v3284_v11 = vld [vmem:[%s3443_s20 + $0x10] sm:$0xff]  }
  0x1c   : > { %2888 = vmatpush3.bf16.msra.mxu0 %v3243_v12  ;;  %2745 = vmatprep.subr.bf16.mxu1 %v3353_v1  ;;  %v1265_v12 = vshrl.u32 %v3285_v58, 16 }
  0x1d   : > { %2889 = vmatprep.subr.bf16.mxu0 %v3353_v1 }
  0x1f   : > { %2746 = vmatpush3.bf16.msra.mxu1 %v3244_v13  ;;  %v1264_v13 = vsel %vm643_vm1, %v1259_v8, %v1263_v6  ;;  %v3305_v8 = vld [vmem:[%s3972_s1 + $0x1c8] sm:$0xff]  }
  0x20   : > { %2890 = vmatpush3.bf16.msra.mxu0 %v3245_v14  ;;  %2747 = vmatprep.subr.bf16.mxu1 %v3353_v1  ;;  %v3289_v14 = vld [vmem:[%s3972_s1 + $0x1a0] sm:$0xff]  }
  0x21   : > { %2891 = vmatprep.subr.bf16.mxu0 %v3353_v1 }
  0x23   : > { %2748 = vmatpush3.bf16.msra.mxu1 %v3246_v15  ;;  %v1269_v15 = vshll.u32 %v3608_v9, 16 }
  0x24   : > { %2892 = vmatpush3.bf16.msra.mxu0 %v3247_v16  ;;  %2769 = vmatprep.subr.bf16.mxu1 %v3353_v1  ;;  %v3292_v16 = vld [vmem:[%s3972_s1 + $0xa0] sm:$0xff]  }
  0x25   : > { %2913 = vmatprep.subr.bf16.mxu0 %v3353_v1 }
  0x26   : > { %2750 = vmatmul.mubr.bf16.vlgmr.msra.gmra.mrb[0].mxu1 %v3248_v17  ;;  %v3293_v17 = vld [vmem:[%s3972_s1 + $0x1a8] sm:$0xff]  }
  0x27   : > { %2894 = vmatmul.mubr.bf16.vlgmr.msra.gmra.mrb[0].mxu0 %v3249_v18  ;;  %2753 = vmatprep.mubr.msk.bf16.mxu1 %vm3354_vm0, %v3353_v1  ;;  %v3294_v18 = vld [vmem:[%s3972_s1 + $0xa8] sm:$0xff]  }
  0x28   : > { %2914 = vmatpush3.bf16.msra.mxu0 %v3250_v19  ;;  %2897 = vmatprep.mubr.msk.bf16.mxu0 %vm3354_vm0, %v3353_v1  ;;  %v1410_v19 = vld [vmem:[%s3443_s20 + $0x4] sm:$0xf] }
  0x29   : > { %2915 = vmatprep.subr.bf16.mxu0 %v3353_v1  ;;  %2770 = vmatpush3.bf16.msra.mxu1 %v3254_v20  ;;  %v3290_v20 = vld [vmem:[%s3443_s20 + $0x18] sm:$0xff]  }
  0x2a   : > { %2771 = vmatprep.subr.bf16.mxu1 %v3353_v1 }
  0x2c   : > { %2916 = vmatpush3.bf16.msra.mxu0 %v3251_v21  ;;  %v1267_v21 = vor.u32 %v1265_v12, %v1263_v6  ;;  %v3310_v12 = vld [vmem:[%s3972_s1 + $0xc8] sm:$0xff]  }
  0x2d   : > { %2917 = vmatprep.subr.bf16.mxu0 %v3353_v1  ;;  %2772 = vmatpush3.bf16.msra.mxu1 %v3256_v22  ;;  %v1271_v22 = vrot.slane %v1269_v15, 1 }
  0x2e   : > { %2754 = vmatmul.mubr.bf16.gmra.mrb[4].mxu1 %v3252_v23  ;;  %2773 = vmatprep.subr.bf16.mxu1 %v3353_v1  ;;  %v3639_v23 = vld [vmem:[%s3443_s20 + $0x8] sm:$0xf] }
  0x2f   : > { %2898 = vmatmul.mubr.bf16.gmra.mrb[4].mxu0 %v3253_v24  ;;  %2757 = vmatprep.mubr.msk.bf16.mxu1 %vm3354_vm0, %v3353_v1  ;;  %v3642_v24 = vld [vmem:[%s3443_s20 + $0xc] sm:$0xff]  }
  0x30   : > { %2918 = vmatpush3.bf16.msra.mxu0 %v3255_v25  ;;  %2901 = vmatprep.mubr.msk.bf16.mxu0 %vm3354_vm0, %v3353_v1  ;;  %v3646_v25 = vld [vmem:[%s3443_s20 + $0x14] sm:$0xff]   ;;  %v1470_v51 = vshll.u32 %v3642_v24, 16 }
  0x31   : > { %2919 = vmatprep.subr.bf16.mxu0 %v3353_v1  ;;  %2774 = vmatpush3.bf16.msra.mxu1 %v3260_v26  ;;  %v3295_v26 = vld [vmem:[%s3972_s1 + $0x1b0] sm:$0xff]  }
  0x32   : > { %2775 = vmatprep.subr.bf16.mxu1 %v3353_v1  ;;  %v1472_v56 = vrot.slane %v1470_v51, 1  ;;  %v2076_v51 = vld [vmem:[%s3973_s2 + $0x28] sm:$0xff] }
  0x34   : > { %2920 = vmatpush3.bf16.msra.mxu0 %v3259_v27  ;;  %v3653_v27 = vld [vmem:[%s3443_s20 + $0x1c] sm:$0xff]  }
  0x35   : > { %2921 = vmatprep.subr.bf16.mxu0 %v3353_v1  ;;  %2776 = vmatpush3.bf16.msra.mxu1 %v3261_v29  ;;  %v3300_v29 = vld [vmem:[%s3443_s20] sm:$0xff]  }
  0x36   : > { %2758 = vmatmul.mubr.bf16.gmra.mrb[8].mxu1 %v3257_v28  ;;  %2777 = vmatprep.subr.bf16.mxu1 %v3353_v1  ;;  %v3297_v28 = vld [vmem:[%s3972_s1 + $0xb0] sm:$0xff]  }
  0x37   : > { %2902 = vmatmul.mubr.bf16.gmra.mrb[8].mxu0 %v3258_v30  ;;  %2761 = vmatprep.mubr.msk.bf16.mxu1 %vm3354_vm0, %v3353_v1  ;;  %v1883_v30 = vrot.slane %v3642_v24, 1 }
  0x38   : > { %2922 = vmatpush3.bf16.msra.mxu0 %v3262_v31  ;;  %2905 = vmatprep.mubr.msk.bf16.mxu0 %vm3354_vm0, %v3353_v1  ;;  %v1272_v31 = vsel %vm643_vm1, %v1267_v21, %v1271_v22  ;;  %v1486_v21 = vshll.u32 %v3653_v27, 16 }
  0x39   : > { %2778 = vmatpush3.bf16.msra.mxu1 %v3265_v32  ;;  %2923 = vmatprep.subr.bf16.mxu0 %v3353_v1  ;;  %v2496_v32 = vcombine.low %v1410_v19, %v3639_v23  ;;  %v3309_v19 = vld [vmem:[%s3972_s1 + $0x1d0] sm:$0xff]  }
  0x3a   : > { %2779 = vmatprep.subr.bf16.mxu1 %v3353_v1 }
  0x3b   : > { %v1463_v49 = vshrl.u32 %v2496_v32, 16 }
  0x3c   : > { %2924 = vmatpush3.bf16.msra.mxu0 %v3266_v34  ;;  %v1885_v34 = vrot.slane %v3646_v25, 1 }
  0x3d   : > { %2780 = vmatpush3.bf16.msra.mxu1 %v3267_v35  ;;  %2925 = vmatprep.subr.bf16.mxu0 %v3353_v1  ;;  %v1273_v35 = vshrl.u32 %v3608_v9, 16 }
  0x3e   : > { %2762 = vmatmul.mubr.bf16.gmra.mrb[12].mxu1 %v3263_v33  ;;  %2781 = vmatprep.subr.bf16.mxu1 %v3353_v1  ;;  %v1887_v33 = vrot.slane %v3653_v27, 1 }
  0x3f   : > { %2906 = vmatmul.mubr.bf16.gmra.mrb[12].mxu0 %v3264_v36  ;;  %2765 = vmatprep.mubr.msk.bf16.mxu1 %vm3354_vm0, %v3353_v1  ;;  %v3301_v36 = vld [vmem:[%s3443_s20 + $0x8] sm:$0xff]   ;;  %v1275_v47 = vor.u32 %v1273_v35, %v1271_v22  ;;  %v3314_v22 = vld [vmem:[%s3972_s1 + $0xd0] sm:$0xff]  }
  0x40   : > { %2909 = vmatprep.mubr.msk.bf16.mxu0 %vm3354_vm0, %v3353_v1  ;;  %2926 = vmatpush3.bf16.msra.mxu0 %v3268_v37  ;;  %v3671_v37 = vsel %vm1881_vm2, %v1883_v30, %v1885_v34  ;;  %v3676_v38 = vsel %vm1881_vm2, %v1885_v34, %v1887_v33  ;;  %v3315_v34 = vld [vmem:[%s3972_s1 + $0xd8] sm:$0xff]  }
  0x41   : > { %2782 = vmatpush3.bf16.msra.mxu1 %v3271_v39  ;;  %2927 = vmatprep.subr.bf16.mxu0 %v3353_v1  ;;  %v647_v39 = vshll.u32 %v3300_v29, 16 }
  0x42   : > { %2783 = vmatprep.subr.bf16.mxu1 %v3353_v1 }
  0x43   : > { %v649_v48 = vrot.slane %v647_v39, 1 }
  0x44   : > { %2928 = vmatpush3.bf16.msra.mxu0 %v3272_v42  ;;  %v1465_v42 = vshll.u32 %v2496_v32, 16  ;;  %v2074_v32 = vld [vmem:[%s3973_s2 + $0x18] sm:$0xff] }
  0x45   : > { %2784 = vmatpush3.bf16.msra.mxu1 %v3273_v44  ;;  %2949 = vmatprep.subr.bf16.mxu0 %v3353_v1  ;;  %v645_v44 = vshrl.u32 %v3300_v29, 16  ;;  %v1488_v29 = vrot.slane %v1486_v21, 1  ;;  %v3335_v21 = vld [vmem:[%s3443_s20 + $0x58] sm:$0xff]  }
  0x46   : > { %2766 = vmatmul.mubr.bf16.gmra.mrb[16].mxu1 %v3269_v41  ;;  %2805 = vmatprep.subr.bf16.mxu1 %v3353_v1  ;;  %v3298_v41 = vld [vmem:[%s3972_s1 + $0x1b8] sm:$0xff]   ;;  %v1467_v50 = vrot.slane %v1465_v42, 1  ;;  %v1490_v42 = vshrl.u32 %v3653_v27, 16 }
  0x47   : > { %2910 = vmatmul.mubr.bf16.gmra.mrb[16].mxu0 %v3270_v45  ;;  %2785 = vmatprep.mubr.msk.bf16.mxu1 %vm3354_vm0, %v3353_v1  ;;  %v652_v45 = vshll.u32 %v3301_v36, 16 }
  0x48   : > { %2929 = vmatprep.mubr.msk.bf16.mxu0 %vm3354_vm0, %v3353_v1  ;;  %v1468_v55 = vor.u32 %v1467_v50, %v1463_v49  ;;  %v3320_v50 = vld [vmem:[%s3972_s1 + $0x1e8] sm:$0xff]  }
  0x4a   : > { %v1473_v60 = vsel %vm643_vm1, %v1468_v55, %v1472_v56  ;;  %v3322_v55 = vld [vmem:[%s3972_s1 + $0x1f0] sm:$0xff]  }
  0x4e   : > { %2786 = vmatmul.mubr.bf16.vlgmr.msra.gmra.mrb[0].mxu1 %v3274_v52  ;;  %v3306_v52 = vld [vmem:[%s3443_s20 + $0x10] sm:$0xff]  }
  0x4f   : > { %2930 = vmatmul.mubr.bf16.vlgmr.msra.gmra.mrb[0].mxu0 %v1248_v54  ;;  %2789 = vmatprep.mubr.msk.bf16.mxu1 %vm3354_vm0, %v3353_v1  ;;  %v654_v54 = vrot.slane %v652_v45, 1  ;;  %v660_v58 = vshll.u32 %v3306_v52, 16  ;;  %v664_v15 = vshrl.u32 %v3306_v52, 16  ;;  %v3321_v52 = vld [vmem:[%s3972_s1 + $0xe8] sm:$0xff]  }
  0x50   : > { %2950 = vmatpush3.bf16.msra.mxu0 %v3277_v53  ;;  %2933 = vmatprep.mubr.msk.bf16.mxu0 %vm3354_vm0, %v3353_v1  ;;  %v650_v53 = vor.u32 %v649_v48, %v645_v44  ;;  %v3319_v44 = vld [vmem:[%s3972_s1 + $0xe0] sm:$0xff]   ;;  %v1492_v48 = vor.u32 %v1490_v42, %v1488_v29 }
  0x51   : > { %2951 = vmatprep.subr.bf16.mxu0 %v3353_v1  ;;  %2806 = vmatpush3.bf16.msra.mxu1 %v3281_v57  ;;  %v656_v57 = vshrl.u32 %v3301_v36, 16  ;;  %v662_v4 = vrot.slane %v660_v58, 1 }
  0x52   : > { %2807 = vmatprep.subr.bf16.mxu1 %v3353_v1 }
  0x54   : > { %2952 = vmatpush3.bf16.msra.mxu0 %v3278_v59  ;;  %v655_v59 = vsel %vm643_vm1, %v650_v53, %v654_v54 }
  0x55   : > { %2953 = vmatprep.subr.bf16.mxu0 %v3353_v1  ;;  %2808 = vmatpush3.bf16.msra.mxu1 %v3283_v62  ;;  %v1474_v62 = vshrl.u32 %v3642_v24, 16 }
  0x56   : > { %2790 = vmatmul.mubr.bf16.gmra.mrb[4].mxu1 %v3279_v63  ;;  %2809 = vmatprep.subr.bf16.mxu1 %v3353_v1  ;;  %v1478_v63 = vshll.u32 %v3646_v25, 16 }
  0x57   : > { %2934 = vmatmul.mubr.bf16.gmra.mrb[4].mxu0 %v1256_v2  ;;  %2793 = vmatprep.mubr.msk.bf16.mxu1 %vm3354_vm0, %v3353_v1  ;;  %v1860_v2 = vld [vmem:[%s3443_s20 + $0x4] sm:$0xe]  ;;  %v1476_v9 = vor.u32 %v1474_v62, %v1472_v56  ;;  %v3328_v62 = vld [vmem:[%s3443_s20 + $0x48] sm:$0xff]  }
  0x58   : > { %2954 = vmatpush3.bf16.msra.mxu0 %v3282_v3  ;;  %2937 = vmatprep.mubr.msk.bf16.mxu0 %vm3354_vm0, %v3353_v1  ;;  %v658_v3 = vor.u32 %v656_v57, %v654_v54  ;;  %v2564_v6 = vcombine.low %v1860_v2, %v3639_v23  ;;  %v666_v23 = vor.u32 %v664_v15, %v662_v4  ;;  %v3327_v56 = vld [vmem:[%s3443_s20 + $0x40] sm:$0xff]   ;;  %v3323_v57 = vld [vmem:[%s3972_s1 + $0xf0] sm:$0xff]   ;;  %v3325_v2 = vld [vmem:[%s3972_s1 + $0xf8] sm:$0xff]   ;;  %v1699_v15 = vshrl.u32 %v3328_v62, 16 }
  0x59   : > { %2955 = vmatprep.subr.bf16.mxu0 %v3353_v1  ;;  %2810 = vmatpush3.bf16.msra.mxu1 %v3287_v5  ;;  %v3713_v5 = vld [vmem:[%s3443_s20 + $0x18] sm:$0xff]  }
  0x5a   : > { %2811 = vmatprep.subr.bf16.mxu1 %v3353_v1  ;;  %v672_v36 = vshrl.u32 %v3713_v5, 16 }
  0x5c   : > { %2956 = vmatpush3.bf16.msra.mxu0 %v3286_v7  ;;  %v2071_v7 = vld [vmem:[%s3973_s2] sm:$0xff] }
  0x5d   : > { %2957 = vmatprep.subr.bf16.mxu0 %v3353_v1  ;;  %2812 = vmatpush3.bf16.msra.mxu1 %v3288_v10  ;;  %v1480_v10 = vrot.slane %v1478_v63, 1  ;;  %v1690_v63 = vshll.u32 %v3327_v56, 16 }
  0x5e   : > { %2794 = vmatmul.mubr.bf16.gmra.mrb[8].mxu1 %v3284_v11  ;;  %2813 = vmatprep.subr.bf16.mxu1 %v3353_v1  ;;  %v2073_v11 = vld [vmem:[%s3973_s2 + $0x10] sm:$0xff] }
  0x5f   : > { %2938 = vmatmul.mubr.bf16.gmra.mrb[8].mxu0 %v1264_v13  ;;  %2797 = vmatprep.mubr.msk.bf16.mxu1 %vm3354_vm0, %v3353_v1  ;;  %v1882_v13 = vrot.slane %v2564_v6, 1  ;;  %v1692_v6 = vrot.slane %v1690_v63, 1 }
  0x60   : > { %2958 = vmatpush3.bf16.msra.mxu0 %v3289_v14  ;;  %2941 = vmatprep.mubr.msk.bf16.mxu0 %vm3354_vm0, %v3353_v1  ;;  %v663_v14 = vsel %vm643_vm1, %v658_v3, %v662_v4 }
  0x61   : > { %2814 = vmatpush3.bf16.msra.mxu1 %v3292_v16  ;;  %2959 = vmatprep.subr.bf16.mxu0 %v3353_v1  ;;  %v668_v16 = vshll.u32 %v3713_v5, 16  ;;  %v1688_v5 = vshrl.u32 %v3327_v56, 16 }
  0x62   : > { %2815 = vmatprep.subr.bf16.mxu1 %v3353_v1  ;;  %2082 = vperm.xlu0 %3230, %v2071_v7   ;;  %v1695_v7 = vshll.u32 %v3328_v62, 16 }
  0x63   : > { %2092 = vperm.xlu1 %3231, %v2073_v11   ;;  %v670_v24 = vrot.slane %v668_v16, 1  ;;  %v3332_v11 = vld [vmem:[%s3443_s20 + $0x50] sm:$0xff]  }
  0x64   : > { %2960 = vmatpush3.bf16.msra.mxu0 %v3293_v17  ;;  %v3737_v17 = vsel %vm1881_vm2, %v1882_v13, %v1883_v30  ;;  %v3313_v30 = vld [vmem:[%s3972_s1 + $0x1d8] sm:$0xff]   ;;  %v1703_v16 = vshll.u32 %v3332_v11, 16 }
  0x65   : > { %2816 = vmatpush3.bf16.msra.mxu1 %v3294_v18  ;;  %2961 = vmatprep.subr.bf16.mxu0 %v3353_v1  ;;  %v1481_v18 = vsel %vm643_vm1, %v1476_v9, %v1480_v10  ;;  %v671_v35 = vsel %vm643_vm1, %v666_v23, %v670_v24  ;;  %v674_v45 = vor.u32 %v672_v36, %v670_v24  ;;  %v3333_v24 = vld [vmem:[%s3972_s1 + $0x210] sm:$0xff]   ;;  %v3337_v36 = vld [vmem:[%s3972_s1 + $0x220] sm:$0xff]  }
  0x66   : > { %2798 = vmatmul.mubr.bf16.gmra.mrb[12].mxu1 %v3290_v20  ;;  %2817 = vmatprep.subr.bf16.mxu1 %v3353_v1  ;;  %v1482_v20 = vshrl.u32 %v3646_v25, 16  ;;  %v3753_v25 = vld [vmem:[%s3443_s20 + $0x20] sm:$0x1f]   ;;  %v1693_v9 = vor.u32 %v1692_v6, %v1688_v5 }
  0x67   : > { %2942 = vmatmul.mubr.bf16.gmra.mrb[12].mxu0 %v1272_v31  ;;  %2801 = vmatprep.mubr.msk.bf16.mxu1 %vm3354_vm0, %v3353_v1  ;;  %v3764_v31 = vld [vmem:[%s3443_s20 + $0x24] sm:$0x1f]   ;;  %v676_v39 = vshll.u32 %v3753_v25, 16  ;;  %v680_v58 = vshrl.u32 %v3753_v25, 16  ;;  %v1707_v25 = vshrl.u32 %v3332_v11, 16 }
  0x68   : > { %2945 = vmatprep.mubr.msk.bf16.mxu0 %vm3354_vm0, %v3353_v1  ;;  %2962 = vmatpush3.bf16.msra.mxu0 %v3295_v26  ;;  %v2072_v26 = vld [vmem:[%s3973_s2 + $0x8] sm:$0xff] }
  0x69   : > { %2818 = vmatpush3.bf16.msra.mxu1 %v3297_v28  ;;  %2963 = vmatprep.subr.bf16.mxu0 %v3353_v1  ;;  %v1484_v28 = vor.u32 %v1482_v20, %v1480_v10  ;;  %v678_v46 = vrot.slane %v676_v39, 1  ;;  %v1697_v10 = vrot.slane %v1695_v7, 1  ;;  %v1705_v20 = vrot.slane %v1703_v16, 1 }
  0x6a   : > { %2819 = vmatprep.subr.bf16.mxu1 %v3353_v1  ;;  %2087 = vperm.xlu0 %3230, %v2072_v26   ;;  %v1711_v26 = vshll.u32 %v3335_v21, 16  ;;  %v1715_v39 = vshrl.u32 %v3335_v21, 16 }
  0x6b   : > { %2097 = vperm.xlu1 %3231, %v2074_v32   ;;  %v679_v53 = vsel %vm643_vm1, %v674_v45, %v678_v46  ;;  %v682_v3 = vor.u32 %v680_v58, %v678_v46  ;;  %v1698_v13 = vsel %vm643_vm1, %v1693_v9, %v1697_v10  ;;  %v3339_v32 = vld [vmem:[%s3443_s20 + $0x60] sm:$0x1f]   ;;  %v3341_v46 = vld [vmem:[%s3972_s1 + $0x230] sm:$0xff]  }
  0x6c   : > { %2964 = vmatpush3.bf16.msra.mxu0 %v3298_v41  ;;  %v3316_v41 = vld [vmem:[%s3972_s1 + $0x1e0] sm:$0xff]  }
  0x6d   : > { %2820 = vmatpush3.bf16.msra.mxu1 %v3299_v43  ;;  %2985 = vmatprep.subr.bf16.mxu0 %v3353_v1  ;;  %v1494_v43 = vshll.u32 %v3764_v31, 16 }
  0x6e   : > { %2802 = vmatmul.mubr.bf16.gmra.mrb[16].mxu1 %v3296_v40  ;;  %2841 = vmatprep.subr.bf16.mxu1 %v3353_v1  ;;  %v1489_v40 = vsel %vm643_vm1, %v1484_v28, %v1488_v29  ;;  %v1709_v28 = vor.u32 %v1707_v25, %v1705_v20  ;;  %v1713_v29 = vrot.slane %v1711_v26, 1 }
  0x6f   : > { %2946 = vmatmul.mubr.bf16.gmra.mrb[16].mxu0 %v1275_v47  ;;  %2821 = vmatprep.mubr.msk.bf16.mxu1 %vm3354_vm0, %v3353_v1  ;;  %v2075_v47 = vld [vmem:[%s3973_s2 + $0x20] sm:$0xff]  ;;  %v1496_v49 = vrot.slane %v1494_v43, 1  ;;  %v3340_v43 = vld [vmem:[%s3972_s1 + $0x228] sm:$0xff]  }
  0x70   : > { %2965 = vmatprep.mubr.msk.bf16.mxu0 %vm3354_vm0, %v3353_v1  ;;  %2102 = vperm.xlu0 %3230, %v2075_v47   ;;  %v1723_v47 = vshrl.u32 %v3339_v32, 16 }
  0x71   : > { %2107 = vperm.xlu1 %3231, %v2076_v51   ;;  %v1497_v54 = vsel %vm643_vm1, %v1492_v48, %v1496_v49  ;;  %v3343_v48 = vld [vmem:[%s3972_s1 + $0x238] sm:$0xff]   ;;  %v1889_v51 = vrot.slane %v3764_v31, 1 }
  0x76   : > { %2822 = vmatmul.mubr.bf16.vlgmr.msra.gmra.mrb[0].mxu1 %v655_v59  ;;  %v1498_v59 = vshrl.u32 %v3764_v31, 16 }
  0x77   : > { %2966 = vmatmul.mubr.bf16.vlgmr.msra.gmra.mrb[0].mxu0 %v1473_v60  ;;  %2825 = vmatprep.mubr.msk.bf16.mxu1 %vm3354_vm0, %v3353_v1  ;;  %v2077_v60 = vld [vmem:[%s3973_s2 + $0x30] sm:$0xff] }
  0x78   : > { %2986 = vmatpush3.bf16.msra.mxu0 %v3304_v61  ;;  %2969 = vmatprep.mubr.msk.bf16.mxu0 %vm3354_vm0, %v3353_v1  ;;  %v3324_v61 = vld [vmem:[%s3972_s1 + $0x1f8] sm:$0xff]   ;;  %v1500_v4 = vor.u32 %v1498_v59, %v1496_v49 }
  0x79   : > { %2987 = vmatprep.subr.bf16.mxu0 %v3353_v1  ;;  %2842 = vmatpush3.bf16.msra.mxu1 %v3308_v0  ;;  %v2078_v0 = vld [vmem:[%s3973_s2 + $0x38] sm:$0xff] }
  0x7a   : > { %2843 = vmatprep.subr.bf16.mxu1 %v3353_v1  ;;  %2112 = vperm.xlu0 %3230, %v2077_v60   ;;  %v3342_v49 = vld [vmem:[%s3443_s20 + $0x98] ss:$0 sps:$4 sm:$0xff]  }
  0x7b   : > { %2117 = vperm.xlu1 %3231, %v2078_v0  }
  0x7c   : > { %2988 = vmatpush3.bf16.msra.mxu0 %v3305_v8  ;;  %v2079_v8 = vld [vmem:[%s3973_s2 + $0x40] sm:$0xff] }
  0x7d   : > { %2989 = vmatprep.subr.bf16.mxu0 %v3353_v1  ;;  %2844 = vmatpush3.bf16.msra.mxu1 %v3310_v12  ;;  %v3326_v12 = vld [vmem:[%s3443_s20 + $0x78] sm:$0xff]  }
  0x7e   : > { %2826 = vmatmul.mubr.bf16.gmra.mrb[4].mxu1 %v663_v14  ;;  %2845 = vmatprep.subr.bf16.mxu1 %v3353_v1  ;;  %v3329_v14 = vld [vmem:[%s3972_s1 + $0x200] sm:$0xff]  }
  0x7f   : > { %2970 = vmatmul.mubr.bf16.gmra.mrb[4].mxu0 %v1481_v18  ;;  %2829 = vmatprep.mubr.msk.bf16.mxu1 %vm3354_vm0, %v3353_v1  ;;  %v3330_v18 = vld [vmem:[%s3972_s1 + $0x208] sm:$0xff]  }
  0x80   : > { %2990 = vmatpush3.bf16.msra.mxu0 %v3309_v19  ;;  %2973 = vmatprep.mubr.msk.bf16.mxu0 %vm3354_vm0, %v3353_v1  ;;  %v1701_v19 = vor.u32 %v1699_v15, %v1697_v10 }
  0x81   : > { %2991 = vmatprep.subr.bf16.mxu0 %v3353_v1  ;;  %2846 = vmatpush3.bf16.msra.mxu1 %v3314_v22  ;;  %v3331_v22 = vld [vmem:[%s3443_s20 + $0x80] sm:$0xff]  }
  0x82   : > { %2847 = vmatprep.subr.bf16.mxu1 %v3353_v1  ;;  %2122 = vperm.xlu0 %3230, %v2079_v8   ;;  %v1706_v23 = vsel %vm643_vm1, %v1701_v19, %v1705_v20 }
  0x84   : > { %2992 = vmatpush3.bf16.msra.mxu0 %v3313_v30  ;;  %v3336_v30 = vld [vmem:[%s3972_s1 + $0x218] sm:$0xff]  }
  0x85   : > { %2993 = vmatprep.subr.bf16.mxu0 %v3353_v1  ;;  %2848 = vmatpush3.bf16.msra.mxu1 %v3315_v34  ;;  %v3334_v34 = vld [vmem:[%s3443_s20 + $0x88] sm:$0xff]  }
  0x86   : > { %2830 = vmatmul.mubr.bf16.gmra.mrb[8].mxu1 %v671_v35  ;;  %2849 = vmatprep.subr.bf16.mxu1 %v3353_v1  ;;  %v1714_v35 = vsel %vm643_vm1, %v1709_v28, %v1713_v29 }
  0x87   : > { %2974 = vmatmul.mubr.bf16.gmra.mrb[8].mxu0 %v1489_v40  ;;  %2833 = vmatprep.mubr.msk.bf16.mxu1 %vm3354_vm0, %v3353_v1  ;;  %v1719_v40 = vshll.u32 %v3339_v32, 16 }
  0x88   : > { %2994 = vmatpush3.bf16.msra.mxu0 %v3316_v41  ;;  %2977 = vmatprep.mubr.msk.bf16.mxu0 %vm3354_vm0, %v3353_v1  ;;  %v1717_v41 = vor.u32 %v1715_v39, %v1713_v29 }
  0x89   : > { %2850 = vmatpush3.bf16.msra.mxu1 %v3319_v44  ;;  %2995 = vmatprep.subr.bf16.mxu0 %v3353_v1  ;;  %v1721_v42 = vrot.slane %v1719_v40, 1  ;;  %v3338_v44 = vld [vmem:[%s3443_s20 + $0x90] sm:$0xff]   ;;  %s3218_s20 = smul.u32 36, %s3978_s19 }
  0x8a   : > { %2851 = vmatprep.subr.bf16.mxu1 %v3353_v1 }
  0x8b   : > { %v1722_v45 = vsel %vm643_vm1, %v1717_v41, %v1721_v42  ;;  %s3944_s8 = scalar_lea.vmem %s3974_s3, %s3218_s20 }
  0x8c   : > { %2996 = vmatpush3.bf16.msra.mxu0 %v3320_v50  ;;  %v1725_v50 = vor.u32 %v1723_v47, %v1721_v42 }
  0x8d   : > { %2852 = vmatpush3.bf16.msra.mxu1 %v3321_v52  ;;  %2997 = vmatprep.subr.bf16.mxu0 %v3353_v1  ;;  %v1890_v52 = vsel %vm1881_vm2, %v1887_v33, %v1889_v51 }
  0x8e   : > { %2834 = vmatmul.mubr.bf16.gmra.mrb[12].mxu1 %v679_v53  ;;  %2853 = vmatprep.subr.bf16.mxu1 %v3353_v1 }
  0x8f   : > { %2978 = vmatmul.mubr.bf16.gmra.mrb[12].mxu0 %v1497_v54  ;;  %2837 = vmatprep.mubr.msk.bf16.mxu1 %vm3354_vm0, %v3353_v1 }
  0x90   : > { %2981 = vmatprep.mubr.msk.bf16.mxu0 %vm3354_vm0, %v3353_v1  ;;  %2998 = vmatpush3.bf16.msra.mxu0 %v3322_v55 }
  0x91   : > { %2854 = vmatpush3.bf16.msra.mxu1 %v3323_v57  ;;  %2999 = vmatprep.subr.bf16.mxu0 %v3353_v1 }
  0x92   : > { %2855 = vmatprep.subr.bf16.mxu1 %v3353_v1 }
  0x94   : > { %3000 = vmatpush3.bf16.msra.mxu0 %v3324_v61 }
  0x95   : > { %2856 = vmatpush3.bf16.msra.mxu1 %v3325_v2  ;;  %3021 = vmatprep.subr.bf16.mxu0 %v3353_v1 }
  0x96   : > { %2838 = vmatmul.mubr.bf16.gmra.mrb[16].mxu1 %v682_v3  ;;  %3057 = vmatprep.subr.bf16.mxu1 %v3353_v1 }
  0x97   : > { %2982 = vmatmul.mubr.bf16.gmra.mrb[16].mxu0 %v1500_v4  ;;  %2857 = vmatprep.mubr.msk.bf16.mxu1 %vm3354_vm0, %v3353_v1 }
  0x98   : > { %3001 = vmatprep.mubr.msk.bf16.mxu0 %vm3354_vm0, %v3353_v1 }
  0x9e   : > { %2858 = vmatmul.mubr.bf16.vlgmr.msra.gmra.mrb[0].mxu1 %v3326_v12 }
  0x9f   : > { %3002 = vmatmul.mubr.bf16.vlgmr.msra.gmra.mrb[0].mxu0 %v1698_v13  ;;  %2861 = vmatprep.mubr.msk.bf16.mxu1 %vm3354_vm0, %v3353_v1 }
  0xa0   : > { %3022 = vmatpush3.bf16.msra.mxu0 %v3329_v14  ;;  %3005 = vmatprep.mubr.msk.bf16.mxu0 %vm3354_vm0, %v3353_v1 }
  0xa1   : > { %3023 = vmatprep.subr.bf16.mxu0 %v3353_v1  ;;  %3065 = vmatpush3.bf16.msra.mxu1 %v3329_v14 }
  0xa2   : > { %3058 = vmatprep.subr.bf16.mxu1 %v3353_v1 }
  0xa4   : > { %3024 = vmatpush3.bf16.msra.mxu0 %v3330_v18 }
  0xa5   : > { %3025 = vmatprep.subr.bf16.mxu0 %v3353_v1  ;;  %3066 = vmatpush3.bf16.msra.mxu1 %v3330_v18 }
  0xa6   : > { %2862 = vmatmul.mubr.bf16.gmra.mrb[4].mxu1 %v3331_v22  ;;  %3059 = vmatprep.subr.bf16.mxu1 %v3353_v1 }
  0xa7   : > { %3006 = vmatmul.mubr.bf16.gmra.mrb[4].mxu0 %v1706_v23  ;;  %2865 = vmatprep.mubr.msk.bf16.mxu1 %vm3354_vm0, %v3353_v1 }
  0xa8   : > { %3026 = vmatpush3.bf16.msra.mxu0 %v3333_v24  ;;  %3009 = vmatprep.mubr.msk.bf16.mxu0 %vm3354_vm0, %v3353_v1 }
  0xa9   : > { %3027 = vmatprep.subr.bf16.mxu0 %v3353_v1  ;;  %3067 = vmatpush3.bf16.msra.mxu1 %v3333_v24 }
  0xaa   : > { %3060 = vmatprep.subr.bf16.mxu1 %v3353_v1 }
  0xac   : > { %3028 = vmatpush3.bf16.msra.mxu0 %v3336_v30 }
  0xad   : > { %3029 = vmatprep.subr.bf16.mxu0 %v3353_v1  ;;  %3068 = vmatpush3.bf16.msra.mxu1 %v3336_v30 }
  0xae   : > { %2866 = vmatmul.mubr.bf16.gmra.mrb[8].mxu1 %v3334_v34  ;;  %3061 = vmatprep.subr.bf16.mxu1 %v3353_v1 }
  0xaf   : > { %3010 = vmatmul.mubr.bf16.gmra.mrb[8].mxu0 %v1714_v35  ;;  %2869 = vmatprep.mubr.msk.bf16.mxu1 %vm3354_vm0, %v3353_v1 }
  0xb0   : > { %3030 = vmatpush3.bf16.msra.mxu0 %v3337_v36  ;;  %3013 = vmatprep.mubr.msk.bf16.mxu0 %vm3354_vm0, %v3353_v1 }
  0xb1   : > { %3069 = vmatpush3.bf16.msra.mxu1 %v3337_v36  ;;  %3031 = vmatprep.subr.bf16.mxu0 %v3353_v1 }
  0xb2   : > { %3062 = vmatprep.subr.bf16.mxu1 %v3353_v1 }
  0xb4   : > { %3032 = vmatpush3.bf16.msra.mxu0 %v3340_v43 }
  0xb5   : > { %3070 = vmatpush3.bf16.msra.mxu1 %v3340_v43  ;;  %3033 = vmatprep.subr.bf16.mxu0 %v3353_v1 }
  0xb6   : > { %2870 = vmatmul.mubr.bf16.gmra.mrb[12].mxu1 %v3338_v44  ;;  %3063 = vmatprep.subr.bf16.mxu1 %v3353_v1 }
  0xb7   : > { %3014 = vmatmul.mubr.bf16.gmra.mrb[12].mxu0 %v1722_v45  ;;  %2873 = vmatprep.mubr.msk.bf16.mxu1 %vm3354_vm0, %v3353_v1 }
  0xb8   : > { %3017 = vmatprep.mubr.msk.bf16.mxu0 %vm3354_vm0, %v3353_v1  ;;  %3034 = vmatpush3.bf16.msra.mxu0 %v3341_v46 }
  0xb9   : > { %3071 = vmatpush3.bf16.msra.mxu1 %v3341_v46  ;;  %3035 = vmatprep.subr.bf16.mxu0 %v3353_v1 }
  0xba   : > { %3064 = vmatprep.subr.bf16.mxu1 %v3353_v1 }
  0xbc   : > { %3036 = vmatpush3.bf16.msra.mxu0 %v3343_v48 }
  0xbd   : > { %3072 = vmatpush3.bf16.msra.mxu1 %v3343_v48 }
  0xbe   : > { %2874 = vmatmul.mubr.bf16.gmra.mrb[16].mxu1 %v3342_v49 }
  0xbf   : > { %3018 = vmatmul.mubr.bf16.gmra.mrb[16].mxu0 %v1725_v50  ;;  %3049 = vmatprep.mubr.msk.bf16.mxu1 %vm3354_vm0, %v3353_v1 }
  0xc0   : > { %3037 = vmatprep.mubr.msk.bf16.mxu0 %vm3354_vm0, %v3353_v1 }
  0xc6   : > { %3050 = vmatmul.mubr.bf16.vlgmr.msra.gmra.mrb[20].mxu1 %v1890_v52 }
  0xc7   : > { %3038 = vmatmul.mubr.bf16.vlgmr.msra.gmra.mrb[0].mxu0 %v3737_v17  ;;  %3053 = vmatprep.mubr.msk.bf16.mxu1 %vm3354_vm0, %v3353_v1 }
  0xc8   : > { %3041 = vmatprep.mubr.msk.bf16.mxu0 %vm3354_vm0, %v3353_v1 }
  0xce   : > { %3054 = vmatmul.mubr.bf16.gmra.mrb[24].mxu1 %v1889_v51 }
  0xcf   : > { %3042 = vmatmul.mubr.bf16.gmra.mrb[4].mxu0 %v3671_v37 }
  0xd0   : > { %3045 = vmatprep.mubr.msk.bf16.mxu0 %vm3354_vm0, %v3353_v1 }
  0xd7   : > { %3046 = vmatmul.mubr.bf16.gmra.mrb[8].mxu0 %v3676_v38 }
  0xe1   : > { %v2083_v14 = vpop.permute.xlu0 %2082 }
  0xe2   : > { %v2093_v15 = vpop.permute.xlu1 %2092 }
  0xe9   : > { %v2088_v32 = vpop.permute.xlu0 %2087 }
  0xea   : > { %v2098_v39 = vpop.permute.xlu1 %2097 }
 0x171   : > { %v954_v27 = vpop.f32.mrb[0].mxu1 }
 0x172   : > { %v2859_v31 = vpop.f32.mrb[1].mxu1 }
 0x173   : > { %v957_v33 = vpop.f32.mrb[2].mxu1  ;;  %v2103_v31 = vpop.permute.xlu0 %2102 }
 0x174   : > { %v2860_v53 = vpop.f32.mrb[3].mxu1 }
 0x179   : > { %v962_v54 = vpop.f32.mrb[4].mxu1 }
 0x17a   : > { %v2863_v17 = vpop.f32.mrb[5].mxu1 }
 0x17b   : > { %v3930_v55 = vpop.f32.mrb[6].mxu1 }
 0x17c   : > { %v2864_v56 = vpop.f32.mrb[7].mxu1 }
 0x181   : > { %v3932_v57 = vpop.f32.mrb[8].mxu1 }
 0x182   : > { %v2867_v58 = vpop.f32.mrb[9].mxu1 }
 0x183   : > { %v3934_v59 = vpop.f32.mrb[10].mxu1 }
 0x184   : > { %v2868_v37 = vpop.f32.mrb[11].mxu1 }
 0x189   : > { %v978_v60 = vpop.f32.mrb[12].mxu1 }
 0x18a   : > { %v1837_v61 = vpop.f32.mrb[12].mxu0  ;;  %v2871_v1 = vpop.f32.mrb[13].mxu1 }
 0x18b   : > { %v3079_v62 = vadd.f32 %v1837_v61, %v978_v60  ;;  %v3015_v38 = vpop.f32.mrb[13].mxu0  ;;  %v981_v63 = vpop.f32.mrb[14].mxu1 }
 0x18c   : > { %v1840_v0 = vpop.f32.mrb[14].mxu0  ;;  %v2872_v2 = vpop.f32.mrb[15].mxu1 }
 0x18d   : > { %v3081_v3 = vadd.f32 %v1840_v0, %v981_v63  ;;  %v3016_v4 = vpop.f32.mrb[15].mxu0  ;;  %v2108_v61 = vpop.permute.xlu1 %2107 }
 0x18e   : > { %v2113_v63 = vpop.permute.xlu0 %2112 }
 0x191   : > { %v986_v5 = vpop.f32.mrb[16].mxu1 }
 0x192   : > { %v1845_v6 = vpop.f32.mrb[16].mxu0  ;;  %v2875_v7 = vpop.f32.mrb[17].mxu1 }
 0x193   : > { %v3083_v8 = vadd.f32 %v1845_v6, %v986_v5  ;;  %v3019_v9 = vpop.f32.mrb[17].mxu0  ;;  %v989_v10 = vpop.f32.mrb[18].mxu1 }
 0x194   : > { %v1848_v11 = vpop.f32.mrb[18].mxu0  ;;  %v2876_v12 = vpop.f32.mrb[19].mxu1 }
 0x195   : > { %v3020_v13 = vpop.f32.mrb[19].mxu0 }
 0x199   : > { %v2002_v16 = vpop.f32.mrb[20].mxu1 }
 0x19a   : > { %v1978_v18 = vpop.f32.mrb[0].mxu0  ;;  %v3937_v19 = vadd.f32 %v3079_v62, %v2002_v16  ;;  %v3051_v20 = vpop.f32.mrb[21].mxu1 }
 0x19b   : > { %v3073_v21 = vadd.f32 %v1978_v18, %v954_v27  ;;  %v3039_v22 = vpop.f32.mrb[1].mxu0  ;;  %v2005_v23 = vpop.f32.mrb[22].mxu1 }
 0x19c   : > { %v1981_v24 = vpop.f32.mrb[2].mxu0  ;;  %v3939_v25 = vadd.f32 %v3081_v3, %v2005_v23  ;;  %v3052_v26 = vpop.f32.mrb[23].mxu1  ;;  %v2131_v7 = vmul.f32 %v3937_v19, %v2113_v63 }
 0x19d   : > { %v2125_v28 = vmul.f32 %v3073_v21, %v2083_v14  ;;  %v3074_v29 = vadd.f32 %v1981_v24, %v957_v33  ;;  %v3040_v30 = vpop.f32.mrb[3].mxu0 }
 0x19e   : > { %v2611_v34 = vpack.c.bf16 %v3939_v25, %v3937_v19  ;;  %v2155_v18 = vmul.f32 %v3937_v19, %v2131_v7 }
 0x19f   : > { %v2596_v35 = vpack.c.bf16 %v3074_v29, %v3073_v21  ;;  %v2126_v36 = vmul.f32 %v3074_v29, %v2088_v32  ;;  %v2149_v40 = vmul.f32 %v3073_v21, %v2125_v28 }
 0x1a0   : > { %2615 = vst [vmem:[%s3944_s8 + $0x18] sm:$0xff] %v2611_v34  }
 0x1a1   : > { %2597 = vst [vmem:[%s3944_s8] sm:$0xff] %v2596_v35   ;;  %v2134_v41 = vadd.f32 %v2126_v36, %v2125_v28  ;;  %v2150_v42 = vmul.f32 %v3074_v29, %v2126_v36  ;;  %v2010_v43 = vpop.f32.mrb[24].mxu1 }
 0x1a2   : > { %v1986_v44 = vpop.f32.mrb[4].mxu0  ;;  %v3084_v45 = vadd.f32 %v3083_v8, %v2010_v43  ;;  %v3055_v46 = vpop.f32.mrb[25].mxu1 }
 0x1a3   : > { %v2158_v47 = vadd.f32 %v2150_v42, %v2149_v40  ;;  %v3075_v48 = vadd.f32 %v1986_v44, %v962_v54  ;;  %v3043_v49 = vpop.f32.mrb[5].mxu0  ;;  %v2013_v50 = vpop.f32.mrb[26].mxu1 }
 0x1a4   : > { %v2592_v51 = vpack.c.bf16 %v3084_v45, %v3084_v45  ;;  %v1989_v52 = vpop.f32.mrb[6].mxu0  ;;  %v3056_v27 = vpop.f32.mrb[27].mxu1 }
 0x1a5   : > { %v2127_v33 = vmul.f32 %v3075_v48, %v2093_v15  ;;  %v3076_v53 = vadd.f32 %v1989_v52, %v3930_v55  ;;  %v3044_v17 = vpop.f32.mrb[7].mxu0  ;;  %v2118_v8 = vpop.permute.xlu1 %2117 }
 0x1a6   : > { %2070 = vst [vmem:[%s3944_s8 + $0x20] sm:$0xf] %v2592_v51  ;;  %v2132_v13 = vmul.f32 %v3939_v25, %v2118_v8 }
 0x1a7   : > { %v2135_v56 = vadd.f32 %v2134_v41, %v2127_v33  ;;  %v2151_v58 = vmul.f32 %v3075_v48, %v2127_v33  ;;  %v2601_v37 = vpack.c.bf16 %v3076_v53, %v3075_v48  ;;  %v2128_v60 = vmul.f32 %v3076_v53, %v2098_v39 }
 0x1a8   : > { %v2156_v22 = vmul.f32 %v3939_v25, %v2132_v13 }
 0x1a9   : > { %v2159_v1 = vadd.f32 %v2158_v47, %v2151_v58  ;;  %2613 = vst [vmem:[%s3944_s8 + $0x8] sm:$0xff] %v2601_v37   ;;  %v2136_v54 = vadd.f32 %v2135_v56, %v2128_v60  ;;  %v2152_v62 = vmul.f32 %v3076_v53, %v2128_v60 }
 0x1aa   : > { %v1994_v38 = vpop.f32.mrb[8].mxu0 }
 0x1ab   : > { %v2160_v0 = vadd.f32 %v2159_v1, %v2152_v62  ;;  %v3077_v2 = vadd.f32 %v1994_v38, %v3932_v57  ;;  %v3047_v3 = vpop.f32.mrb[9].mxu0  ;;  %v2123_v57 = vpop.permute.xlu0 %2122 }
 0x1ac   : > { %v1997_v4 = vpop.f32.mrb[10].mxu0  ;;  %v2133_v20 = vmul.f32 %v3084_v45, %v2123_v57 }
 0x1ad   : > { %v2129_v55 = vmul.f32 %v3077_v2, %v2103_v31  ;;  %v3078_v5 = vadd.f32 %v1997_v4, %v3934_v59  ;;  %v3048_v6 = vpop.f32.mrb[11].mxu0 }
 0x1ae   : > { %v2157_v26 = vmul.f32 %v3084_v45, %v2133_v20 }
 0x1af   : > { %v2137_v9 = vadd.f32 %v2136_v54, %v2129_v55  ;;  %v2153_v10 = vmul.f32 %v3077_v2, %v2129_v55  ;;  %v2606_v11 = vpack.c.bf16 %v3078_v5, %v3077_v2  ;;  %v2130_v12 = vmul.f32 %v3078_v5, %v2108_v61 }
 0x1b1   : > { %v2161_v14 = vadd.f32 %v2160_v0, %v2153_v10  ;;  %2614 = vst [vmem:[%s3944_s8 + $0x10] sm:$0xff] %v2606_v11   ;;  %v2138_v15 = vadd.f32 %v2137_v9, %v2130_v12  ;;  %v2154_v16 = vmul.f32 %v3078_v5, %v2130_v12 }
 0x1b3   : > { %v2139_v21 = vadd.f32 %v2138_v15, %v2131_v7  ;;  %v2162_v59 = vadd.f32 %v2161_v14, %v2154_v16 }
 0x1b5   : > { %v2140_v23 = vadd.f32 %v2139_v21, %v2132_v13  ;;  %v2163_v24 = vadd.f32 %v2162_v59, %v2155_v18 }
 0x1b7   : > { %v2141_v28 = vadd.f32 %v2140_v23, %v2133_v20  ;;  %v2164_v29 = vadd.f32 %v2163_v24, %v2156_v22 }
 0x1b9   : > { %v2142_v30 = vrot.slane %v2141_v28, 4  ;;  %v2165_v32 = vadd.f32 %v2164_v29, %v2157_v26 }
 0x1bb   : > { %v2143_v34 = vadd.f32 %v2142_v30, %v2141_v28  ;;  %v2166_v35 = vrot.slane %v2165_v32, 4 }
 0x1bd   : > { %v2144_v36 = vrot.slane %v2143_v34, 2  ;;  %v2167_v39 = vadd.f32 %v2166_v35, %v2165_v32 }
 0x1bf   : > { %v2145_v40 = vadd.f32 %v2144_v36, %v2143_v34  ;;  %v2168_v19 = vrot.slane %v2167_v39, 2 }
 0x1c1   : > { %v2146_v41 = vrot.slane %v2145_v40, 1  ;;  %v2169_v42 = vadd.f32 %v2168_v19, %v2167_v39 }
 0x1c3   : > { %v2147_v25 = vadd.f32 %v2146_v41, %v2145_v40  ;;  %v2170_v43 = vrot.slane %v2169_v42, 1 }
 0x1c5   : > { %2148 = vst [vmem:[%s238_s11] sm:$0x1] %v2147_v25  ;;  %v2171_v44 = vadd.f32 %v2170_v43, %v2169_v42 }
 0x1c7   : > { %2172 = vst [vmem:[%s241_s14] sm:$0x1] %v2171_v44 }
 0x1c8 PF: > { %s16_s18 = sadd.s32 1, %s3351_s18  }
 0x1c9   : > { %p13_p4 = scmp.ge.s32.totalorder %s16_s18, 4  }
 0x1cb   :  { %15 = sbr.rel (!%p13_p4) target bundleno = 1 (0x1), region = 97 }

// kernel: basic_block_forward.7
= control target key start
LH: loop header
LB: loop body
LE: loop exit
PB: predicated region body
PF: predicated region fallthrough
CT: control target
= control target key end

     0   :  { %s592_s21 = smov 0   ;;  %s702_s0 = inlined_call_operand.vmem [shape: bf16[2,80,128], index: 0, kind: input, shape index: {}]   ;;  %s703_s1 = inlined_call_operand.vmem [shape: f32[1,128], index: 1, kind: input, shape index: {}]   ;;  %s704_s2 = inlined_call_operand.vmem [shape: f32[1,128], index: 2, kind: input, shape index: {}]   ;;  %s705_s3 = inlined_call_operand.vmem [shape: bf16[2,80,128], index: 3, kind: input, shape index: {}]   ;;  %s706_s4 = inlined_call_operand.vmem [shape: f32[1,128], index: 4, kind: input, shape index: {}]   ;;  %s707_s5 = inlined_call_operand.vmem [shape: f32[1,128], index: 5, kind: input, shape index: {}]   ;;  %s708_s6 = inlined_call_operand.vmem [shape: f32[2,80,128], index: 6, kind: output, shape index: {}]  }
   0x1 LB: > { %s477_s22 = sadd.s32 4294967295, %s555_s21   ;;  %p481_p0 = scmp.ge.s32.totalorder %s555_s21, 1  ;;  %s555_s21 = sphi %s592_s21, %s16_s21  }
   0x2   : > { %p222_p1 = scmp.lt.s32.totalorder %s555_s21, 3 }
   0x4   : > { %p223_p2 = pnand %p481_p0, %p222_p1 }
   0x5   : > { %p257_p3 = scmp.lt.s32.totalorder (!%p223_p2), %s477_s22, 1  ;;  %v616_v0 = vld [vmem:[%s703_s1] ss:$0 sm:$0xff] (!%p223_p2) }
   0x6   : > { %226 = sbr.rel (%p223_p2) target bundleno = 45 (0x2d), region = 44  ;;  %v621_v1 = vld [vmem:[%s706_s4] ss:$0 sm:$0xff] (!%p223_p2) }
   0x7   : > { %v630_v10 = vld [vmem:[%s704_s2] ss:$0 sm:$0xff] (!%p223_p2) }
   0x8   : > { %v648_v29 = vld [vmem:[%s707_s5] ss:$0 sm:$0xff] (!%p223_p2) }
   0xd   : > { %s710_s22 = smov (!%p257_p3, %s477_s22), 1 }
   0xe   : > { %s539_s23 = smul.u32 40, %s710_s22 }
   0xf   : > { %s540_s12 = smul.u32 80, %s710_s22 }
  0x10   : > { %s606_s26 = scalar_lea.vmem %s702_s0, %s539_s23  ;;  %s611_s29 = scalar_lea.vmem %s705_s3, %s539_s23 }
  0x11   : > { %v492_v2 = vld [vmem:[%s606_s26] sm:$0xff]   ;;  %v531_v4 = vld [vmem:[%s606_s26 + $0x8] sm:$0xff]   ;;  %v532_v15 = vld [vmem:[%s606_s26 + $0x10] sm:$0xff]   ;;  %s664_s17 = scalar_lea.vmem %s708_s6, %s540_s12 }
  0x12   : > { %v512_v3 = vld [vmem:[%s611_s29] sm:$0xff]   ;;  %v493_v5 = vunpack.c.l.bf16 %v492_v2  ;;  %v494_v7 = vunpack.c.h.bf16 %v492_v2  ;;  %v535_v9 = vld [vmem:[%s611_s29 + $0x8] sm:$0xff]   ;;  %v497_v11 = vunpack.c.l.bf16 %v531_v4  ;;  %v498_v13 = vunpack.c.h.bf16 %v531_v4  ;;  %v536_v16 = vld [vmem:[%s611_s29 + $0x10] sm:$0xff]  }
  0x13   : > { %v513_v6 = vunpack.c.l.bf16 %v512_v3  ;;  %v514_v8 = vunpack.c.h.bf16 %v512_v3  ;;  %v517_v12 = vunpack.c.l.bf16 %v535_v9  ;;  %v518_v14 = vunpack.c.h.bf16 %v535_v9  ;;  %v533_v34 = vld [vmem:[%s606_s26 + $0x18] sm:$0xff]   ;;  %v534_v56 = vld [vmem:[%s606_s26 + $0x20] sm:$0xff]  }
  0x14   : > { %v299_v17 = vmul.f32 %v493_v5, %v616_v0  ;;  %v300_v19 = vmul.f32 %v494_v7, %v616_v0  ;;  %v301_v21 = vmul.f32 %v497_v11, %v616_v0  ;;  %v302_v23 = vmul.f32 %v498_v13, %v616_v0  ;;  %v537_v39 = vld [vmem:[%s611_s29 + $0x18] sm:$0xff]   ;;  %v538_v57 = vld [vmem:[%s611_s29 + $0x20] sm:$0xff]  }
  0x15   : > { %v353_v18 = vmul.f32 %v513_v6, %v621_v1  ;;  %v354_v20 = vmul.f32 %v514_v8, %v621_v1  ;;  %v355_v22 = vmul.f32 %v517_v12, %v621_v1  ;;  %v356_v24 = vmul.f32 %v518_v14, %v621_v1 }
  0x16   : > { %v316_v25 = vadd.f32 %v630_v10, %v299_v17  ;;  %v317_v26 = vadd.f32 %v630_v10, %v300_v19  ;;  %v501_v27 = vunpack.c.l.bf16 %v532_v15  ;;  %v521_v28 = vunpack.c.l.bf16 %v536_v16 }
  0x17   : > { %v318_v30 = vadd.f32 %v630_v10, %v301_v21  ;;  %v319_v31 = vadd.f32 %v630_v10, %v302_v23  ;;  %v502_v32 = vunpack.c.h.bf16 %v532_v15  ;;  %v522_v33 = vunpack.c.h.bf16 %v536_v16 }
  0x18   : > { %v363_v35 = vadd.f32 %v353_v18, %v316_v25  ;;  %v364_v36 = vadd.f32 %v354_v20, %v317_v26  ;;  %v303_v37 = vmul.f32 %v501_v27, %v616_v0  ;;  %v357_v38 = vmul.f32 %v521_v28, %v621_v1 }
  0x19   : > { %v365_v40 = vadd.f32 %v355_v22, %v318_v30  ;;  %v366_v41 = vadd.f32 %v356_v24, %v319_v31  ;;  %v304_v42 = vmul.f32 %v502_v32, %v616_v0  ;;  %v358_v43 = vmul.f32 %v522_v33, %v621_v1 }
  0x1a   : > { %v380_v44 = vadd.f32 %v648_v29, %v363_v35  ;;  %v381_v45 = vadd.f32 %v648_v29, %v364_v36  ;;  %v320_v46 = vadd.f32 %v630_v10, %v303_v37  ;;  %v505_v47 = vunpack.c.l.bf16 %v533_v34 }
  0x1b   : > { %v382_v48 = vadd.f32 %v648_v29, %v365_v40  ;;  %v383_v49 = vadd.f32 %v648_v29, %v366_v41  ;;  %v321_v50 = vadd.f32 %v630_v10, %v304_v42  ;;  %v525_v51 = vunpack.c.l.bf16 %v537_v39 }
  0x1c   : > { %v390_v52 = vmax.f32 %v380_v44, 0.0  ;;  %v391_v53 = vmax.f32 %v381_v45, 0.0  ;;  %v367_v54 = vadd.f32 %v357_v38, %v320_v46  ;;  %v305_v55 = vmul.f32 %v505_v47, %v616_v0 }
  0x1d   : > { %v392_v58 = vmax.f32 %v382_v48, 0.0  ;;  %v393_v59 = vmax.f32 %v383_v49, 0.0  ;;  %v368_v60 = vadd.f32 %v358_v43, %v321_v50  ;;  %v359_v61 = vmul.f32 %v525_v51, %v621_v1 }
  0x1e   : > { %400 = vst [vmem:[%s664_s17] sm:$0xff] %v390_v52  ;;  %401 = vst [vmem:[%s664_s17 + $0x8] sm:$0xff] %v391_v53  ;;  %v384_v62 = vadd.f32 %v648_v29, %v367_v54  ;;  %v322_v63 = vadd.f32 %v630_v10, %v305_v55  ;;  %v506_v2 = vunpack.c.h.bf16 %v533_v34  ;;  %v526_v3 = vunpack.c.h.bf16 %v537_v39 }
  0x1f   : > { %402 = vst [vmem:[%s664_s17 + $0x10] sm:$0xff] %v392_v58  ;;  %403 = vst [vmem:[%s664_s17 + $0x18] sm:$0xff] %v393_v59  ;;  %v385_v4 = vadd.f32 %v648_v29, %v368_v60  ;;  %v509_v5 = vunpack.c.l.bf16 %v534_v56  ;;  %v529_v6 = vunpack.c.l.bf16 %v538_v57  ;;  %v510_v7 = vunpack.c.h.bf16 %v534_v56 }
  0x20   : > { %v394_v8 = vmax.f32 %v384_v62, 0.0  ;;  %v369_v9 = vadd.f32 %v359_v61, %v322_v63  ;;  %v306_v11 = vmul.f32 %v506_v2, %v616_v0  ;;  %v360_v12 = vmul.f32 %v526_v3, %v621_v1 }
  0x21   : > { %v395_v13 = vmax.f32 %v385_v4, 0.0  ;;  %v307_v14 = vmul.f32 %v509_v5, %v616_v0  ;;  %v361_v15 = vmul.f32 %v529_v6, %v621_v1  ;;  %v308_v16 = vmul.f32 %v510_v7, %v616_v0 }
  0x22   : > { %404 = vst [vmem:[%s664_s17 + $0x20] sm:$0xff] %v394_v8  ;;  %v386_v17 = vadd.f32 %v648_v29, %v369_v9  ;;  %v323_v18 = vadd.f32 %v630_v10, %v306_v11  ;;  %v530_v19 = vunpack.c.h.bf16 %v538_v57 }
  0x23   : > { %405 = vst [vmem:[%s664_s17 + $0x28] sm:$0xff] %v395_v13  ;;  %v324_v20 = vadd.f32 %v630_v10, %v307_v14  ;;  %v325_v21 = vadd.f32 %v630_v10, %v308_v16 }
  0x24   : > { %v396_v22 = vmax.f32 %v386_v17, 0.0  ;;  %v370_v23 = vadd.f32 %v360_v12, %v323_v18  ;;  %v362_v24 = vmul.f32 %v530_v19, %v621_v1 }
  0x25   : > { %v371_v25 = vadd.f32 %v361_v15, %v324_v20 }
  0x26   : > { %406 = vst [vmem:[%s664_s17 + $0x30] sm:$0xff] %v396_v22  ;;  %v387_v0 = vadd.f32 %v648_v29, %v370_v23  ;;  %v372_v26 = vadd.f32 %v362_v24, %v325_v21 }
  0x27   : > { %v388_v27 = vadd.f32 %v648_v29, %v371_v25 }
  0x28   : > { %v397_v28 = vmax.f32 %v387_v0, 0.0  ;;  %v389_v30 = vadd.f32 %v648_v29, %v372_v26 }
  0x29   : > { %v398_v31 = vmax.f32 %v388_v27, 0.0 }
  0x2a   : > { %407 = vst [vmem:[%s664_s17 + $0x38] sm:$0xff] %v397_v28  ;;  %v399_v32 = vmax.f32 %v389_v30, 0.0 }
  0x2b   : > { %408 = vst [vmem:[%s664_s17 + $0x40] sm:$0xff] %v398_v31 }
  0x2c   : > { %409 = vst [vmem:[%s664_s17 + $0x48] sm:$0xff] %v399_v32 }
  0x2d PF: > { %s16_s21 = sadd.s32 1, %s555_s21  }
  0x2e   : > { %p13_p4 = scmp.ge.s32.totalorder %s16_s21, 4  }
  0x30   :  { %15 = sbr.rel (!%p13_p4) target bundleno = 1 (0x1), region = 77 }

// kernel: basic_block_forward.6
= control target key start
LH: loop header
LB: loop body
LE: loop exit
PB: predicated region body
PF: predicated region fallthrough
CT: control target
= control target key end

     0   :  { %s3935_s13 = smov 0   ;;  %s4694_s0 = inlined_call_operand.vmem [shape: bf16[2,1,132,128], index: 0, kind: input, shape index: {}]   ;;  %s4695_s1 = inlined_call_operand.vmem [shape: bf16[9,128,128], index: 1, kind: input, shape index: {}]   ;;  %s4696_s2 = inlined_call_operand.vmem [shape: bf16[2,80,128], index: 2, kind: input, shape index: {}]   ;;  %s4697_s3 = inlined_call_operand.vmem [shape: bf16[128,128], index: 3, kind: input, shape index: {}]   ;;  %s4698_s4 = inlined_call_operand.vmem [shape: f32[80,1], index: 4, kind: input, shape index: {}]   ;;  %s4699_s5 = inlined_call_operand.vmem [shape: bf16[2,80,128], index: 5, kind: output, shape index: {0}]   ;;  %s4700_s6 = inlined_call_operand.vmem [shape: bf16[2,80,128], index: 6, kind: output, shape index: {1}]   ;;  %s4701_s7 = inlined_call_operand.vmem [shape: f32[2,1,128], index: 7, kind: output, shape index: {2}]   ;;  %s4702_s8 = inlined_call_operand.vmem [shape: f32[2,1,128], index: 8, kind: output, shape index: {3}]   ;;  %s4703_s9 = inlined_call_operand.vmem [shape: f32[2,1,128], index: 9, kind: output, shape index: {4}]   ;;  %s4704_s10 = inlined_call_operand.vmem [shape: f32[2,1,128], index: 10, kind: output, shape index: {5}]  }
   0x1 LB: > { %s2761_s14 = sadd.s32 4294967295, %s3875_s13   ;;  %p2765_p0 = scmp.ge.s32.totalorder %s3875_s13, 1  ;;  %s3875_s13 = sphi %s3935_s13, %s21_s13  }
   0x2   : > { %p333_p1 = scmp.lt.s32.totalorder %s3875_s13, 3 }
   0x4   : > { %p334_p2 = pnand %p2765_p0, %p333_p1 }
   0x5   : > { %v3761_v0 = vld [vmem:[%s4695_s1 + $0x40] sm:$0xff] (!%p334_p2)   ;;  %v3877_v1 = vmov (!%p334_p2), 0.0   ;;  %v3763_v3 = vld [vmem:[%s4695_s1 + $0x48] sm:$0xff] (!%p334_p2)   ;;  %vm3878_vm0 = vmmov (!%p334_p2), 0   ;;  %p393_p3 = scmp.lt.s32.totalorder (!%p334_p2), %s2761_s14, 1  ;;  %v3765_v5 = vld [vmem:[%s4695_s1 + $0x50] sm:$0xff] (!%p334_p2)  }
   0x6   : > { %337 = sbr.rel (%p334_p2) target bundleno = 466 (0x1d2), region = 40  ;;  %3236 = vmatprep.subr.bf16.mxu1 (!%p334_p2), %v3877_v1  ;;  %3380 = vmatprep.subr.bf16.mxu0 (!%p334_p2), %v3877_v1  ;;  %v3762_v2 = vld [vmem:[%s4695_s1 + $0x100] sm:$0xff] (!%p334_p2)   ;;  %v3764_v4 = vld [vmem:[%s4695_s1 + $0x108] sm:$0xff] (!%p334_p2)   ;;  %v3766_v6 = vld [vmem:[%s4695_s1 + $0x110] sm:$0xff] (!%p334_p2)   ;;  %vm498_vm1 = vsmask.f32 (!%p334_p2), 7424 }
   0x7   : > { %3237 = vmatpush3.bf16.msra.mxu1 (!%p334_p2), %v3761_v0  ;;  %3252 = vmatprep.mubr.msk.bf16.mxu1 (!%p334_p2), %vm3878_vm0, %v3877_v1  ;;  %v3767_v7 = vld [vmem:[%s4695_s1 + $0x58] sm:$0xff] (!%p334_p2)   ;;  %v3769_v9 = vld [vmem:[%s4695_s1 + $0x60] sm:$0xff] (!%p334_p2)   ;;  %v3771_v11 = vld [vmem:[%s4695_s1 + $0x68] sm:$0xff] (!%p334_p2)   ;;  %vm1188_vm2 = vsmask.f32 (!%p334_p2), 6400  ;;  %vm816_vm3 = vcmask (!%p334_p2), 1046528  }
   0x8   : > { %3381 = vmatpush3.bf16.msra.mxu0 (!%p334_p2), %v3762_v2  ;;  %3238 = vmatprep.subr.bf16.mxu1 (!%p334_p2), %v3877_v1  ;;  %v3768_v8 = vld [vmem:[%s4695_s1 + $0x118] sm:$0xff] (!%p334_p2)   ;;  %v3770_v10 = vld [vmem:[%s4695_s1 + $0x120] sm:$0xff] (!%p334_p2)   ;;  %v3772_v19 = vld [vmem:[%s4695_s1 + $0x128] sm:$0xff] (!%p334_p2)   ;;  %vm1399_vm4 = vcmask (!%p334_p2), 1045504   ;;  %vm1982_vm5 = vcmask (!%p334_p2), 1044480  }
   0x9   : > { %3382 = vmatprep.subr.bf16.mxu0 (!%p334_p2), %v3877_v1  ;;  %3396 = vmatprep.mubr.msk.bf16.mxu0 (!%p334_p2), %vm3878_vm0, %v3877_v1  ;;  %v3773_v22 = vld [vmem:[%s4695_s1 + $0x70] sm:$0xff] (!%p334_p2)   ;;  %v3775_v35 = vld [vmem:[%s4695_s1 + $0x78] sm:$0xff] (!%p334_p2)   ;;  %v3781_v45 = vld [vmem:[%s4695_s1 + $0x140] sm:$0xff] (!%p334_p2)   ;;  %vm1771_vm6 = vsmask.f32 (!%p334_p2), 5376 }
   0xa   : > { %v3774_v25 = vld [vmem:[%s4695_s1 + $0x130] sm:$0xff] (!%p334_p2)   ;;  %v3776_v36 = vld [vmem:[%s4695_s1 + $0x138] sm:$0xff] (!%p334_p2)   ;;  %v3782_v47 = vld [vmem:[%s4695_s1] sm:$0xff] (!%p334_p2)  }
   0xb   : > { %3239 = vmatpush3.bf16.msra.mxu1 (!%p334_p2), %v3763_v3  ;;  %v3783_v54 = vld [vmem:[%s4695_s1 + $0x148] sm:$0xff] (!%p334_p2)   ;;  %v3787_v62 = vld [vmem:[%s4695_s1 + $0x150] sm:$0xff] (!%p334_p2)  }
   0xc   : > { %3383 = vmatpush3.bf16.msra.mxu0 (!%p334_p2), %v3764_v4  ;;  %3240 = vmatprep.subr.bf16.mxu1 (!%p334_p2), %v3877_v1  ;;  %v3786_v55 = vld [vmem:[%s4695_s1 + $0x8] sm:$0xff] (!%p334_p2)   ;;  %v3788_v4 = vld [vmem:[%s4695_s1 + $0x10] sm:$0xff] (!%p334_p2)  }
   0xd   : > { %s4706_s14 = smov (!%p393_p3, %s2761_s14), 1  ;;  %3384 = vmatprep.subr.bf16.mxu0 %v3877_v1 }
   0xe   : > { %s3746_s27 = smul.u32 68, %s4706_s14  ;;  %s421_s30 = scalar_lea.vmem %s4703_s9, %s4706_s14 }
   0xf   : > { %3241 = vmatpush3.bf16.msra.mxu1 %v3765_v5  ;;  %s424_s17 = scalar_lea.vmem %s4704_s10, %s4706_s14  ;;  %s415_s20 = scalar_lea.vmem %s4701_s7, %s4706_s14 }
  0x10   : > { %3385 = vmatpush3.bf16.msra.mxu0 %v3766_v6  ;;  %3242 = vmatprep.subr.bf16.mxu1 %v3877_v1  ;;  %s3985_s16 = scalar_lea.vmem %s4694_s0, %s3746_s27  ;;  %s4309_s27 = smul.u32 40, %s4706_s14 }
  0x11   : > { %3386 = vmatprep.subr.bf16.mxu0 %v3877_v1  ;;  %v426_v12 = vld [vmem:[%s3985_s16] sm:$0xf]  ;;  %v4000_v13 = vld [vmem:[%s3985_s16 + $0x4] sm:$0xf]  ;;  %v4006_v15 = vld [vmem:[%s3985_s16 + $0x8] sm:$0xff]   ;;  %s418_s23 = scalar_lea.vmem %s4702_s8, %s4706_s14 }
  0x12   : > { %v4003_v14 = vcombine.low %v426_v12, %v4000_v13  ;;  %v4009_v16 = vld [vmem:[%s3985_s16 + $0xc] sm:$0xff]   ;;  %v964_v17 = vld [vmem:[%s3985_s16 + $0x4] sm:$0xe]  ;;  %v4013_v18 = vld [vmem:[%s3985_s16 + $0x8] sm:$0xf]  ;;  %v507_v30 = vshll.u32 %v4006_v15, 16  ;;  %s4342_s12 = scalar_lea.vmem %s4696_s2, %s4309_s27  ;;  %s4651_s25 = scalar_lea.vmem %s4700_s6, %s4309_s27 }
  0x13   : > { %3243 = vmatpush3.bf16.msra.mxu1 %v3767_v7  ;;  %v4021_v21 = vcombine.low %v964_v17, %v4013_v18  ;;  %v1198_v23 = vshrl.u32 %v4009_v16, 16  ;;  %v1201_v24 = vshll.u32 %v4009_v16, 16  ;;  %v4045_v37 = vld [vmem:[%s3985_s16 + $0x10] sm:$0xff]   ;;  %v511_v48 = vshrl.u32 %v4006_v15, 16  ;;  %v4066_v53 = vld [vmem:[%s3985_s16 + $0x1c] sm:$0xff]   ;;  %v4098_v7 = vld [vmem:[%s3985_s16 + $0x24] sm:$0xff]  }
  0x14   : > { %3387 = vmatpush3.bf16.msra.mxu0 %v3768_v8  ;;  %3244 = vmatprep.subr.bf16.mxu1 %v3877_v1  ;;  %v502_v20 = vshll.u32 %v4003_v14, 16  ;;  %v500_v26 = vshrl.u32 %v4003_v14, 16  ;;  %v509_v39 = vrot.slane %v507_v30, 1  ;;  %v4048_v40 = vld [vmem:[%s3985_s16 + $0x14] sm:$0xff]   ;;  %v515_v49 = vshll.u32 %v4045_v37, 16  ;;  %v3796_v30 = vld [vmem:[%s4695_s1 + $0x20] sm:$0xff]  }
  0x15   : > { %3388 = vmatprep.subr.bf16.mxu0 %v3877_v1  ;;  %v1190_v27 = vshrl.u32 %v4021_v21, 16  ;;  %v1193_v28 = vshll.u32 %v4021_v21, 16  ;;  %v1200_v33 = vrot.slane %v1198_v23, 1  ;;  %v1203_v34 = vrot.slane %v1201_v24, 2  ;;  %v4076_v58 = vld [vmem:[%s3985_s16 + $0x18] sm:$0xff]  }
  0x16   : > { %v504_v29 = vrot.slane %v502_v20, 1  ;;  %v1207_v43 = vshrl.u32 %v4048_v40, 16  ;;  %v1210_v44 = vshll.u32 %v4048_v40, 16  ;;  %v513_v56 = vor.u32 %v511_v48, %v509_v39  ;;  %v3791_v12 = vld [vmem:[%s4695_s1 + $0x158] sm:$0xff]  }
  0x17   : > { %3245 = vmatpush3.bf16.msra.mxu1 %v3769_v9  ;;  %v1192_v31 = vrot.slane %v1190_v27, 1  ;;  %v1195_v32 = vrot.slane %v1193_v28, 2  ;;  %v1204_v42 = vor.u32 %v1203_v34, %v1200_v33  ;;  %v517_v57 = vrot.slane %v515_v49, 1  ;;  %v3792_v17 = vld [vmem:[%s4695_s1 + $0x18] sm:$0xff]  }
  0x18   : > { %3389 = vmatpush3.bf16.msra.mxu0 %v3770_v10  ;;  %3246 = vmatprep.subr.bf16.mxu1 %v3877_v1  ;;  %v505_v38 = vor.u32 %v504_v29, %v500_v26  ;;  %v1209_v50 = vrot.slane %v1207_v43, 1  ;;  %v1212_v52 = vrot.slane %v1210_v44, 2  ;;  %v1216_v60 = vshrl.u32 %v4066_v53, 16  ;;  %v4104_v10 = vld [vmem:[%s3985_s16 + $0x20] sm:$0xff]   ;;  %v3799_v43 = vld [vmem:[%s4695_s1 + $0x170] sm:$0xff]  }
  0x19   : > { %3390 = vmatprep.subr.bf16.mxu0 %v3877_v1  ;;  %v1196_v41 = vor.u32 %v1195_v32, %v1192_v31  ;;  %v1219_v61 = vshll.u32 %v4066_v53, 16  ;;  %v518_v63 = vsel %vm498_vm1, %v513_v56, %v517_v57  ;;  %v519_v0 = vshrl.u32 %v4045_v37, 16  ;;  %v4125_v26 = vld [vmem:[%s3985_s16 + $0x2c] ss:$0 sps:$4 sm:$0x33]  }
  0x1a   : > { %v510_v46 = vsel %vm498_vm1, %v505_v38, %v509_v39  ;;  %v1213_v59 = vor.u32 %v1212_v52, %v1209_v50  ;;  %v523_v2 = vshll.u32 %v4076_v58, 16  ;;  %v1218_v5 = vrot.slane %v1216_v60, 1  ;;  %v4134_v31 = vld [vmem:[%s3985_s16 + $0x28] ss:$0 sps:$4 sm:$0x11]  }
  0x1b   : > { %3247 = vmatpush3.bf16.msra.mxu1 %v3771_v11  ;;  %v1205_v51 = vsel %vm1188_vm2, %v1196_v41, %v1204_v42  ;;  %v1221_v6 = vrot.slane %v1219_v61, 2  ;;  %v521_v8 = vor.u32 %v519_v0, %v517_v57  ;;  %v1228_v20 = vshll.u32 %v4098_v7, 16  ;;  %v3797_v32 = vld [vmem:[%s4695_s1 + $0x168] sm:$0xff]   ;;  %v1378_v57 = vld [vmem:[%s3985_s16 + $0x4] sm:$0xc] }
  0x1c   : > { %3391 = vmatpush3.bf16.msra.mxu0 %v3772_v19  ;;  %3248 = vmatprep.subr.bf16.mxu1 %v3877_v1  ;;  %v1214_v3 = vsel %vm1188_vm2, %v1204_v42, %v1213_v59  ;;  %v525_v9 = vrot.slane %v523_v2, 1  ;;  %v1225_v19 = vshrl.u32 %v4098_v7, 16  ;;  %v527_v23 = vshrl.u32 %v4076_v58, 16 }
  0x1d   : > { %3392 = vmatprep.subr.bf16.mxu0 %v3877_v1  ;;  %v1222_v11 = vor.u32 %v1221_v6, %v1218_v5  ;;  %v1230_v29 = vrot.slane %v1228_v20, 2  ;;  %v1234_v38 = vshrl.u32 %v4125_v26, 16  ;;  %v1237_v39 = vshll.u32 %v4125_v26, 16 }
  0x1e   : > { %v526_v24 = vsel %vm498_vm1, %v521_v8, %v525_v9  ;;  %v1227_v28 = vrot.slane %v1225_v19, 1  ;;  %v529_v33 = vor.u32 %v527_v23, %v525_v9  ;;  %v818_v41 = vrot.slane %v4006_v15, 1  ;;  %v795_v9 = vld [vmem:[%s3985_s16] sm:$0xe]  ;;  %v3808_v23 = vld [vmem:[%s4695_s1 + $0x188] sm:$0xff]  }
  0x1f   : > { %3249 = vmatpush3.bf16.msra.mxu1 %v3773_v22  ;;  %v3793_v22 = vld [vmem:[%s4695_s1 + $0x160] sm:$0xff]   ;;  %v1223_v27 = vsel %vm1188_vm2, %v1213_v59, %v1222_v11  ;;  %v820_v42 = vrot.slane %v4045_v37, 1  ;;  %v1236_v49 = vrot.slane %v1234_v38, 1  ;;  %v1239_v50 = vrot.slane %v1237_v39, 2  ;;  %v3819_v39 = vld [vmem:[%s4695_s1 + $0xb0] sm:$0xff]  }
  0x20   : > { %3393 = vmatpush3.bf16.msra.mxu0 %v3774_v25  ;;  %3250 = vmatprep.subr.bf16.mxu1 %v3877_v1  ;;  %v531_v25 = vshll.u32 %v4104_v10, 16  ;;  %v1020_v52 = vrot.slane %v4021_v21, 1  ;;  %v1023_v59 = vrot.slane %v4048_v40, 1  ;;  %v3803_v21 = vld [vmem:[%s4695_s1 + $0x178] sm:$0xff]   ;;  %v1027_v2 = vrot.slane %v4098_v7, 1 }
  0x21   : > { %3394 = vmatprep.subr.bf16.mxu0 %v3877_v1  ;;  %v1240_v60 = vor.u32 %v1239_v50, %v1236_v49  ;;  %v2904_v8 = vcombine.low %v1378_v57, %v4013_v18  ;;  %v1401_v18 = vrot.slane %v4009_v16, 2  ;;  %v1409_v38 = vrot.slane %v4125_v26, 2  ;;  %v3821_v49 = vld [vmem:[%s4695_s1 + $0xb8] sm:$0xff]   ;;  %v3858_v50 = vld [vmem:[%s3985_s16 + $0x2c] ss:$0 sps:$4 sm:$0x11]  }
  0x22   : > { %v533_v34 = vrot.slane %v531_v25, 1  ;;  %v1029_v57 = vrot.slane %v3858_v50, 1  ;;  %v826_v50 = vrot.slane %v4134_v31, 1 }
  0x23   : > { %3251 = vmatpush3.bf16.msra.mxu1 %v3775_v35  ;;  %v3798_v35 = vld [vmem:[%s4695_s1 + $0x28] sm:$0xff]  }
  0x24   : > { %3395 = vmatpush3.bf16.msra.mxu0 %v3776_v36  ;;  %3272 = vmatprep.subr.bf16.mxu1 %v3877_v1  ;;  %v1231_v36 = vor.u32 %v1230_v29, %v1227_v28  ;;  %v534_v44 = vsel %vm498_vm1, %v529_v33, %v533_v34  ;;  %v1405_v28 = vrot.slane %v4066_v53, 2  ;;  %v3813_v29 = vld [vmem:[%s4695_s1 + $0x98] sm:$0xff]   ;;  %v3816_v33 = vld [vmem:[%s4695_s1 + $0x1a8] sm:$0xff]  }
  0x25   : > { %3416 = vmatprep.subr.bf16.mxu0 %v3877_v1 }
  0x26   : > { %3253 = vmatmul.mubr.bf16.vlgmr.msra.gmra.mrb[0].mxu1 %v510_v46  ;;  %v539_v46 = vshll.u32 %v4134_v31, 16  ;;  %v1232_v48 = vsel %vm1188_vm2, %v1222_v11, %v1231_v36  ;;  %v1241_v6 = vsel %vm1188_vm2, %v1231_v36, %v1240_v60  ;;  %v2824_v11 = vcombine.low %v795_v9, %v4000_v13  ;;  %v3807_v13 = vld [vmem:[%s4695_s1 + $0x80] sm:$0xff]   ;;  %v4287_v36 = vld [vmem:[%s3985_s16 + $0x10] sm:$0xff]   ;;  %v3844_v31 = vld [vmem:[%s4695_s1 + $0xf8] sm:$0xff]  }
  0x27   : > { %3397 = vmatmul.mubr.bf16.vlgmr.msra.gmra.mrb[0].mxu0 %v1205_v51  ;;  %3273 = vmatpush3.bf16.msra.mxu1 %v3782_v47  ;;  %v4161_v47 = vsel %vm816_vm3, %v818_v41, %v820_v42  ;;  %v3802_v51 = vld [vmem:[%s4695_s1 + $0x30] sm:$0xff]   ;;  %v1984_v26 = vrot.slane %v4287_v36, 3  ;;  %v3879_v9 = vmov 0  }
  0x28   : > { %3417 = vmatpush3.bf16.msra.mxu0 %v3781_v45  ;;  %3256 = vmatprep.mubr.msk.bf16.mxu1 %vm3878_vm0, %v3877_v1  ;;  %v535_v45 = vshrl.u32 %v4104_v10, 16  ;;  %v541_v56 = vrot.slane %v539_v46, 1  ;;  %v3820_v46 = vld [vmem:[%s4695_s1 + $0x1b8] sm:$0xff]  }
  0x29   : > { %3418 = vmatprep.subr.bf16.mxu0 %v3877_v1  ;;  %3400 = vmatprep.mubr.msk.bf16.mxu0 %vm3878_vm0, %v3877_v1 }
  0x2a   : > { %3274 = vmatprep.subr.bf16.mxu1 %v3877_v1  ;;  %3759 = vset.pattern.permute.xlu0 %v3879_v9 }
  0x2b   : > { %3275 = vmatpush3.bf16.msra.mxu1 %v3786_v55  ;;  %v537_v55 = vor.u32 %v535_v45, %v533_v34  ;;  %v3817_v34 = vld [vmem:[%s4695_s1 + $0xa8] sm:$0xff]   ;;  %3760 = vset.pattern.permute.xlu1 %v3879_v9 }
  0x2c   : > { %3419 = vmatpush3.bf16.msra.mxu0 %v3783_v54  ;;  %3276 = vmatprep.subr.bf16.mxu1 %v3877_v1  ;;  %v1021_v54 = vrot.slane %v4009_v16, 1  ;;  %v3809_v16 = vld [vmem:[%s4695_s1 + $0x88] sm:$0xff]  }
  0x2d   : > { %3420 = vmatprep.subr.bf16.mxu0 %v3877_v1 }
  0x2e   : > { %3257 = vmatmul.mubr.bf16.gmra.mrb[4].mxu1 %v518_v63  ;;  %v4181_v61 = vsel %vm816_vm3, %v1020_v52, %v1021_v54  ;;  %v3804_v63 = vld [vmem:[%s4695_s1 + $0x38] sm:$0xff]   ;;  %v4189_v0 = vsel %vm816_vm3, %v1021_v54, %v1023_v59  ;;  %v1547_v52 = vld [vmem:[%s3985_s16 + $0x8] sm:$0xc]  ;;  %v1548_v54 = vld [vmem:[%s3985_s16 + $0xc] sm:$0xf] }
  0x2f   : > { %3401 = vmatmul.mubr.bf16.gmra.mrb[4].mxu0 %v1214_v3  ;;  %3260 = vmatprep.mubr.msk.bf16.mxu1 %vm3878_vm0, %v3877_v1 }
  0x30   : > { %3421 = vmatpush3.bf16.msra.mxu0 %v3787_v62  ;;  %3277 = vmatpush3.bf16.msra.mxu1 %v3788_v4  ;;  %v1025_v62 = vrot.slane %v4066_v53, 1  ;;  %v542_v4 = vsel %vm498_vm1, %v537_v55, %v541_v56  ;;  %v3815_v53 = vld [vmem:[%s4695_s1 + $0xa0] sm:$0xff]   ;;  %v4330_v56 = vld [vmem:[%s3985_s16 + $0x28] sm:$0xff]  }
  0x31   : > { %3404 = vmatprep.mubr.msk.bf16.mxu0 %vm3878_vm0, %v3877_v1  ;;  %3422 = vmatprep.subr.bf16.mxu0 %v3877_v1  ;;  %v1990_v60 = vrot.slane %v4330_v56, 3 }
  0x32   : > { %3278 = vmatprep.subr.bf16.mxu1 %v3877_v1  ;;  %v4194_v3 = vsel %vm816_vm3, %v1023_v59, %v1025_v62  ;;  %v4200_v5 = vsel %vm816_vm3, %v1025_v62, %v1027_v2  ;;  %v4336_v59 = vsel %vm816_vm3, %v1027_v2, %v1029_v57  ;;  %v4346_v62 = vcombine.low %v1547_v52, %v1548_v54  ;;  %v3843_v57 = vld [vmem:[%s4695_s1 + $0x1f8] sm:$0xff]  }
  0x34   : > { %3423 = vmatpush3.bf16.msra.mxu0 %v3791_v12  ;;  %3279 = vmatpush3.bf16.msra.mxu1 %v3792_v17  ;;  %v817_v12 = vrot.slane %v2824_v11, 1  ;;  %v1400_v17 = vrot.slane %v2904_v8, 2  ;;  %v1604_v8 = vrot.slane %v4287_v36, 2  ;;  %v1773_v52 = vshrl.u32 %v4346_v62, 16 }
  0x35   : > { %3424 = vmatprep.subr.bf16.mxu0 %v3877_v1  ;;  %3280 = vmatprep.subr.bf16.mxu1 %v3877_v1 }
  0x36   : > { %3261 = vmatmul.mubr.bf16.gmra.mrb[8].mxu1 %v526_v24  ;;  %v4214_v19 = vsel %vm816_vm3, %v817_v12, %v818_v41  ;;  %v1402_v20 = vsel %vm1399_vm4, %v1400_v17, %v1401_v18  ;;  %v1403_v24 = vrot.slane %v4048_v40, 2  ;;  %v3811_v40 = vld [vmem:[%s4695_s1 + $0x90] sm:$0xff]   ;;  %v4294_v41 = vld [vmem:[%s3985_s16 + $0x18] sm:$0xff]   ;;  %v2407_v12 = vld [vmem:[%s4698_s4] sm:$0xff] }
  0x37   : > { %3405 = vmatmul.mubr.bf16.gmra.mrb[8].mxu0 %v1223_v27  ;;  %3264 = vmatprep.mubr.msk.bf16.mxu1 %vm3878_vm0, %v3877_v1  ;;  %v3812_v27 = vld [vmem:[%s4695_s1 + $0x198] sm:$0xff]   ;;  %v1986_v45 = vrot.slane %v4294_v41, 3  ;;  %v2409_v17 = vld [vmem:[%s4698_s4 + $0x10] sm:$0xff] }
  0x38   : > { %3425 = vmatpush3.bf16.msra.mxu0 %v3793_v22  ;;  %3408 = vmatprep.mubr.msk.bf16.mxu0 %vm3878_vm0, %v3877_v1  ;;  %v3806_v22 = vld [vmem:[%s4695_s1 + $0x180] sm:$0xff]   ;;  %v1404_v25 = vsel %vm1399_vm4, %v1401_v18, %v1403_v24 }
  0x39   : > { %3281 = vmatpush3.bf16.msra.mxu1 %v3796_v30  ;;  %3426 = vmatprep.subr.bf16.mxu0 %v3877_v1  ;;  %v3814_v30 = vld [vmem:[%s4695_s1 + $0x1a0] sm:$0xff]  }
  0x3a   : > { %3282 = vmatprep.subr.bf16.mxu1 %v3877_v1  ;;  %2419 = vperm.xlu0 %3759, %v2407_v12   ;;  %v3826_v18 = vld [vmem:[%s4695_s1 + $0xc0] sm:$0xff]  }
  0x3b   : > { %2429 = vperm.xlu1 %3760, %v2409_v17  }
  0x3c   : > { %3427 = vmatpush3.bf16.msra.mxu0 %v3797_v32  ;;  %v1407_v32 = vrot.slane %v4098_v7, 2 }
  0x3d   : > { %3283 = vmatpush3.bf16.msra.mxu1 %v3798_v35  ;;  %3428 = vmatprep.subr.bf16.mxu0 %v3877_v1  ;;  %v3818_v35 = vld [vmem:[%s4695_s1 + $0x1b0] sm:$0xff]  }
  0x3e   : > { %3265 = vmatmul.mubr.bf16.gmra.mrb[12].mxu1 %v534_v44  ;;  %3284 = vmatprep.subr.bf16.mxu1 %v3877_v1  ;;  %v4298_v44 = vld [vmem:[%s3985_s16 + $0x20] sm:$0xff]  }
  0x3f   : > { %3409 = vmatmul.mubr.bf16.gmra.mrb[12].mxu0 %v1232_v48  ;;  %3268 = vmatprep.mubr.msk.bf16.mxu1 %vm3878_vm0, %v3877_v1  ;;  %v1988_v48 = vrot.slane %v4298_v44, 3 }
  0x40   : > { %3412 = vmatprep.mubr.msk.bf16.mxu0 %vm3878_vm0, %v3877_v1  ;;  %3429 = vmatpush3.bf16.msra.mxu0 %v3799_v43  ;;  %v1408_v43 = vsel %vm1399_vm4, %v1405_v28, %v1407_v32 }
  0x41   : > { %3285 = vmatpush3.bf16.msra.mxu1 %v3802_v51  ;;  %3430 = vmatprep.subr.bf16.mxu0 %v3877_v1  ;;  %v4319_v51 = vsel %vm1982_vm5, %v1984_v26, %v1986_v45  ;;  %v4326_v55 = vsel %vm1982_vm5, %v1986_v45, %v1988_v48  ;;  %v4353_v2 = vsel %vm1982_vm5, %v1988_v48, %v1990_v60  ;;  %v3841_v48 = vld [vmem:[%s3985_s16 + $0x30] ss:$0 sps:$4 sm:$0x33]  }
  0x42   : > { %3286 = vmatprep.subr.bf16.mxu1 %v3877_v1 }
  0x44   : > { %3431 = vmatpush3.bf16.msra.mxu0 %v3803_v21  ;;  %v1410_v21 = vsel %vm1399_vm4, %v1407_v32, %v1409_v38  ;;  %v2416_v38 = vld [vmem:[%s4698_s4 + $0x48] sm:$0xff] }
  0x45   : > { %3287 = vmatpush3.bf16.msra.mxu1 %v3804_v63  ;;  %3452 = vmatprep.subr.bf16.mxu0 %v3877_v1  ;;  %v1961_v63 = vld [vmem:[%s3985_s16 + $0x8] sm:$0x8] }
  0x46   : > { %3269 = vmatmul.mubr.bf16.gmra.mrb[16].mxu1 %v542_v4  ;;  %3308 = vmatprep.subr.bf16.mxu1 %v3877_v1  ;;  %v2984_v7 = vcombine.low %v1961_v63, %v1548_v54  ;;  %v1612_v54 = vrot.slane %v3841_v48, 2  ;;  %v1781_v63 = vshrl.u32 %v4287_v36, 16  ;;  %v3860_v48 = vld [vmem:[%s4697_s3 + $0x30] sm:$0xff]  }
  0x47   : > { %3413 = vmatmul.mubr.bf16.gmra.mrb[16].mxu0 %v1241_v6  ;;  %3288 = vmatprep.mubr.msk.bf16.mxu1 %vm3878_vm0, %v3877_v1  ;;  %v1603_v6 = vrot.slane %v4346_v62, 2 }
  0x48   : > { %3432 = vmatprep.mubr.msk.bf16.mxu0 %vm3878_vm0, %v3877_v1  ;;  %v1983_v4 = vrot.slane %v2984_v7, 3  ;;  %v1784_v7 = vshll.u32 %v4287_v36, 16  ;;  %v1783_v9 = vrot.slane %v1781_v63, 2 }
  0x4a   : > { %v4364_v11 = vsel %vm1982_vm5, %v1983_v4, %v1984_v26  ;;  %v1786_v12 = vrot.slane %v1784_v7, 3 }
  0x4c   : > { %v1787_v17 = vor.u32 %v1786_v12, %v1783_v9 }
  0x4e   : > { %3289 = vmatmul.mubr.bf16.vlgmr.msra.gmra.mrb[0].mxu1 %v4003_v14  ;;  %v3810_v14 = vld [vmem:[%s4695_s1 + $0x190] sm:$0xff]  }
  0x4f   : > { %3433 = vmatmul.mubr.bf16.vlgmr.msra.gmra.mrb[0].mxu0 %v1402_v20  ;;  %3309 = vmatpush3.bf16.msra.mxu1 %v3807_v13  ;;  %v2408_v13 = vld [vmem:[%s4698_s4 + $0x8] sm:$0xff]  ;;  %v1605_v20 = vsel %vm1399_vm4, %v1603_v6, %v1604_v8  ;;  %v1775_v6 = vrot.slane %v1773_v52, 2 }
  0x50   : > { %3453 = vmatpush3.bf16.msra.mxu0 %v3806_v22  ;;  %3292 = vmatprep.mubr.msk.bf16.mxu1 %vm3878_vm0, %v3877_v1  ;;  %v3825_v22 = vld [vmem:[%s4695_s1 + $0x1c0] sm:$0xff]  }
  0x51   : > { %3454 = vmatprep.subr.bf16.mxu0 %v3877_v1  ;;  %3436 = vmatprep.mubr.msk.bf16.mxu0 %vm3878_vm0, %v3877_v1 }
  0x52   : > { %3310 = vmatprep.subr.bf16.mxu1 %v3877_v1  ;;  %2424 = vperm.xlu0 %3759, %v2408_v13   ;;  %v1793_v13 = vshll.u32 %v4294_v41, 16 }
  0x53   : > { %3311 = vmatpush3.bf16.msra.mxu1 %v3809_v16  ;;  %v3829_v16 = vld [vmem:[%s4695_s1 + $0xc8] sm:$0xff]  }
  0x54   : > { %3455 = vmatpush3.bf16.msra.mxu0 %v3808_v23  ;;  %3312 = vmatprep.subr.bf16.mxu1 %v3877_v1  ;;  %v2410_v23 = vld [vmem:[%s4698_s4 + $0x18] sm:$0xff] }
  0x55   : > { %3456 = vmatprep.subr.bf16.mxu0 %v3877_v1  ;;  %2434 = vperm.xlu1 %3760, %v2410_v23  }
  0x56   : > { %3293 = vmatmul.mubr.bf16.gmra.mrb[4].mxu1 %v4006_v15  ;;  %v1406_v15 = vsel %vm1399_vm4, %v1403_v24, %v1405_v28  ;;  %v3827_v24 = vld [vmem:[%s4695_s1 + $0x1c8] sm:$0xff]   ;;  %v3831_v28 = vld [vmem:[%s4695_s1 + $0xd0] sm:$0xff]  }
  0x57   : > { %3437 = vmatmul.mubr.bf16.gmra.mrb[4].mxu0 %v1404_v25  ;;  %3296 = vmatprep.mubr.msk.bf16.mxu1 %vm3878_vm0, %v3877_v1  ;;  %v2412_v25 = vld [vmem:[%s4698_s4 + $0x28] sm:$0xff] }
  0x58   : > { %3457 = vmatpush3.bf16.msra.mxu0 %v3810_v14  ;;  %3313 = vmatpush3.bf16.msra.mxu1 %v3811_v40  ;;  %v2411_v14 = vld [vmem:[%s4698_s4 + $0x20] sm:$0xff] }
  0x59   : > { %3440 = vmatprep.mubr.msk.bf16.mxu0 %vm3878_vm0, %v3877_v1  ;;  %3458 = vmatprep.subr.bf16.mxu0 %v3877_v1 }
  0x5a   : > { %3314 = vmatprep.subr.bf16.mxu1 %v3877_v1  ;;  %2439 = vperm.xlu0 %3759, %v2411_v14  }
  0x5b   : > { %2444 = vperm.xlu1 %3760, %v2412_v25   ;;  %v1799_v25 = vshrl.u32 %v4298_v44, 16 }
  0x5c   : > { %3459 = vmatpush3.bf16.msra.mxu0 %v3812_v27  ;;  %3315 = vmatpush3.bf16.msra.mxu1 %v3813_v29  ;;  %v3830_v27 = vld [vmem:[%s4695_s1 + $0x1d0] sm:$0xff]   ;;  %v822_v29 = vrot.slane %v4076_v58, 1 }
  0x5d   : > { %3460 = vmatprep.subr.bf16.mxu0 %v3877_v1  ;;  %3316 = vmatprep.subr.bf16.mxu1 %v3877_v1 }
  0x5e   : > { %3297 = vmatmul.mubr.bf16.gmra.mrb[8].mxu1 %v4045_v37  ;;  %v823_v32 = vsel %vm816_vm3, %v820_v42, %v822_v29  ;;  %v3837_v37 = vld [vmem:[%s4695_s1 + $0xe0] sm:$0xff]   ;;  %v824_v42 = vrot.slane %v4104_v10, 1 }
  0x5f   : > { %3441 = vmatmul.mubr.bf16.gmra.mrb[8].mxu0 %v1406_v15  ;;  %3300 = vmatprep.mubr.msk.bf16.mxu1 %vm3878_vm0, %v3877_v1  ;;  %v2413_v15 = vld [vmem:[%s4698_s4 + $0x30] sm:$0xff] }
  0x60   : > { %3461 = vmatpush3.bf16.msra.mxu0 %v3814_v30  ;;  %3444 = vmatprep.mubr.msk.bf16.mxu0 %vm3878_vm0, %v3877_v1  ;;  %v1608_v30 = vrot.slane %v4298_v44, 2  ;;  %v825_v26 = vsel %vm816_vm3, %v822_v29, %v824_v42  ;;  %v827_v4 = vsel %vm816_vm3, %v824_v42, %v826_v50  ;;  %v3861_v50 = vld [vmem:[%s4695_s1 + $0x238] sm:$0xff]  }
  0x61   : > { %3317 = vmatpush3.bf16.msra.mxu1 %v3815_v53  ;;  %3462 = vmatprep.subr.bf16.mxu0 %v3877_v1  ;;  %v3833_v53 = vld [vmem:[%s4695_s1 + $0x1d8] sm:$0xff]  }
  0x62   : > { %3318 = vmatprep.subr.bf16.mxu1 %v3877_v1  ;;  %2449 = vperm.xlu0 %3759, %v2413_v15  }
  0x64   : > { %3463 = vmatpush3.bf16.msra.mxu0 %v3816_v33  ;;  %v2415_v33 = vld [vmem:[%s4698_s4 + $0x40] sm:$0xff] }
  0x65   : > { %3319 = vmatpush3.bf16.msra.mxu1 %v3817_v34  ;;  %3464 = vmatprep.subr.bf16.mxu0 %v3877_v1 }
  0x66   : > { %3301 = vmatmul.mubr.bf16.gmra.mrb[12].mxu1 %v4076_v58  ;;  %3320 = vmatprep.subr.bf16.mxu1 %v3877_v1  ;;  %v2414_v58 = vld [vmem:[%s4698_s4 + $0x38] sm:$0xff] }
  0x67   : > { %3445 = vmatmul.mubr.bf16.gmra.mrb[12].mxu0 %v1408_v43  ;;  %3304 = vmatprep.mubr.msk.bf16.mxu1 %vm3878_vm0, %v3877_v1  ;;  %v3838_v43 = vld [vmem:[%s4695_s1 + $0x1e8] sm:$0xff]  }
  0x68   : > { %3448 = vmatprep.mubr.msk.bf16.mxu0 %vm3878_vm0, %v3877_v1  ;;  %3465 = vmatpush3.bf16.msra.mxu0 %v3818_v35  ;;  %v3835_v35 = vld [vmem:[%s4695_s1 + $0x1e0] sm:$0xff]  }
  0x69   : > { %3321 = vmatpush3.bf16.msra.mxu1 %v3819_v39  ;;  %3466 = vmatprep.subr.bf16.mxu0 %v3877_v1  ;;  %v1610_v39 = vrot.slane %v4330_v56, 2 }
  0x6a   : > { %3322 = vmatprep.subr.bf16.mxu1 %v3877_v1  ;;  %2454 = vperm.xlu1 %3760, %v2414_v58  }
  0x6b   : > { %2459 = vperm.xlu0 %3759, %v2415_v33   ;;  %v1611_v45 = vsel %vm1399_vm4, %v1608_v30, %v1610_v39 }
  0x6c   : > { %3467 = vmatpush3.bf16.msra.mxu0 %v3820_v46  ;;  %v3840_v46 = vld [vmem:[%s4695_s1 + $0x1f0] sm:$0xff]  }
  0x6d   : > { %3323 = vmatpush3.bf16.msra.mxu1 %v3821_v49  ;;  %3488 = vmatprep.subr.bf16.mxu0 %v3877_v1  ;;  %v3842_v49 = vld [vmem:[%s4695_s1 + $0xf0] sm:$0xff]  }
  0x6e   : > { %3305 = vmatmul.mubr.bf16.gmra.mrb[16].mxu1 %v4104_v10  ;;  %3344 = vmatprep.subr.bf16.mxu1 %v3877_v1  ;;  %v3839_v10 = vld [vmem:[%s4695_s1 + $0xe8] sm:$0xff]  }
  0x6f   : > { %3449 = vmatmul.mubr.bf16.gmra.mrb[16].mxu0 %v1410_v21  ;;  %3324 = vmatprep.mubr.msk.bf16.mxu1 %vm3878_vm0, %v3877_v1  ;;  %v1776_v21 = vshll.u32 %v4346_v62, 16 }
  0x70   : > { %3468 = vmatprep.mubr.msk.bf16.mxu0 %vm3878_vm0, %v3877_v1  ;;  %2464 = vperm.xlu1 %3760, %v2416_v38   ;;  %v3855_v38 = vld [vmem:[%s4695_s1 + $0x228] sm:$0xff]  }
  0x71   : > { %v1778_v62 = vrot.slane %v1776_v21, 3  ;;  %v3868_v21 = vld [vmem:[%s4342_s12 + $0x20] sm:$0xff]  }
  0x73   : > { %v1779_v36 = vor.u32 %v1778_v62, %v1775_v6 }
  0x76   : > { %3325 = vmatmul.mubr.bf16.vlgmr.msra.gmra.mrb[0].mxu1 %v4214_v19  ;;  %v1606_v19 = vrot.slane %v4294_v41, 2 }
  0x77   : > { %3469 = vmatmul.mubr.bf16.vlgmr.msra.gmra.mrb[0].mxu0 %v1605_v20  ;;  %3345 = vmatpush3.bf16.msra.mxu1 %v3826_v18  ;;  %v1790_v18 = vshrl.u32 %v4294_v41, 16  ;;  %v3846_v20 = vld [vmem:[%s4697_s3] sm:$0xff]   ;;  %v3848_v41 = vld [vmem:[%s4697_s3 + $0x8] sm:$0xff]  }
  0x78   : > { %3489 = vmatpush3.bf16.msra.mxu0 %v3825_v22  ;;  %3328 = vmatprep.mubr.msk.bf16.mxu1 %vm3878_vm0, %v3877_v1  ;;  %v1607_v40 = vsel %vm1399_vm4, %v1604_v8, %v1606_v19  ;;  %v1609_v34 = vsel %vm1399_vm4, %v1606_v19, %v1608_v30  ;;  %v1613_v8 = vsel %vm1399_vm4, %v1610_v39, %v1612_v54  ;;  %v3847_v19 = vld [vmem:[%s4695_s1 + $0x208] sm:$0xff]   ;;  %v3851_v30 = vld [vmem:[%s4695_s1 + $0x218] sm:$0xff]   ;;  %v3864_v54 = vld [vmem:[%s4342_s12] sm:$0xff]  }
  0x79   : > { %3490 = vmatprep.subr.bf16.mxu0 %v3877_v1  ;;  %3472 = vmatprep.mubr.msk.bf16.mxu0 %vm3878_vm0, %v3877_v1  ;;  %v1788_v22 = vsel %vm1771_vm6, %v1779_v36, %v1787_v17  ;;  %v1792_v23 = vrot.slane %v1790_v18, 2 }
  0x7a   : > { %3346 = vmatprep.subr.bf16.mxu1 %v3877_v1 }
  0x7b   : > { %3347 = vmatpush3.bf16.msra.mxu1 %v3829_v16  ;;  %v3845_v16 = vld [vmem:[%s4695_s1 + $0x200] sm:$0xff]  }
  0x7c   : > { %3491 = vmatpush3.bf16.msra.mxu0 %v3827_v24  ;;  %3348 = vmatprep.subr.bf16.mxu1 %v3877_v1  ;;  %v1795_v24 = vrot.slane %v1793_v13, 3 }
  0x7d   : > { %3492 = vmatprep.subr.bf16.mxu0 %v3877_v1 }
  0x7e   : > { %3329 = vmatmul.mubr.bf16.gmra.mrb[4].mxu1 %v4161_v47  ;;  %v3834_v47 = vld [vmem:[%s4695_s1 + $0xd8] sm:$0xff]   ;;  %v1796_v14 = vor.u32 %v1795_v24, %v1792_v23 }
  0x7f   : > { %3473 = vmatmul.mubr.bf16.gmra.mrb[4].mxu0 %v1607_v40  ;;  %3332 = vmatprep.mubr.msk.bf16.mxu1 %vm3878_vm0, %v3877_v1  ;;  %v1802_v40 = vshll.u32 %v4298_v44, 16  ;;  %v3850_v44 = vld [vmem:[%s4697_s3 + $0x10] sm:$0xff]  }
  0x80   : > { %3493 = vmatpush3.bf16.msra.mxu0 %v3830_v27  ;;  %3349 = vmatpush3.bf16.msra.mxu1 %v3831_v28  ;;  %v3849_v27 = vld [vmem:[%s4695_s1 + $0x210] sm:$0xff]   ;;  %v1801_v28 = vrot.slane %v1799_v25, 2 }
  0x81   : > { %3476 = vmatprep.mubr.msk.bf16.mxu0 %vm3878_vm0, %v3877_v1  ;;  %3494 = vmatprep.subr.bf16.mxu0 %v3877_v1  ;;  %v1804_v29 = vrot.slane %v1802_v40, 3 }
  0x82   : > { %3350 = vmatprep.subr.bf16.mxu1 %v3877_v1 }
  0x83   : > { %v1805_v15 = vor.u32 %v1804_v29, %v1801_v28 }
  0x84   : > { %3495 = vmatpush3.bf16.msra.mxu0 %v3833_v53  ;;  %3351 = vmatpush3.bf16.msra.mxu1 %v3834_v47  ;;  %v1808_v53 = vshrl.u32 %v4330_v56, 16  ;;  %v1811_v47 = vshll.u32 %v4330_v56, 16 }
  0x85   : > { %3496 = vmatprep.subr.bf16.mxu0 %v3877_v1  ;;  %3352 = vmatprep.subr.bf16.mxu1 %v3877_v1  ;;  %v1806_v58 = vsel %vm1771_vm6, %v1796_v14, %v1805_v15 }
  0x86   : > { %3333 = vmatmul.mubr.bf16.gmra.mrb[8].mxu1 %v823_v32  ;;  %v3853_v32 = vld [vmem:[%s4695_s1 + $0x220] sm:$0xff]   ;;  %v1810_v33 = vrot.slane %v1808_v53, 2 }
  0x87   : > { %3477 = vmatmul.mubr.bf16.gmra.mrb[8].mxu0 %v1609_v34  ;;  %3336 = vmatprep.mubr.msk.bf16.mxu1 %vm3878_vm0, %v3877_v1  ;;  %v1813_v34 = vrot.slane %v1811_v47, 3 }
  0x88   : > { %3497 = vmatpush3.bf16.msra.mxu0 %v3835_v35  ;;  %3480 = vmatprep.mubr.msk.bf16.mxu0 %vm3878_vm0, %v3877_v1  ;;  %v4556_v35 = vld [vmem:[%s3985_s16 + $0x30] ss:$0 sps:$4 sm:$0x77]   ;;  %s4657_s16 = scalar_lea.vmem %s4699_s5, %s4309_s27 }
  0x89   : > { %3353 = vmatpush3.bf16.msra.mxu1 %v3837_v37  ;;  %3498 = vmatprep.subr.bf16.mxu0 %v3877_v1  ;;  %v3854_v37 = vld [vmem:[%s4697_s3 + $0x20] sm:$0xff]   ;;  %v1814_v42 = vor.u32 %v1813_v34, %v1810_v33  ;;  %v1817_v39 = vshrl.u32 %v4556_v35, 16 }
  0x8a   : > { %3354 = vmatprep.subr.bf16.mxu1 %v3877_v1 }
  0x8c   : > { %3499 = vmatpush3.bf16.msra.mxu0 %v3838_v43  ;;  %v1820_v43 = vshll.u32 %v4556_v35, 16 }
  0x8d   : > { %3355 = vmatpush3.bf16.msra.mxu1 %v3839_v10  ;;  %3500 = vmatprep.subr.bf16.mxu0 %v3877_v1  ;;  %v1815_v10 = vsel %vm1771_vm6, %v1805_v15, %v1814_v42 }
  0x8e   : > { %3337 = vmatmul.mubr.bf16.gmra.mrb[12].mxu1 %v825_v26  ;;  %3356 = vmatprep.subr.bf16.mxu1 %v3877_v1  ;;  %v3857_v26 = vld [vmem:[%s4695_s1 + $0x230] sm:$0xff]  }
  0x8f   : > { %3481 = vmatmul.mubr.bf16.gmra.mrb[12].mxu0 %v1611_v45  ;;  %3340 = vmatprep.mubr.msk.bf16.mxu1 %vm3878_vm0, %v3877_v1  ;;  %v1819_v45 = vrot.slane %v1817_v39, 2 }
  0x90   : > { %3484 = vmatprep.mubr.msk.bf16.mxu0 %vm3878_vm0, %v3877_v1  ;;  %3501 = vmatpush3.bf16.msra.mxu0 %v3840_v46  ;;  %v1822_v46 = vrot.slane %v1820_v43, 3 }
  0x91   : > { %3357 = vmatpush3.bf16.msra.mxu1 %v3842_v49  ;;  %3502 = vmatprep.subr.bf16.mxu0 %v3877_v1 }
  0x92   : > { %3358 = vmatprep.subr.bf16.mxu1 %v3877_v1  ;;  %v1823_v49 = vor.u32 %v1822_v46, %v1819_v45 }
  0x94   : > { %3503 = vmatpush3.bf16.msra.mxu0 %v3843_v57  ;;  %v1824_v52 = vsel %vm1771_vm6, %v1814_v42, %v1823_v49  ;;  %v3865_v57 = vld [vmem:[%s4342_s12 + $0x8] sm:$0xff]  }
  0x95   : > { %3359 = vmatpush3.bf16.msra.mxu1 %v3844_v31  ;;  %3524 = vmatprep.subr.bf16.mxu0 %v3877_v1 }
  0x96   : > { %3341 = vmatmul.mubr.bf16.gmra.mrb[16].mxu1 %v827_v4  ;;  %3560 = vmatprep.subr.bf16.mxu1 %v3877_v1 }
  0x97   : > { %3485 = vmatmul.mubr.bf16.gmra.mrb[16].mxu0 %v1613_v8  ;;  %3360 = vmatprep.mubr.msk.bf16.mxu1 %vm3878_vm0, %v3877_v1 }
  0x98   : > { %3504 = vmatprep.mubr.msk.bf16.mxu0 %vm3878_vm0, %v3877_v1 }
  0x9e   : > { %3361 = vmatmul.mubr.bf16.vlgmr.msra.gmra.mrb[0].mxu1 %v4181_v61  ;;  %v1797_v61 = vsel %vm1771_vm6, %v1787_v17, %v1796_v14 }
  0x9f   : > { %3505 = vmatmul.mubr.bf16.vlgmr.msra.gmra.mrb[0].mxu0 %v1788_v22  ;;  %3561 = vmatpush3.bf16.msra.mxu1 %v3846_v20 }
  0xa0   : > { %3525 = vmatpush3.bf16.msra.mxu0 %v3845_v16  ;;  %3364 = vmatprep.mubr.msk.bf16.mxu1 %vm3878_vm0, %v3877_v1 }
  0xa1   : > { %3526 = vmatprep.subr.bf16.mxu0 %v3877_v1  ;;  %3508 = vmatprep.mubr.msk.bf16.mxu0 %vm3878_vm0, %v3877_v1 }
  0xa2   : > { %3562 = vmatprep.subr.bf16.mxu1 %v3877_v1 }
  0xa3   : > { %3563 = vmatpush3.bf16.msra.mxu1 %v3848_v41 }
  0xa4   : > { %3527 = vmatpush3.bf16.msra.mxu0 %v3847_v19  ;;  %3564 = vmatprep.subr.bf16.mxu1 %v3877_v1 }
  0xa5   : > { %3528 = vmatprep.subr.bf16.mxu0 %v3877_v1 }
  0xa6   : > { %3365 = vmatmul.mubr.bf16.gmra.mrb[4].mxu1 %v4189_v0  ;;  %v3852_v0 = vld [vmem:[%s4697_s3 + $0x18] sm:$0xff]  }
  0xa7   : > { %3509 = vmatmul.mubr.bf16.gmra.mrb[4].mxu0 %v1797_v61  ;;  %3368 = vmatprep.mubr.msk.bf16.mxu1 %vm3878_vm0, %v3877_v1 }
  0xa8   : > { %3529 = vmatpush3.bf16.msra.mxu0 %v3849_v27  ;;  %3512 = vmatprep.mubr.msk.bf16.mxu0 %vm3878_vm0, %v3877_v1 }
  0xa9   : > { %3530 = vmatprep.subr.bf16.mxu0 %v3877_v1  ;;  %3565 = vmatpush3.bf16.msra.mxu1 %v3850_v44 }
  0xaa   : > { %3566 = vmatprep.subr.bf16.mxu1 %v3877_v1 }
  0xac   : > { %3531 = vmatpush3.bf16.msra.mxu0 %v3851_v30 }
  0xad   : > { %3532 = vmatprep.subr.bf16.mxu0 %v3877_v1  ;;  %3567 = vmatpush3.bf16.msra.mxu1 %v3852_v0 }
  0xae   : > { %3369 = vmatmul.mubr.bf16.gmra.mrb[8].mxu1 %v4194_v3  ;;  %3568 = vmatprep.subr.bf16.mxu1 %v3877_v1  ;;  %v3856_v3 = vld [vmem:[%s4697_s3 + $0x28] sm:$0xff]  }
  0xaf   : > { %3513 = vmatmul.mubr.bf16.gmra.mrb[8].mxu0 %v1806_v58  ;;  %3372 = vmatprep.mubr.msk.bf16.mxu1 %vm3878_vm0, %v3877_v1 }
  0xb0   : > { %3533 = vmatpush3.bf16.msra.mxu0 %v3853_v32  ;;  %3516 = vmatprep.mubr.msk.bf16.mxu0 %vm3878_vm0, %v3877_v1 }
  0xb1   : > { %3534 = vmatprep.subr.bf16.mxu0 %v3877_v1  ;;  %3569 = vmatpush3.bf16.msra.mxu1 %v3854_v37 }
  0xb2   : > { %3570 = vmatprep.subr.bf16.mxu1 %v3877_v1 }
  0xb4   : > { %3535 = vmatpush3.bf16.msra.mxu0 %v3855_v38 }
  0xb5   : > { %3571 = vmatpush3.bf16.msra.mxu1 %v3856_v3  ;;  %3536 = vmatprep.subr.bf16.mxu0 %v3877_v1 }
  0xb6   : > { %3373 = vmatmul.mubr.bf16.gmra.mrb[12].mxu1 %v4200_v5  ;;  %3572 = vmatprep.subr.bf16.mxu1 %v3877_v1  ;;  %v3862_v5 = vld [vmem:[%s4697_s3 + $0x38] sm:$0xff]  }
  0xb7   : > { %3517 = vmatmul.mubr.bf16.gmra.mrb[12].mxu0 %v1815_v10  ;;  %3376 = vmatprep.mubr.msk.bf16.mxu1 %vm3878_vm0, %v3877_v1 }
  0xb8   : > { %3520 = vmatprep.mubr.msk.bf16.mxu0 %vm3878_vm0, %v3877_v1  ;;  %3537 = vmatpush3.bf16.msra.mxu0 %v3857_v26 }
  0xb9   : > { %3573 = vmatpush3.bf16.msra.mxu1 %v3860_v48  ;;  %3538 = vmatprep.subr.bf16.mxu0 %v3877_v1  ;;  %v2420_v16 = vpop.permute.xlu0 %2419 }
  0xba   : > { %3574 = vmatprep.subr.bf16.mxu1 %v3877_v1  ;;  %v2430_v34 = vpop.permute.xlu1 %2429 }
  0xbc   : > { %3539 = vmatpush3.bf16.msra.mxu0 %v3861_v50 }
  0xbd   : > { %3575 = vmatpush3.bf16.msra.mxu1 %v3862_v5 }
  0xbe   : > { %3377 = vmatmul.mubr.bf16.gmra.mrb[16].mxu1 %v4336_v59  ;;  %v3866_v59 = vld [vmem:[%s4342_s12 + $0x10] sm:$0xff]  }
  0xbf   : > { %3521 = vmatmul.mubr.bf16.gmra.mrb[16].mxu0 %v1824_v52  ;;  %3576 = vmatprep.mubr.msk.bf16.mxu1 %vm3878_vm0, %v3877_v1 }
  0xc0   : > { %3540 = vmatprep.mubr.msk.bf16.mxu0 %vm3878_vm0, %v3877_v1 }
  0xc6   : > { %3577 = vmatmul.mubr.bf16.vlgmr.msra.gmra.mrb[20].mxu1 %v3864_v54 }
  0xc7   : > { %3541 = vmatmul.mubr.bf16.vlgmr.msra.gmra.mrb[0].mxu0 %v4364_v11  ;;  %3580 = vmatprep.mubr.msk.bf16.mxu1 %vm3878_vm0, %v3877_v1  ;;  %v3867_v11 = vld [vmem:[%s4342_s12 + $0x18] sm:$0xff]  }
  0xc8   : > { %3544 = vmatprep.mubr.msk.bf16.mxu0 %vm3878_vm0, %v3877_v1 }
  0xce   : > { %3581 = vmatmul.mubr.bf16.gmra.mrb[24].mxu1 %v3865_v57 }
  0xcf   : > { %3545 = vmatmul.mubr.bf16.gmra.mrb[4].mxu0 %v4319_v51  ;;  %3584 = vmatprep.mubr.msk.bf16.mxu1 %vm3878_vm0, %v3877_v1  ;;  %v1992_v51 = vrot.slane %v4556_v35, 3 }
  0xd0   : > { %3548 = vmatprep.mubr.msk.bf16.mxu0 %vm3878_vm0, %v3877_v1 }
  0xd1   : > { %v2425_v41 = vpop.permute.xlu0 %2424 }
  0xd6   : > { %3585 = vmatmul.mubr.bf16.gmra.mrb[28].mxu1 %v3866_v59 }
  0xd7   : > { %3549 = vmatmul.mubr.bf16.gmra.mrb[8].mxu0 %v4326_v55  ;;  %3588 = vmatprep.mubr.msk.bf16.mxu1 %vm3878_vm0, %v3877_v1  ;;  %v1993_v55 = vsel %vm1982_vm5, %v1990_v60, %v1992_v51 }
  0xd8   : > { %3552 = vmatprep.mubr.msk.bf16.mxu0 %vm3878_vm0, %v3877_v1 }
  0xde   : > { %3589 = vmatmul.mubr.bf16.gmra.mrb[32].mxu1 %v3867_v11 }
  0xdf   : > { %3553 = vmatmul.mubr.bf16.gmra.mrb[12].mxu0 %v4353_v2  ;;  %3592 = vmatprep.mubr.msk.bf16.mxu1 %vm3878_vm0, %v3877_v1 }
  0xe0   : > { %3556 = vmatprep.mubr.msk.bf16.mxu0 %vm3878_vm0, %v3877_v1 }
  0xe6   : > { %3593 = vmatmul.mubr.bf16.gmra.mrb[36].mxu1 %v3868_v21  ;;  %v2435_v21 = vpop.permute.xlu1 %2434 }
  0xe7   : > { %3557 = vmatmul.mubr.bf16.gmra.mrb[16].mxu0 %v1993_v55 }
 0x171   : > { %v1118_v63 = vpop.f32.mrb[0].mxu1 }
 0x172   : > { %v3362_v7 = vpop.f32.mrb[1].mxu1 }
 0x173   : > { %v1121_v31 = vpop.f32.mrb[2].mxu1 }
 0x174   : > { %v3363_v4 = vpop.f32.mrb[3].mxu1 }
 0x179   : > { %v1126_v2 = vpop.f32.mrb[4].mxu1 }
 0x17a   : > { %v3366_v6 = vpop.f32.mrb[5].mxu1 }
 0x17b   : > { %v1129_v8 = vpop.f32.mrb[6].mxu1  ;;  %v2440_v6 = vpop.permute.xlu0 %2439 }
 0x17c   : > { %v3367_v62 = vpop.f32.mrb[7].mxu1 }
 0x181   : > { %v4635_v9 = vpop.f32.mrb[8].mxu1 }
 0x182   : > { %v3370_v1 = vpop.f32.mrb[9].mxu1 }
 0x183   : > { %v4637_v12 = vpop.f32.mrb[10].mxu1 }
 0x184   : > { %v3371_v36 = vpop.f32.mrb[11].mxu1 }
 0x189   : > { %v4639_v17 = vpop.f32.mrb[12].mxu1 }
 0x18a   : > { %v3374_v56 = vpop.f32.mrb[13].mxu1 }
 0x18b   : > { %v4641_v60 = vpop.f32.mrb[14].mxu1 }
 0x18c   : > { %v3375_v18 = vpop.f32.mrb[15].mxu1 }
 0x191   : > { %v4643_v13 = vpop.f32.mrb[16].mxu1 }
 0x192   : > { %v3378_v20 = vpop.f32.mrb[17].mxu1 }
 0x193   : > { %v4645_v22 = vpop.f32.mrb[18].mxu1 }
 0x194   : > { %v3379_v23 = vpop.f32.mrb[19].mxu1 }
 0x199   : > { %v2268_v24 = vpop.f32.mrb[20].mxu1 }
 0x19a   : > { %v2081_v19 = vpop.f32.mrb[0].mxu0  ;;  %v2535_v14 = vmul.f32 %v2268_v24, %v2268_v24  ;;  %v3578_v25 = vpop.f32.mrb[21].mxu1 }
 0x19b   : > { %v3596_v40 = vadd.f32 %v2081_v19, %v1118_v63  ;;  %v3542_v61 = vpop.f32.mrb[1].mxu0  ;;  %v2271_v27 = vpop.f32.mrb[22].mxu1 }
 0x19c   : > { %v2084_v28 = vpop.f32.mrb[2].mxu0  ;;  %v3076_v29 = vpack.c.bf16 %v2271_v27, %v2268_v24  ;;  %v2519_v44 = vadd.f32 %v2271_v27, %v2268_v24  ;;  %v2536_v15 = vmul.f32 %v2271_v27, %v2271_v27  ;;  %v3579_v30 = vpop.f32.mrb[23].mxu1 }
 0x19d   : > { %v3597_v53 = vadd.f32 %v2084_v28, %v1121_v31  ;;  %v3543_v47 = vpop.f32.mrb[3].mxu0  ;;  %v2467_v0 = vmul.f32 %v3596_v40, %v2420_v16 }
 0x19e   : > { %3077 = vst [vmem:[%s4651_s25] sm:$0xff] %v3076_v29   ;;  %v2545_v58 = vadd.f32 %v2536_v15, %v2535_v14  ;;  %v2445_v15 = vpop.permute.xlu1 %2444 }
 0x19f   : > { %v3051_v32 = vpack.c.bf16 %v3597_v53, %v3596_v40  ;;  %v2468_v33 = vmul.f32 %v3597_v53, %v2425_v41  ;;  %v2493_v37 = vmul.f32 %v3596_v40, %v2467_v0 }
 0x1a1   : > { %3052 = vst [vmem:[%s4657_s16] sm:$0xff] %v3051_v32   ;;  %v2477_v35 = vadd.f32 %v2468_v33, %v2467_v0  ;;  %v2494_v42 = vmul.f32 %v3597_v53, %v2468_v33  ;;  %v2276_v38 = vpop.f32.mrb[24].mxu1 }
 0x1a2   : > { %v2089_v39 = vpop.f32.mrb[4].mxu0  ;;  %v2520_v43 = vadd.f32 %v2519_v44, %v2276_v38  ;;  %v2537_v3 = vmul.f32 %v2276_v38, %v2276_v38  ;;  %v3582_v10 = vpop.f32.mrb[25].mxu1 }
 0x1a3   : > { %v2503_v26 = vadd.f32 %v2494_v42, %v2493_v37  ;;  %v3598_v45 = vadd.f32 %v2089_v39, %v1126_v2  ;;  %v3546_v46 = vpop.f32.mrb[5].mxu0  ;;  %v2279_v48 = vpop.f32.mrb[26].mxu1 }
 0x1a4   : > { %v2546_v49 = vadd.f32 %v2545_v58, %v2537_v3  ;;  %v2092_v50 = vpop.f32.mrb[6].mxu0  ;;  %v3081_v5 = vpack.c.bf16 %v2279_v48, %v2276_v38  ;;  %v2521_v52 = vadd.f32 %v2520_v43, %v2279_v48  ;;  %v2538_v54 = vmul.f32 %v2279_v48, %v2279_v48  ;;  %v3583_v57 = vpop.f32.mrb[27].mxu1 }
 0x1a5   : > { %v2469_v59 = vmul.f32 %v3598_v45, %v2430_v34  ;;  %v3599_v11 = vadd.f32 %v2092_v50, %v1129_v8  ;;  %v3547_v51 = vpop.f32.mrb[7].mxu0  ;;  %v2450_v58 = vpop.permute.xlu0 %2449 }
 0x1a6   : > { %3102 = vst [vmem:[%s4651_s25 + $0x8] sm:$0xff] %v3081_v5   ;;  %v2547_v55 = vadd.f32 %v2546_v49, %v2538_v54  ;;  %v2455_v57 = vpop.permute.xlu1 %2454 }
 0x1a7   : > { %v2478_v63 = vadd.f32 %v2477_v35, %v2469_v59  ;;  %v2495_v7 = vmul.f32 %v3598_v45, %v2469_v59  ;;  %v3056_v31 = vpack.c.bf16 %v3599_v11, %v3598_v45  ;;  %v2470_v4 = vmul.f32 %v3599_v11, %v2435_v21 }
 0x1a9   : > { %v2504_v2 = vadd.f32 %v2503_v26, %v2495_v7  ;;  %3098 = vst [vmem:[%s4657_s16 + $0x8] sm:$0xff] %v3056_v31   ;;  %v2479_v62 = vadd.f32 %v2478_v63, %v2470_v4  ;;  %v2496_v1 = vmul.f32 %v3599_v11, %v2470_v4  ;;  %v2284_v36 = vpop.f32.mrb[28].mxu1 }
 0x1aa   : > { %v2097_v56 = vpop.f32.mrb[8].mxu0  ;;  %v2522_v18 = vadd.f32 %v2521_v52, %v2284_v36  ;;  %v2539_v20 = vmul.f32 %v2284_v36, %v2284_v36  ;;  %v3586_v16 = vpop.f32.mrb[29].mxu1 }
 0x1ab   : > { %v2505_v8 = vadd.f32 %v2504_v2, %v2496_v1  ;;  %v3600_v23 = vadd.f32 %v2097_v56, %v4635_v9  ;;  %v3550_v24 = vpop.f32.mrb[9].mxu0  ;;  %v2287_v41 = vpop.f32.mrb[30].mxu1 }
 0x1ac   : > { %v2548_v19 = vadd.f32 %v2547_v55, %v2539_v20  ;;  %v2100_v14 = vpop.f32.mrb[10].mxu0  ;;  %v3086_v25 = vpack.c.bf16 %v2287_v41, %v2284_v36  ;;  %v2523_v40 = vadd.f32 %v2522_v18, %v2287_v41  ;;  %v2540_v61 = vmul.f32 %v2287_v41, %v2287_v41  ;;  %v3587_v27 = vpop.f32.mrb[31].mxu1 }
 0x1ad   : > { %v2471_v28 = vmul.f32 %v3600_v23, %v2440_v6  ;;  %v3601_v29 = vadd.f32 %v2100_v14, %v4637_v12  ;;  %v3551_v44 = vpop.f32.mrb[11].mxu0  ;;  %v2460_v55 = vpop.permute.xlu0 %2459 }
 0x1ae   : > { %3103 = vst [vmem:[%s4651_s25 + $0x10] sm:$0xff] %v3086_v25   ;;  %v2549_v30 = vadd.f32 %v2548_v19, %v2540_v61 }
 0x1af   : > { %v2480_v53 = vadd.f32 %v2479_v62, %v2471_v28  ;;  %v2497_v47 = vmul.f32 %v3600_v23, %v2471_v28  ;;  %v3061_v0 = vpack.c.bf16 %v3601_v29, %v3600_v23  ;;  %v2472_v9 = vmul.f32 %v3601_v29, %v2445_v15 }
 0x1b1   : > { %v2506_v32 = vadd.f32 %v2505_v8, %v2497_v47  ;;  %3099 = vst [vmem:[%s4657_s16 + $0x10] sm:$0xff] %v3061_v0   ;;  %v2481_v33 = vadd.f32 %v2480_v53, %v2472_v9  ;;  %v2498_v34 = vmul.f32 %v3601_v29, %v2472_v9  ;;  %v2292_v35 = vpop.f32.mrb[32].mxu1 }
 0x1b2   : > { %v2105_v37 = vpop.f32.mrb[12].mxu0  ;;  %v2524_v42 = vadd.f32 %v2523_v40, %v2292_v35  ;;  %v2541_v38 = vmul.f32 %v2292_v35, %v2292_v35  ;;  %v3590_v39 = vpop.f32.mrb[33].mxu1 }
 0x1b3   : > { %v2507_v12 = vadd.f32 %v2506_v32, %v2498_v34  ;;  %v3602_v43 = vadd.f32 %v2105_v37, %v4639_v17  ;;  %v3554_v3 = vpop.f32.mrb[13].mxu0  ;;  %v2295_v10 = vpop.f32.mrb[34].mxu1 }
 0x1b4   : > { %v2550_v26 = vadd.f32 %v2549_v30, %v2541_v38  ;;  %v2108_v45 = vpop.f32.mrb[14].mxu0  ;;  %v3091_v46 = vpack.c.bf16 %v2295_v10, %v2292_v35  ;;  %v2525_v48 = vadd.f32 %v2524_v42, %v2295_v10  ;;  %v2542_v49 = vmul.f32 %v2295_v10, %v2295_v10  ;;  %v3591_v50 = vpop.f32.mrb[35].mxu1 }
 0x1b5   : > { %v2473_v5 = vmul.f32 %v3602_v43, %v2450_v58  ;;  %v3603_v52 = vadd.f32 %v2108_v45, %v4641_v60  ;;  %v3555_v54 = vpop.f32.mrb[15].mxu0  ;;  %v2465_v40 = vpop.permute.xlu1 %2464 }
 0x1b6   : > { %3104 = vst [vmem:[%s4651_s25 + $0x18] sm:$0xff] %v3091_v46   ;;  %v2551_v59 = vadd.f32 %v2550_v26, %v2542_v49 }
 0x1b7   : > { %v2482_v11 = vadd.f32 %v2481_v33, %v2473_v5  ;;  %v2499_v51 = vmul.f32 %v3602_v43, %v2473_v5  ;;  %v3066_v21 = vpack.c.bf16 %v3603_v52, %v3602_v43  ;;  %v2474_v17 = vmul.f32 %v3603_v52, %v2455_v57 }
 0x1b9   : > { %v2508_v63 = vadd.f32 %v2507_v12, %v2499_v51  ;;  %3100 = vst [vmem:[%s4657_s16 + $0x18] sm:$0xff] %v3066_v21   ;;  %v2483_v7 = vadd.f32 %v2482_v11, %v2474_v17  ;;  %v2500_v31 = vmul.f32 %v3603_v52, %v2474_v17  ;;  %v2300_v4 = vpop.f32.mrb[36].mxu1 }
 0x1ba   : > { %v2113_v2 = vpop.f32.mrb[16].mxu0  ;;  %v2526_v6 = vadd.f32 %v2525_v48, %v2300_v4  ;;  %v2543_v62 = vmul.f32 %v2300_v4, %v2300_v4  ;;  %v3594_v1 = vpop.f32.mrb[37].mxu1 }
 0x1bb   : > { %v2509_v60 = vadd.f32 %v2508_v63, %v2500_v31  ;;  %v3604_v36 = vadd.f32 %v2113_v2, %v4643_v13  ;;  %v3558_v56 = vpop.f32.mrb[17].mxu0  ;;  %v2303_v18 = vpop.f32.mrb[38].mxu1 }
 0x1bc   : > { %v2552_v20 = vadd.f32 %v2551_v59, %v2543_v62  ;;  %v2116_v16 = vpop.f32.mrb[18].mxu0  ;;  %v3096_v8 = vpack.c.bf16 %v2303_v18, %v2300_v4  ;;  %v2527_v23 = vadd.f32 %v2526_v6, %v2303_v18  ;;  %v2544_v24 = vmul.f32 %v2303_v18, %v2303_v18  ;;  %v3595_v41 = vpop.f32.mrb[39].mxu1 }
 0x1bd   : > { %v2475_v19 = vmul.f32 %v3604_v36, %v2460_v55  ;;  %v3605_v14 = vadd.f32 %v2116_v16, %v4645_v22  ;;  %v3559_v25 = vpop.f32.mrb[19].mxu0 }
 0x1be   : > { %3105 = vst [vmem:[%s4651_s25 + $0x20] sm:$0xff] %v3096_v8   ;;  %v2528_v61 = vrot.slane %v2527_v23, 4  ;;  %v2553_v27 = vadd.f32 %v2552_v20, %v2544_v24 }
 0x1bf   : > { %v2484_v28 = vadd.f32 %v2483_v7, %v2475_v19  ;;  %v2501_v29 = vmul.f32 %v3604_v36, %v2475_v19  ;;  %v3071_v13 = vpack.c.bf16 %v3605_v14, %v3604_v36  ;;  %v2476_v44 = vmul.f32 %v3605_v14, %v2465_v40 }
 0x1c0   : > { %v2529_v15 = vadd.f32 %v2528_v61, %v2527_v23  ;;  %v2554_v30 = vrot.slane %v2553_v27, 4 }
 0x1c1   : > { %v2510_v53 = vadd.f32 %v2509_v60, %v2501_v29  ;;  %3101 = vst [vmem:[%s4657_s16 + $0x20] sm:$0xff] %v3071_v13   ;;  %v2485_v47 = vadd.f32 %v2484_v28, %v2476_v44  ;;  %v2502_v0 = vmul.f32 %v3605_v14, %v2476_v44 }
 0x1c2   : > { %v2530_v9 = vrot.slane %v2529_v15, 2  ;;  %v2555_v58 = vadd.f32 %v2554_v30, %v2553_v27 }
 0x1c3   : > { %v2486_v22 = vrot.slane %v2485_v47, 4  ;;  %v2511_v32 = vadd.f32 %v2510_v53, %v2502_v0 }
 0x1c4   : > { %v2531_v33 = vadd.f32 %v2530_v9, %v2529_v15  ;;  %v2556_v34 = vrot.slane %v2555_v58, 2 }
 0x1c5   : > { %v2487_v35 = vadd.f32 %v2486_v22, %v2485_v47  ;;  %v2512_v37 = vrot.slane %v2511_v32, 4 }
 0x1c6   : > { %v2532_v42 = vrot.slane %v2531_v33, 1  ;;  %v2557_v38 = vadd.f32 %v2556_v34, %v2555_v58 }
 0x1c7   : > { %v2488_v39 = vrot.slane %v2487_v35, 2  ;;  %v2513_v12 = vadd.f32 %v2512_v37, %v2511_v32 }
 0x1c8   : > { %v2533_v43 = vadd.f32 %v2532_v42, %v2531_v33  ;;  %v2558_v3 = vrot.slane %v2557_v38, 1 }
 0x1c9   : > { %v2489_v10 = vadd.f32 %v2488_v39, %v2487_v35  ;;  %v2514_v26 = vrot.slane %v2513_v12, 2 }
 0x1ca   : > { %2534 = vst [vmem:[%s421_s30] sm:$0x1] %v2533_v43  ;;  %v2559_v45 = vadd.f32 %v2558_v3, %v2557_v38 }
 0x1cb   : > { %v2490_v46 = vrot.slane %v2489_v10, 1  ;;  %v2515_v48 = vadd.f32 %v2514_v26, %v2513_v12 }
 0x1cc   : > { %2560 = vst [vmem:[%s424_s17] sm:$0x1] %v2559_v45 }
 0x1cd   : > { %v2491_v49 = vadd.f32 %v2490_v46, %v2489_v10  ;;  %v2516_v50 = vrot.slane %v2515_v48, 1 }
 0x1cf   : > { %2492 = vst [vmem:[%s415_s20] sm:$0x1] %v2491_v49  ;;  %v2517_v5 = vadd.f32 %v2516_v50, %v2515_v48 }
 0x1d1   : > { %2518 = vst [vmem:[%s418_s23] sm:$0x1] %v2517_v5 }
 0x1d2 PF: > { %s21_s13 = sadd.s32 1, %s3875_s13  }
 0x1d3   : > { %p18_p4 = scmp.ge.s32.totalorder %s21_s13, 4  }
 0x1d5   :  { %20 = sbr.rel (!%p18_p4) target bundleno = 1 (0x1), region = 141 }

</bundles_post_ra>
